<compile_context>
chip_gen: v7x
topology: tpu7x:2x2x1
jax: 0.10.0
libtpu: 0.0.40
codegen_flags: <defaults>
</compile_context>

<pallas_src>
import functools

import jax
import jax.numpy as jnp
from jax.experimental import pallas as pl
from jax.experimental.pallas import tpu as pltpu


def _vmem():
    return pl.BlockSpec(memory_space=pltpu.MemorySpace.VMEM)


# --------------------------------------------------------------------------
# Fused kernel: folded separable conv + bias + ReLU + MaxPool(p, p)
# --------------------------------------------------------------------------

def _conv_pool_kernel(x_ref, w_ref, b_ref, o_ref, *, K, p, M):
    # x_ref: (p, R_in, Cin) f32 -- padded input, grouped by residue r = pos % p.
    #        Row b*G + g of plane r holds x_pad[b, g*p + r, :].
    # w_ref: (K, Cin, Cout) bf16 -- folded per-tap weights diag(dw[:,k]) @ pw.
    # b_ref: (1, Cout) f32     -- folded bias.
    # o_ref: (M, Cout) f32     -- row b*G + j holds the pooled output (b, j).
    m = None
    for t in range(p):                      # conv position i = j*p + t (pool tap)
        acc = None
        for k in range(K):                  # conv taps
            s = t + k
            d, r = s // p, s % p            # static: x_pad[j*p + t + k] lives at
            lhs = x_ref[r, d:d + M, :].astype(jnp.bfloat16)   # plane r, row +d
            y = jnp.dot(lhs, w_ref[k], preferred_element_type=jnp.float32)
            acc = y if acc is None else acc + y
        m = acc if m is None else jnp.maximum(m, acc)         # fused max-pool
    o_ref[...] = jnp.maximum(m + b_ref[...], 0.0)             # bias + ReLU


def conv_pool_block(y, w_k, b_eff, *, K, pad, p):
    """Fused folded SeparableConv1D + ReLU + MaxPool1d(p, p).

    y: (B, L_in, Cin) f32 channels-last, w_k: (K, Cin, Cout) bf16, b_eff: (Cout,).
    Returns (B, L_pool, Cout) f32."""
    B, L_in, Cin = y.shape
    Cout = w_k.shape[-1]
    L_conv = L_in + 2 * pad - K + 1            # PyTorch Conv1d output length
    L_pool = L_conv // p                       # MaxPool1d(p, p), floor mode
    G = -(-(L_in + 2 * pad) // p)              # pool groups per batch element
    d_max = (p - 1 + K - 1) // p
    M = ((B * G + 7) // 8) * 8                 # output rows, 8-aligned sublanes
    R_in = M + d_max

    # pad length (conv zero padding + tail to a multiple of p), group by p,
    # move the residue axis in front -> strictly 2-D slices inside the kernel.
    y_pad = jnp.pad(y, ((0, 0), (pad, G * p - L_in - pad), (0, 0)))
    xg = y_pad.reshape(B, G, p, Cin).transpose(2, 0, 1, 3).reshape(p, B * G, Cin)
    xg = jnp.pad(xg, ((0, 0), (0, R_in - B * G), (0, 0)))

    out = pl.pallas_call(
        functools.partial(_conv_pool_kernel, K=K, p=p, M=M),
        out_shape=jax.ShapeDtypeStruct((M, Cout), jnp.float32),
        in_specs=[_vmem(), _vmem(), _vmem()],
        out_specs=_vmem(),
    )(xg, w_k, b_eff.reshape(1, Cout))
    # valid rows live at b*G + j, j < L_pool; rows in between are ignored garbage
    return out[:B * G].reshape(B, G, Cout)[:, :L_pool, :]


# --------------------------------------------------------------------------
# Fused head kernel: fc1 + sigmoid + fc2 + sigmoid + |L1| + Linear(100,1) + sigmoid
# --------------------------------------------------------------------------

def _head_kernel(x_ref, w1_ref, b1_ref, w2_ref, b2_ref, wp_ref, bp_ref, o_ref, *, B):
    h = jnp.dot(x_ref[...].astype(jnp.bfloat16), w1_ref[...],
                preferred_element_type=jnp.float32)
    h = jax.nn.sigmoid(h + b1_ref[...])
    h = jnp.dot(h.astype(jnp.bfloat16), w2_ref[...],
                preferred_element_type=jnp.float32)
    h = jax.nn.sigmoid(h + b2_ref[...])                       # (2B, 100) encodings
    # TODO(synk): nn.Dropout(p=0.5) is treated as identity (inference mode).
    d = jnp.abs(h[:B, :] - h[B:2 * B, :])                     # L1 distance
    y = jnp.sum(d * wp_ref[...], axis=-1, keepdims=True) + bp_ref[...]
    o_ref[...] = jax.nn.sigmoid(y)


def head(feats, fp, B):
    return pl.pallas_call(
        functools.partial(_head_kernel, B=B),
        out_shape=jax.ShapeDtypeStruct((B, 1), jnp.float32),
        in_specs=[_vmem()] * 7,
        out_specs=_vmem(),
    )(feats, fp["wfc1"], fp["bfc1"], fp["wfc2"], fp["bfc2"], fp["wp"], fp["bp"])


# --------------------------------------------------------------------------
# Weight folding / layout preparation (tiny; runs inside the jitted forward)
# --------------------------------------------------------------------------

def fold_params(p):
    bf16 = jnp.bfloat16
    # ---- layer 1: SeparableConv1D(2, 14, k=64, s=8, dm=29), groups=2 ----
    dw1 = p["dw1_w"][:, 0, :]                                 # (58, 64)
    pw1 = p["pw1_w"][:, :, 0]                                 # (14, 58)
    z = jnp.zeros((64, 29), jnp.float32)
    blkdiag = jnp.concatenate(
        [jnp.concatenate([dw1[:29].T, z], axis=1),
         jnp.concatenate([z, dw1[29:].T], axis=1)], axis=0)   # (128, 58)
    w1_eff = blkdiag @ pw1.T                                  # (128, 14), rows (c,k)
    b1_eff = p["dw1_b"] @ pw1.T + p["pw1_b"]                  # (14,)
    # regroup rows c*64 + 8u + l  ->  per-chunk weights (u, l*2 + c, cout)
    w1 = jnp.transpose(w1_eff.reshape(2, 8, 8, 14), (1, 2, 0, 3)).reshape(8, 16, 14)
    out = {"w1": w1.astype(bf16), "b1": b1_eff}
    # ---- blocks 2..5 (depth_multiplier = 1): W_k = diag(dw[:,k]) @ pw ----
    for i in range(2, 6):
        dw = p[f"dw{i}_w"][:, 0, :]                           # (C, K)
        pwt = p[f"pw{i}_w"][:, :, 0].T                        # (C, Cout)
        out[f"w{i}"] = (dw.T[:, :, None] * pwt[None, :, :]).astype(bf16)  # (K,C,Cout)
        out[f"b{i}"] = p[f"dw{i}_b"] @ pwt + p[f"pw{i}_b"]
    # ---- FC head: permute fc1 rows so channels-last (l, c) flatten matches
    #      PyTorch's NCW channel-major Flatten order ----
    wfc1 = jnp.transpose(p["fc1_w"].T.reshape(64, 2, 100), (1, 0, 2)).reshape(128, 100)
    out["wfc1"] = wfc1.astype(bf16)
    out["bfc1"] = p["fc1_b"].reshape(1, 100)
    out["wfc2"] = p["fc2_w"].T.astype(bf16)
    out["bfc2"] = p["fc2_b"].reshape(1, 100)
    out["wp"] = p["pred_w"].reshape(1, 100)
    out["bp"] = p["pred_b"].reshape(1, 1)
    return out


# --------------------------------------------------------------------------
# Forward pass
# --------------------------------------------------------------------------

def convnet(x_ncw, fp):
    """x_ncw: (N, 2, L) NCW float32 -> (N, 128) flattened features."""
    N, _, L = x_ncw.shape
    x = jnp.transpose(x_ncw, (0, 2, 1))                       # (N, L, 2) channels-last
    x = jnp.pad(x, ((0, 0), (32, 32), (0, 0)))                # Conv1d padding=32
    x = x.reshape(N, (L + 64) // 8, 16)                       # 8-step x 2-ch chunks
    y = conv_pool_block(x, fp["w1"], fp["b1"], K=8, pad=0, p=3)   # (N, 85, 14)
    y = conv_pool_block(y, fp["w2"], fp["b2"], K=3, pad=1, p=3)   # (N, 28, 32)
    y = conv_pool_block(y, fp["w3"], fp["b3"], K=2, pad=1, p=3)   # (N, 9, 64)
    y = conv_pool_block(y, fp["w4"], fp["b4"], K=3, pad=1, p=2)   # (N, 4, 64)
    y = conv_pool_block(y, fp["w5"], fp["b5"], K=3, pad=1, p=2)   # (N, 2, 64)
    return y.reshape(N, 128)


def siamese_forward(params, x1, x2):
    fp = fold_params(params)
    B = x1.shape[0]
    x = jnp.concatenate([x1, x2], axis=0)        # batch both branches together
    feats = convnet(x, fp)                       # (2B, 128)
    return head(feats, fp, B)                    # (B, 1)


# --------------------------------------------------------------------------
# Parameters (deterministic synthetic init, PyTorch parameter shapes)
# --------------------------------------------------------------------------

def init_params(key):
    shapes = {
        # SeparableConv1D(2, 14, k=64, s=8, dm=29)
        "dw1_w": (58, 1, 64), "dw1_b": (58,), "pw1_w": (14, 58, 1), "pw1_b": (14,),
        # SeparableConv1D(14, 32, k=3, s=1, dm=1)
        "dw2_w": (14, 1, 3), "dw2_b": (14,), "pw2_w": (32, 14, 1), "pw2_b": (32,),
        # SeparableConv1D(32, 64, k=2, s=1, dm=1)
        "dw3_w": (32, 1, 2), "dw3_b": (32,), "pw3_w": (64, 32, 1), "pw3_b": (64,),
        # SeparableConv1D(64, 64, k=3, s=1, dm=1)
        "dw4_w": (64, 1, 3), "dw4_b": (64,), "pw4_w": (64, 64, 1), "pw4_b": (64,),
        # SeparableConv1D(64, 64, k=3, s=1, dm=1)
        "dw5_w": (64, 1, 3), "dw5_b": (64,), "pw5_w": (64, 64, 1), "pw5_b": (64,),
        # Linear(128, 100), Linear(100, 100), prediction Linear(100, 1)
        "fc1_w": (100, 128), "fc1_b": (100,),
        "fc2_w": (100, 100), "fc2_b": (100,),
        "pred_w": (1, 100), "pred_b": (1,),
    }
    keys = jax.random.split(key, len(shapes))
    params = {}
    for (name, shape), k in zip(shapes.items(), keys):
        params[name] = 0.05 * jax.random.normal(k, shape, dtype=jnp.float32)
    return params


# --------------------------------------------------------------------------
# Main
# --------------------------------------------------------------------------

if __name__ == "__main__":
    key = jax.random.PRNGKey(0)
    k_params, k_x1, k_x2 = jax.random.split(key, 3)

    params = init_params(k_params)

    # L = 2048: the conv/pool stack reduces it to 64 channels x length 2 = 128
    # features, matching nn.Linear(128, 100).
    B, C_IN, L_IN = 2, 2, 2048
    x1 = jax.random.normal(k_x1, (B, C_IN, L_IN), dtype=jnp.float32)
    x2 = jax.random.normal(k_x2, (B, C_IN, L_IN), dtype=jnp.float32)

    fwd = jax.jit(siamese_forward)
    out = fwd(params, x1, x2)
    out = jax.block_until_ready(out)

    assert out.shape == (B, 1), out.shape
    assert bool(jnp.all(jnp.isfinite(out)))
    assert bool(jnp.all((out >= 0.0) & (out <= 1.0)))
    print("KERNEL_OK")
</pallas_src>

<mosaic_0001>
module attributes {stable_mosaic.version = 11 : i64} {
  func.func @_conv_pool_kernel(%arg0: memref<3x355x16xf32, #tpu.memory_space<vmem>>, %arg1: memref<8x16x14xbf16, #tpu.memory_space<vmem>>, %arg2: memref<1x14xf32, #tpu.memory_space<vmem>>, %arg3: memref<352x14xf32, #tpu.memory_space<vmem>>) attributes {dimension_semantics = [], scalar_prefetch = 0 : i64, scratch_operands = 0 : i64, tpu.core_type = #tpu.core_type<tc>} {
    %c0 = arith.constant 0 : index
    %c0_0 = arith.constant 0 : index
    %c0_1 = arith.constant 0 : index
    %0 = vector.load %arg0[%c0, %c0_0, %c0_1] : memref<3x355x16xf32, #tpu.memory_space<vmem>>, vector<1x352x16xf32>
    %1 = vector.shape_cast %0 : vector<1x352x16xf32> to vector<352x16xf32>
    %2 = arith.truncf %1 : vector<352x16xf32> to vector<352x16xbf16>
    %c0_2 = arith.constant 0 : index
    %c0_3 = arith.constant 0 : index
    %c0_4 = arith.constant 0 : index
    %3 = vector.load %arg1[%c0_2, %c0_3, %c0_4] : memref<8x16x14xbf16, #tpu.memory_space<vmem>>, vector<1x16x14xbf16>
    %4 = vector.shape_cast %3 : vector<1x16x14xbf16> to vector<16x14xbf16>
    %cst = arith.constant dense<0.000000e+00> : vector<352x14xf32>
    %5 = tpu.matmul %2, %4, %cst {dimension_numbers = #tpu.dot_dimension_numbers<[1], [0], [0], [1], [0, 0, 1, 1], [], []>} : vector<352x16xbf16>, vector<16x14xbf16>, vector<352x14xf32> -> vector<352x14xf32>
    %c1 = arith.constant 1 : index
    %c0_5 = arith.constant 0 : index
    %c0_6 = arith.constant 0 : index
    %6 = vector.load %arg0[%c1, %c0_5, %c0_6] : memref<3x355x16xf32, #tpu.memory_space<vmem>>, vector<1x352x16xf32>
    %7 = vector.shape_cast %6 : vector<1x352x16xf32> to vector<352x16xf32>
    %8 = arith.truncf %7 : vector<352x16xf32> to vector<352x16xbf16>
    %c1_7 = arith.constant 1 : index
    %c0_8 = arith.constant 0 : index
    %c0_9 = arith.constant 0 : index
    %9 = vector.load %arg1[%c1_7, %c0_8, %c0_9] : memref<8x16x14xbf16, #tpu.memory_space<vmem>>, vector<1x16x14xbf16>
    %10 = vector.shape_cast %9 : vector<1x16x14xbf16> to vector<16x14xbf16>
    %cst_10 = arith.constant dense<0.000000e+00> : vector<352x14xf32>
    %11 = tpu.matmul %8, %10, %cst_10 {dimension_numbers = #tpu.dot_dimension_numbers<[1], [0], [0], [1], [0, 0, 1, 1], [], []>} : vector<352x16xbf16>, vector<16x14xbf16>, vector<352x14xf32> -> vector<352x14xf32>
    %12 = arith.addf %5, %11 : vector<352x14xf32>
    %c2 = arith.constant 2 : index
    %c0_11 = arith.constant 0 : index
    %c0_12 = arith.constant 0 : index
    %13 = vector.load %arg0[%c2, %c0_11, %c0_12] : memref<3x355x16xf32, #tpu.memory_space<vmem>>, vector<1x352x16xf32>
    %14 = vector.shape_cast %13 : vector<1x352x16xf32> to vector<352x16xf32>
    %15 = arith.truncf %14 : vector<352x16xf32> to vector<352x16xbf16>
    %c2_13 = arith.constant 2 : index
    %c0_14 = arith.constant 0 : index
    %c0_15 = arith.constant 0 : index
    %16 = vector.load %arg1[%c2_13, %c0_14, %c0_15] : memref<8x16x14xbf16, #tpu.memory_space<vmem>>, vector<1x16x14xbf16>
    %17 = vector.shape_cast %16 : vector<1x16x14xbf16> to vector<16x14xbf16>
    %cst_16 = arith.constant dense<0.000000e+00> : vector<352x14xf32>
    %18 = tpu.matmul %15, %17, %cst_16 {dimension_numbers = #tpu.dot_dimension_numbers<[1], [0], [0], [1], [0, 0, 1, 1], [], []>} : vector<352x16xbf16>, vector<16x14xbf16>, vector<352x14xf32> -> vector<352x14xf32>
    %19 = arith.addf %12, %18 : vector<352x14xf32>
    %c0_17 = arith.constant 0 : index
    %c1_18 = arith.constant 1 : index
    %c0_19 = arith.constant 0 : index
    %20 = vector.load %arg0[%c0_17, %c1_18, %c0_19] : memref<3x355x16xf32, #tpu.memory_space<vmem>>, vector<1x352x16xf32>
    %21 = vector.shape_cast %20 : vector<1x352x16xf32> to vector<352x16xf32>
    %22 = arith.truncf %21 : vector<352x16xf32> to vector<352x16xbf16>
    %c3 = arith.constant 3 : index
    %c0_20 = arith.constant 0 : index
    %c0_21 = arith.constant 0 : index
    %23 = vector.load %arg1[%c3, %c0_20, %c0_21] : memref<8x16x14xbf16, #tpu.memory_space<vmem>>, vector<1x16x14xbf16>
    %24 = vector.shape_cast %23 : vector<1x16x14xbf16> to vector<16x14xbf16>
    %cst_22 = arith.constant dense<0.000000e+00> : vector<352x14xf32>
    %25 = tpu.matmul %22, %24, %cst_22 {dimension_numbers = #tpu.dot_dimension_numbers<[1], [0], [0], [1], [0, 0, 1, 1], [], []>} : vector<352x16xbf16>, vector<16x14xbf16>, vector<352x14xf32> -> vector<352x14xf32>
    %26 = arith.addf %19, %25 : vector<352x14xf32>
    %c1_23 = arith.constant 1 : index
    %c1_24 = arith.constant 1 : index
    %c0_25 = arith.constant 0 : index
    %27 = vector.load %arg0[%c1_23, %c1_24, %c0_25] : memref<3x355x16xf32, #tpu.memory_space<vmem>>, vector<1x352x16xf32>
    %28 = vector.shape_cast %27 : vector<1x352x16xf32> to vector<352x16xf32>
    %29 = arith.truncf %28 : vector<352x16xf32> to vector<352x16xbf16>
    %c4 = arith.constant 4 : index
    %c0_26 = arith.constant 0 : index
    %c0_27 = arith.constant 0 : index
    %30 = vector.load %arg1[%c4, %c0_26, %c0_27] : memref<8x16x14xbf16, #tpu.memory_space<vmem>>, vector<1x16x14xbf16>
    %31 = vector.shape_cast %30 : vector<1x16x14xbf16> to vector<16x14xbf16>
    %cst_28 = arith.constant dense<0.000000e+00> : vector<352x14xf32>
    %32 = tpu.matmul %29, %31, %cst_28 {dimension_numbers = #tpu.dot_dimension_numbers<[1], [0], [0], [1], [0, 0, 1, 1], [], []>} : vector<352x16xbf16>, vector<16x14xbf16>, vector<352x14xf32> -> vector<352x14xf32>
    %33 = arith.addf %26, %32 : vector<352x14xf32>
    %c2_29 = arith.constant 2 : index
    %c1_30 = arith.constant 1 : index
    %c0_31 = arith.constant 0 : index
    %34 = vector.load %arg0[%c2_29, %c1_30, %c0_31] : memref<3x355x16xf32, #tpu.memory_space<vmem>>, vector<1x352x16xf32>
    %35 = vector.shape_cast %34 : vector<1x352x16xf32> to vector<352x16xf32>
    %36 = arith.truncf %35 : vector<352x16xf32> to vector<352x16xbf16>
    %c5 = arith.constant 5 : index
    %c0_32 = arith.constant 0 : index
    %c0_33 = arith.constant 0 : index
    %37 = vector.load %arg1[%c5, %c0_32, %c0_33] : memref<8x16x14xbf16, #tpu.memory_space<vmem>>, vector<1x16x14xbf16>
    %38 = vector.shape_cast %37 : vector<1x16x14xbf16> to vector<16x14xbf16>
    %cst_34 = arith.constant dense<0.000000e+00> : vector<352x14xf32>
    %39 = tpu.matmul %36, %38, %cst_34 {dimension_numbers = #tpu.dot_dimension_numbers<[1], [0], [0], [1], [0, 0, 1, 1], [], []>} : vector<352x16xbf16>, vector<16x14xbf16>, vector<352x14xf32> -> vector<352x14xf32>
    %40 = arith.addf %33, %39 : vector<352x14xf32>
    %c0_35 = arith.constant 0 : index
    %c2_36 = arith.constant 2 : index
    %c0_37 = arith.constant 0 : index
    %41 = vector.load %arg0[%c0_35, %c2_36, %c0_37] : memref<3x355x16xf32, #tpu.memory_space<vmem>>, vector<1x352x16xf32>
    %42 = vector.shape_cast %41 : vector<1x352x16xf32> to vector<352x16xf32>
    %43 = arith.truncf %42 : vector<352x16xf32> to vector<352x16xbf16>
    %c6 = arith.constant 6 : index
    %c0_38 = arith.constant 0 : index
    %c0_39 = arith.constant 0 : index
    %44 = vector.load %arg1[%c6, %c0_38, %c0_39] : memref<8x16x14xbf16, #tpu.memory_space<vmem>>, vector<1x16x14xbf16>
    %45 = vector.shape_cast %44 : vector<1x16x14xbf16> to vector<16x14xbf16>
    %cst_40 = arith.constant dense<0.000000e+00> : vector<352x14xf32>
    %46 = tpu.matmul %43, %45, %cst_40 {dimension_numbers = #tpu.dot_dimension_numbers<[1], [0], [0], [1], [0, 0, 1, 1], [], []>} : vector<352x16xbf16>, vector<16x14xbf16>, vector<352x14xf32> -> vector<352x14xf32>
    %47 = arith.addf %40, %46 : vector<352x14xf32>
    %c1_41 = arith.constant 1 : index
    %c2_42 = arith.constant 2 : index
    %c0_43 = arith.constant 0 : index
    %48 = vector.load %arg0[%c1_41, %c2_42, %c0_43] : memref<3x355x16xf32, #tpu.memory_space<vmem>>, vector<1x352x16xf32>
    %49 = vector.shape_cast %48 : vector<1x352x16xf32> to vector<352x16xf32>
    %50 = arith.truncf %49 : vector<352x16xf32> to vector<352x16xbf16>
    %c7 = arith.constant 7 : index
    %c0_44 = arith.constant 0 : index
    %c0_45 = arith.constant 0 : index
    %51 = vector.load %arg1[%c7, %c0_44, %c0_45] : memref<8x16x14xbf16, #tpu.memory_space<vmem>>, vector<1x16x14xbf16>
    %52 = vector.shape_cast %51 : vector<1x16x14xbf16> to vector<16x14xbf16>
    %cst_46 = arith.constant dense<0.000000e+00> : vector<352x14xf32>
    %53 = tpu.matmul %50, %52, %cst_46 {dimension_numbers = #tpu.dot_dimension_numbers<[1], [0], [0], [1], [0, 0, 1, 1], [], []>} : vector<352x16xbf16>, vector<16x14xbf16>, vector<352x14xf32> -> vector<352x14xf32>
    %54 = arith.addf %47, %53 : vector<352x14xf32>
    %c1_47 = arith.constant 1 : index
    %c0_48 = arith.constant 0 : index
    %c0_49 = arith.constant 0 : index
    %55 = vector.load %arg0[%c1_47, %c0_48, %c0_49] : memref<3x355x16xf32, #tpu.memory_space<vmem>>, vector<1x352x16xf32>
    %56 = vector.shape_cast %55 : vector<1x352x16xf32> to vector<352x16xf32>
    %57 = arith.truncf %56 : vector<352x16xf32> to vector<352x16xbf16>
    %c0_50 = arith.constant 0 : index
    %c0_51 = arith.constant 0 : index
    %c0_52 = arith.constant 0 : index
    %58 = vector.load %arg1[%c0_50, %c0_51, %c0_52] : memref<8x16x14xbf16, #tpu.memory_space<vmem>>, vector<1x16x14xbf16>
    %59 = vector.shape_cast %58 : vector<1x16x14xbf16> to vector<16x14xbf16>
    %cst_53 = arith.constant dense<0.000000e+00> : vector<352x14xf32>
    %60 = tpu.matmul %57, %59, %cst_53 {dimension_numbers = #tpu.dot_dimension_numbers<[1], [0], [0], [1], [0, 0, 1, 1], [], []>} : vector<352x16xbf16>, vector<16x14xbf16>, vector<352x14xf32> -> vector<352x14xf32>
    %c2_54 = arith.constant 2 : index
    %c0_55 = arith.constant 0 : index
    %c0_56 = arith.constant 0 : index
    %61 = vector.load %arg0[%c2_54, %c0_55, %c0_56] : memref<3x355x16xf32, #tpu.memory_space<vmem>>, vector<1x352x16xf32>
    %62 = vector.shape_cast %61 : vector<1x352x16xf32> to vector<352x16xf32>
    %63 = arith.truncf %62 : vector<352x16xf32> to vector<352x16xbf16>
    %c1_57 = arith.constant 1 : index
    %c0_58 = arith.constant 0 : index
    %c0_59 = arith.constant 0 : index
    %64 = vector.load %arg1[%c1_57, %c0_58, %c0_59] : memref<8x16x14xbf16, #tpu.memory_space<vmem>>, vector<1x16x14xbf16>
    %65 = vector.shape_cast %64 : vector<1x16x14xbf16> to vector<16x14xbf16>
    %cst_60 = arith.constant dense<0.000000e+00> : vector<352x14xf32>
    %66 = tpu.matmul %63, %65, %cst_60 {dimension_numbers = #tpu.dot_dimension_numbers<[1], [0], [0], [1], [0, 0, 1, 1], [], []>} : vector<352x16xbf16>, vector<16x14xbf16>, vector<352x14xf32> -> vector<352x14xf32>
    %67 = arith.addf %60, %66 : vector<352x14xf32>
    %c0_61 = arith.constant 0 : index
    %c1_62 = arith.constant 1 : index
    %c0_63 = arith.constant 0 : index
    %68 = vector.load %arg0[%c0_61, %c1_62, %c0_63] : memref<3x355x16xf32, #tpu.memory_space<vmem>>, vector<1x352x16xf32>
    %69 = vector.shape_cast %68 : vector<1x352x16xf32> to vector<352x16xf32>
    %70 = arith.truncf %69 : vector<352x16xf32> to vector<352x16xbf16>
    %c2_64 = arith.constant 2 : index
    %c0_65 = arith.constant 0 : index
    %c0_66 = arith.constant 0 : index
    %71 = vector.load %arg1[%c2_64, %c0_65, %c0_66] : memref<8x16x14xbf16, #tpu.memory_space<vmem>>, vector<1x16x14xbf16>
    %72 = vector.shape_cast %71 : vector<1x16x14xbf16> to vector<16x14xbf16>
    %cst_67 = arith.constant dense<0.000000e+00> : vector<352x14xf32>
    %73 = tpu.matmul %70, %72, %cst_67 {dimension_numbers = #tpu.dot_dimension_numbers<[1], [0], [0], [1], [0, 0, 1, 1], [], []>} : vector<352x16xbf16>, vector<16x14xbf16>, vector<352x14xf32> -> vector<352x14xf32>
    %74 = arith.addf %67, %73 : vector<352x14xf32>
    %c1_68 = arith.constant 1 : index
    %c1_69 = arith.constant 1 : index
    %c0_70 = arith.constant 0 : index
    %75 = vector.load %arg0[%c1_68, %c1_69, %c0_70] : memref<3x355x16xf32, #tpu.memory_space<vmem>>, vector<1x352x16xf32>
    %76 = vector.shape_cast %75 : vector<1x352x16xf32> to vector<352x16xf32>
    %77 = arith.truncf %76 : vector<352x16xf32> to vector<352x16xbf16>
    %c3_71 = arith.constant 3 : index
    %c0_72 = arith.constant 0 : index
    %c0_73 = arith.constant 0 : index
    %78 = vector.load %arg1[%c3_71, %c0_72, %c0_73] : memref<8x16x14xbf16, #tpu.memory_space<vmem>>, vector<1x16x14xbf16>
    %79 = vector.shape_cast %78 : vector<1x16x14xbf16> to vector<16x14xbf16>
    %cst_74 = arith.constant dense<0.000000e+00> : vector<352x14xf32>
    %80 = tpu.matmul %77, %79, %cst_74 {dimension_numbers = #tpu.dot_dimension_numbers<[1], [0], [0], [1], [0, 0, 1, 1], [], []>} : vector<352x16xbf16>, vector<16x14xbf16>, vector<352x14xf32> -> vector<352x14xf32>
    %81 = arith.addf %74, %80 : vector<352x14xf32>
    %c2_75 = arith.constant 2 : index
    %c1_76 = arith.constant 1 : index
    %c0_77 = arith.constant 0 : index
    %82 = vector.load %arg0[%c2_75, %c1_76, %c0_77] : memref<3x355x16xf32, #tpu.memory_space<vmem>>, vector<1x352x16xf32>
    %83 = vector.shape_cast %82 : vector<1x352x16xf32> to vector<352x16xf32>
    %84 = arith.truncf %83 : vector<352x16xf32> to vector<352x16xbf16>
    %c4_78 = arith.constant 4 : index
    %c0_79 = arith.constant 0 : index
    %c0_80 = arith.constant 0 : index
    %85 = vector.load %arg1[%c4_78, %c0_79, %c0_80] : memref<8x16x14xbf16, #tpu.memory_space<vmem>>, vector<1x16x14xbf16>
    %86 = vector.shape_cast %85 : vector<1x16x14xbf16> to vector<16x14xbf16>
    %cst_81 = arith.constant dense<0.000000e+00> : vector<352x14xf32>
    %87 = tpu.matmul %84, %86, %cst_81 {dimension_numbers = #tpu.dot_dimension_numbers<[1], [0], [0], [1], [0, 0, 1, 1], [], []>} : vector<352x16xbf16>, vector<16x14xbf16>, vector<352x14xf32> -> vector<352x14xf32>
    %88 = arith.addf %81, %87 : vector<352x14xf32>
    %c0_82 = arith.constant 0 : index
    %c2_83 = arith.constant 2 : index
    %c0_84 = arith.constant 0 : index
    %89 = vector.load %arg0[%c0_82, %c2_83, %c0_84] : memref<3x355x16xf32, #tpu.memory_space<vmem>>, vector<1x352x16xf32>
    %90 = vector.shape_cast %89 : vector<1x352x16xf32> to vector<352x16xf32>
    %91 = arith.truncf %90 : vector<352x16xf32> to vector<352x16xbf16>
    %c5_85 = arith.constant 5 : index
    %c0_86 = arith.constant 0 : index
    %c0_87 = arith.constant 0 : index
    %92 = vector.load %arg1[%c5_85, %c0_86, %c0_87] : memref<8x16x14xbf16, #tpu.memory_space<vmem>>, vector<1x16x14xbf16>
    %93 = vector.shape_cast %92 : vector<1x16x14xbf16> to vector<16x14xbf16>
    %cst_88 = arith.constant dense<0.000000e+00> : vector<352x14xf32>
    %94 = tpu.matmul %91, %93, %cst_88 {dimension_numbers = #tpu.dot_dimension_numbers<[1], [0], [0], [1], [0, 0, 1, 1], [], []>} : vector<352x16xbf16>, vector<16x14xbf16>, vector<352x14xf32> -> vector<352x14xf32>
    %95 = arith.addf %88, %94 : vector<352x14xf32>
    %c1_89 = arith.constant 1 : index
    %c2_90 = arith.constant 2 : index
    %c0_91 = arith.constant 0 : index
    %96 = vector.load %arg0[%c1_89, %c2_90, %c0_91] : memref<3x355x16xf32, #tpu.memory_space<vmem>>, vector<1x352x16xf32>
    %97 = vector.shape_cast %96 : vector<1x352x16xf32> to vector<352x16xf32>
    %98 = arith.truncf %97 : vector<352x16xf32> to vector<352x16xbf16>
    %c6_92 = arith.constant 6 : index
    %c0_93 = arith.constant 0 : index
    %c0_94 = arith.constant 0 : index
    %99 = vector.load %arg1[%c6_92, %c0_93, %c0_94] : memref<8x16x14xbf16, #tpu.memory_space<vmem>>, vector<1x16x14xbf16>
    %100 = vector.shape_cast %99 : vector<1x16x14xbf16> to vector<16x14xbf16>
    %cst_95 = arith.constant dense<0.000000e+00> : vector<352x14xf32>
    %101 = tpu.matmul %98, %100, %cst_95 {dimension_numbers = #tpu.dot_dimension_numbers<[1], [0], [0], [1], [0, 0, 1, 1], [], []>} : vector<352x16xbf16>, vector<16x14xbf16>, vector<352x14xf32> -> vector<352x14xf32>
    %102 = arith.addf %95, %101 : vector<352x14xf32>
    %c2_96 = arith.constant 2 : index
    %c2_97 = arith.constant 2 : index
    %c0_98 = arith.constant 0 : index
    %103 = vector.load %arg0[%c2_96, %c2_97, %c0_98] : memref<3x355x16xf32, #tpu.memory_space<vmem>>, vector<1x352x16xf32>
    %104 = vector.shape_cast %103 : vector<1x352x16xf32> to vector<352x16xf32>
    %105 = arith.truncf %104 : vector<352x16xf32> to vector<352x16xbf16>
    %c7_99 = arith.constant 7 : index
    %c0_100 = arith.constant 0 : index
    %c0_101 = arith.constant 0 : index
    %106 = vector.load %arg1[%c7_99, %c0_100, %c0_101] : memref<8x16x14xbf16, #tpu.memory_space<vmem>>, vector<1x16x14xbf16>
    %107 = vector.shape_cast %106 : vector<1x16x14xbf16> to vector<16x14xbf16>
    %cst_102 = arith.constant dense<0.000000e+00> : vector<352x14xf32>
    %108 = tpu.matmul %105, %107, %cst_102 {dimension_numbers = #tpu.dot_dimension_numbers<[1], [0], [0], [1], [0, 0, 1, 1], [], []>} : vector<352x16xbf16>, vector<16x14xbf16>, vector<352x14xf32> -> vector<352x14xf32>
    %109 = arith.addf %102, %108 : vector<352x14xf32>
    %110 = arith.maximumf %54, %109 : vector<352x14xf32>
    %c2_103 = arith.constant 2 : index
    %c0_104 = arith.constant 0 : index
    %c0_105 = arith.constant 0 : index
    %111 = vector.load %arg0[%c2_103, %c0_104, %c0_105] : memref<3x355x16xf32, #tpu.memory_space<vmem>>, vector<1x352x16xf32>
    %112 = vector.shape_cast %111 : vector<1x352x16xf32> to vector<352x16xf32>
    %113 = arith.truncf %112 : vector<352x16xf32> to vector<352x16xbf16>
    %c0_106 = arith.constant 0 : index
    %c0_107 = arith.constant 0 : index
    %c0_108 = arith.constant 0 : index
    %114 = vector.load %arg1[%c0_106, %c0_107, %c0_108] : memref<8x16x14xbf16, #tpu.memory_space<vmem>>, vector<1x16x14xbf16>
    %115 = vector.shape_cast %114 : vector<1x16x14xbf16> to vector<16x14xbf16>
    %cst_109 = arith.constant dense<0.000000e+00> : vector<352x14xf32>
    %116 = tpu.matmul %113, %115, %cst_109 {dimension_numbers = #tpu.dot_dimension_numbers<[1], [0], [0], [1], [0, 0, 1, 1], [], []>} : vector<352x16xbf16>, vector<16x14xbf16>, vector<352x14xf32> -> vector<352x14xf32>
    %c0_110 = arith.constant 0 : index
    %c1_111 = arith.constant 1 : index
    %c0_112 = arith.constant 0 : index
    %117 = vector.load %arg0[%c0_110, %c1_111, %c0_112] : memref<3x355x16xf32, #tpu.memory_space<vmem>>, vector<1x352x16xf32>
    %118 = vector.shape_cast %117 : vector<1x352x16xf32> to vector<352x16xf32>
    %119 = arith.truncf %118 : vector<352x16xf32> to vector<352x16xbf16>
    %c1_113 = arith.constant 1 : index
    %c0_114 = arith.constant 0 : index
    %c0_115 = arith.constant 0 : index
    %120 = vector.load %arg1[%c1_113, %c0_114, %c0_115] : memref<8x16x14xbf16, #tpu.memory_space<vmem>>, vector<1x16x14xbf16>
    %121 = vector.shape_cast %120 : vector<1x16x14xbf16> to vector<16x14xbf16>
    %cst_116 = arith.constant dense<0.000000e+00> : vector<352x14xf32>
    %122 = tpu.matmul %119, %121, %cst_116 {dimension_numbers = #tpu.dot_dimension_numbers<[1], [0], [0], [1], [0, 0, 1, 1], [], []>} : vector<352x16xbf16>, vector<16x14xbf16>, vector<352x14xf32> -> vector<352x14xf32>
    %123 = arith.addf %116, %122 : vector<352x14xf32>
    %c1_117 = arith.constant 1 : index
    %c1_118 = arith.constant 1 : index
    %c0_119 = arith.constant 0 : index
    %124 = vector.load %arg0[%c1_117, %c1_118, %c0_119] : memref<3x355x16xf32, #tpu.memory_space<vmem>>, vector<1x352x16xf32>
    %125 = vector.shape_cast %124 : vector<1x352x16xf32> to vector<352x16xf32>
    %126 = arith.truncf %125 : vector<352x16xf32> to vector<352x16xbf16>
    %c2_120 = arith.constant 2 : index
    %c0_121 = arith.constant 0 : index
    %c0_122 = arith.constant 0 : index
    %127 = vector.load %arg1[%c2_120, %c0_121, %c0_122] : memref<8x16x14xbf16, #tpu.memory_space<vmem>>, vector<1x16x14xbf16>
    %128 = vector.shape_cast %127 : vector<1x16x14xbf16> to vector<16x14xbf16>
    %cst_123 = arith.constant dense<0.000000e+00> : vector<352x14xf32>
    %129 = tpu.matmul %126, %128, %cst_123 {dimension_numbers = #tpu.dot_dimension_numbers<[1], [0], [0], [1], [0, 0, 1, 1], [], []>} : vector<352x16xbf16>, vector<16x14xbf16>, vector<352x14xf32> -> vector<352x14xf32>
    %130 = arith.addf %123, %129 : vector<352x14xf32>
    %c2_124 = arith.constant 2 : index
    %c1_125 = arith.constant 1 : index
    %c0_126 = arith.constant 0 : index
    %131 = vector.load %arg0[%c2_124, %c1_125, %c0_126] : memref<3x355x16xf32, #tpu.memory_space<vmem>>, vector<1x352x16xf32>
    %132 = vector.shape_cast %131 : vector<1x352x16xf32> to vector<352x16xf32>
    %133 = arith.truncf %132 : vector<352x16xf32> to vector<352x16xbf16>
    %c3_127 = arith.constant 3 : index
    %c0_128 = arith.constant 0 : index
    %c0_129 = arith.constant 0 : index
    %134 = vector.load %arg1[%c3_127, %c0_128, %c0_129] : memref<8x16x14xbf16, #tpu.memory_space<vmem>>, vector<1x16x14xbf16>
    %135 = vector.shape_cast %134 : vector<1x16x14xbf16> to vector<16x14xbf16>
    %cst_130 = arith.constant dense<0.000000e+00> : vector<352x14xf32>
    %136 = tpu.matmul %133, %135, %cst_130 {dimension_numbers = #tpu.dot_dimension_numbers<[1], [0], [0], [1], [0, 0, 1, 1], [], []>} : vector<352x16xbf16>, vector<16x14xbf16>, vector<352x14xf32> -> vector<352x14xf32>
    %137 = arith.addf %130, %136 : vector<352x14xf32>
    %c0_131 = arith.constant 0 : index
    %c2_132 = arith.constant 2 : index
    %c0_133 = arith.constant 0 : index
    %138 = vector.load %arg0[%c0_131, %c2_132, %c0_133] : memref<3x355x16xf32, #tpu.memory_space<vmem>>, vector<1x352x16xf32>
    %139 = vector.shape_cast %138 : vector<1x352x16xf32> to vector<352x16xf32>
    %140 = arith.truncf %139 : vector<352x16xf32> to vector<352x16xbf16>
    %c4_134 = arith.constant 4 : index
    %c0_135 = arith.constant 0 : index
    %c0_136 = arith.constant 0 : index
    %141 = vector.load %arg1[%c4_134, %c0_135, %c0_136] : memref<8x16x14xbf16, #tpu.memory_space<vmem>>, vector<1x16x14xbf16>
    %142 = vector.shape_cast %141 : vector<1x16x14xbf16> to vector<16x14xbf16>
    %cst_137 = arith.constant dense<0.000000e+00> : vector<352x14xf32>
    %143 = tpu.matmul %140, %142, %cst_137 {dimension_numbers = #tpu.dot_dimension_numbers<[1], [0], [0], [1], [0, 0, 1, 1], [], []>} : vector<352x16xbf16>, vector<16x14xbf16>, vector<352x14xf32> -> vector<352x14xf32>
    %144 = arith.addf %137, %143 : vector<352x14xf32>
    %c1_138 = arith.constant 1 : index
    %c2_139 = arith.constant 2 : index
    %c0_140 = arith.constant 0 : index
    %145 = vector.load %arg0[%c1_138, %c2_139, %c0_140] : memref<3x355x16xf32, #tpu.memory_space<vmem>>, vector<1x352x16xf32>
    %146 = vector.shape_cast %145 : vector<1x352x16xf32> to vector<352x16xf32>
    %147 = arith.truncf %146 : vector<352x16xf32> to vector<352x16xbf16>
    %c5_141 = arith.constant 5 : index
    %c0_142 = arith.constant 0 : index
    %c0_143 = arith.constant 0 : index
    %148 = vector.load %arg1[%c5_141, %c0_142, %c0_143] : memref<8x16x14xbf16, #tpu.memory_space<vmem>>, vector<1x16x14xbf16>
    %149 = vector.shape_cast %148 : vector<1x16x14xbf16> to vector<16x14xbf16>
    %cst_144 = arith.constant dense<0.000000e+00> : vector<352x14xf32>
    %150 = tpu.matmul %147, %149, %cst_144 {dimension_numbers = #tpu.dot_dimension_numbers<[1], [0], [0], [1], [0, 0, 1, 1], [], []>} : vector<352x16xbf16>, vector<16x14xbf16>, vector<352x14xf32> -> vector<352x14xf32>
    %151 = arith.addf %144, %150 : vector<352x14xf32>
    %c2_145 = arith.constant 2 : index
    %c2_146 = arith.constant 2 : index
    %c0_147 = arith.constant 0 : index
    %152 = vector.load %arg0[%c2_145, %c2_146, %c0_147] : memref<3x355x16xf32, #tpu.memory_space<vmem>>, vector<1x352x16xf32>
    %153 = vector.shape_cast %152 : vector<1x352x16xf32> to vector<352x16xf32>
    %154 = arith.truncf %153 : vector<352x16xf32> to vector<352x16xbf16>
    %c6_148 = arith.constant 6 : index
    %c0_149 = arith.constant 0 : index
    %c0_150 = arith.constant 0 : index
    %155 = vector.load %arg1[%c6_148, %c0_149, %c0_150] : memref<8x16x14xbf16, #tpu.memory_space<vmem>>, vector<1x16x14xbf16>
    %156 = vector.shape_cast %155 : vector<1x16x14xbf16> to vector<16x14xbf16>
    %cst_151 = arith.constant dense<0.000000e+00> : vector<352x14xf32>
    %157 = tpu.matmul %154, %156, %cst_151 {dimension_numbers = #tpu.dot_dimension_numbers<[1], [0], [0], [1], [0, 0, 1, 1], [], []>} : vector<352x16xbf16>, vector<16x14xbf16>, vector<352x14xf32> -> vector<352x14xf32>
    %158 = arith.addf %151, %157 : vector<352x14xf32>
    %c0_152 = arith.constant 0 : index
    %c3_153 = arith.constant 3 : index
    %c0_154 = arith.constant 0 : index
    %159 = vector.load %arg0[%c0_152, %c3_153, %c0_154] : memref<3x355x16xf32, #tpu.memory_space<vmem>>, vector<1x352x16xf32>
    %160 = vector.shape_cast %159 : vector<1x352x16xf32> to vector<352x16xf32>
    %161 = arith.truncf %160 : vector<352x16xf32> to vector<352x16xbf16>
    %c7_155 = arith.constant 7 : index
    %c0_156 = arith.constant 0 : index
    %c0_157 = arith.constant 0 : index
    %162 = vector.load %arg1[%c7_155, %c0_156, %c0_157] : memref<8x16x14xbf16, #tpu.memory_space<vmem>>, vector<1x16x14xbf16>
    %163 = vector.shape_cast %162 : vector<1x16x14xbf16> to vector<16x14xbf16>
    %cst_158 = arith.constant dense<0.000000e+00> : vector<352x14xf32>
    %164 = tpu.matmul %161, %163, %cst_158 {dimension_numbers = #tpu.dot_dimension_numbers<[1], [0], [0], [1], [0, 0, 1, 1], [], []>} : vector<352x16xbf16>, vector<16x14xbf16>, vector<352x14xf32> -> vector<352x14xf32>
    %165 = arith.addf %158, %164 : vector<352x14xf32>
    %166 = arith.maximumf %110, %165 : vector<352x14xf32>
    %c0_159 = arith.constant 0 : index
    %c0_160 = arith.constant 0 : index
    %167 = vector.load %arg2[%c0_159, %c0_160] : memref<1x14xf32, #tpu.memory_space<vmem>>, vector<1x14xf32>
    %168 = vector.broadcast %167 : vector<1x14xf32> to vector<352x14xf32>
    %169 = arith.addf %166, %168 : vector<352x14xf32>
    %cst_161 = arith.constant 0.000000e+00 : f32
    %170 = vector.broadcast %cst_161 : f32 to vector<352x14xf32>
    %171 = arith.maximumf %169, %170 : vector<352x14xf32>
    %c0_162 = arith.constant 0 : index
    %c0_163 = arith.constant 0 : index
    %172 = vector.load %arg3[%c0_162, %c0_163] : memref<352x14xf32, #tpu.memory_space<vmem>>, vector<352x14xf32>
    tpu.vector_store %arg3[%c0_162, %c0_163], %171 {strides = array<i32>} : memref<352x14xf32, #tpu.memory_space<vmem>>, vector<352x14xf32>,
    return
  }
}

module attributes {stable_mosaic.version = 11 : i64} {
  func.func @_conv_pool_kernel(%arg0: memref<3x121x14xf32, #tpu.memory_space<vmem>>, %arg1: memref<3x14x32xbf16, #tpu.memory_space<vmem>>, %arg2: memref<1x32xf32, #tpu.memory_space<vmem>>, %arg3: memref<120x32xf32, #tpu.memory_space<vmem>>) attributes {dimension_semantics = [], scalar_prefetch = 0 : i64, scratch_operands = 0 : i64, tpu.core_type = #tpu.core_type<tc>} {
    %c0 = arith.constant 0 : index
    %c0_0 = arith.constant 0 : index
    %c0_1 = arith.constant 0 : index
    %0 = vector.load %arg0[%c0, %c0_0, %c0_1] : memref<3x121x14xf32, #tpu.memory_space<vmem>>, vector<1x120x14xf32>
    %1 = vector.shape_cast %0 : vector<1x120x14xf32> to vector<120x14xf32>
    %2 = arith.truncf %1 : vector<120x14xf32> to vector<120x14xbf16>
    %c0_2 = arith.constant 0 : index
    %c0_3 = arith.constant 0 : index
    %c0_4 = arith.constant 0 : index
    %3 = vector.load %arg1[%c0_2, %c0_3, %c0_4] : memref<3x14x32xbf16, #tpu.memory_space<vmem>>, vector<1x14x32xbf16>
    %4 = vector.shape_cast %3 : vector<1x14x32xbf16> to vector<14x32xbf16>
    %cst = arith.constant dense<0.000000e+00> : vector<120x32xf32>
    %5 = tpu.matmul %2, %4, %cst {dimension_numbers = #tpu.dot_dimension_numbers<[1], [0], [0], [1], [0, 0, 1, 1], [], []>} : vector<120x14xbf16>, vector<14x32xbf16>, vector<120x32xf32> -> vector<120x32xf32>
    %c1 = arith.constant 1 : index
    %c0_5 = arith.constant 0 : index
    %c0_6 = arith.constant 0 : index
    %6 = vector.load %arg0[%c1, %c0_5, %c0_6] : memref<3x121x14xf32, #tpu.memory_space<vmem>>, vector<1x120x14xf32>
    %7 = vector.shape_cast %6 : vector<1x120x14xf32> to vector<120x14xf32>
    %8 = arith.truncf %7 : vector<120x14xf32> to vector<120x14xbf16>
    %c1_7 = arith.constant 1 : index
    %c0_8 = arith.constant 0 : index
    %c0_9 = arith.constant 0 : index
    %9 = vector.load %arg1[%c1_7, %c0_8, %c0_9] : memref<3x14x32xbf16, #tpu.memory_space<vmem>>, vector<1x14x32xbf16>
    %10 = vector.shape_cast %9 : vector<1x14x32xbf16> to vector<14x32xbf16>
    %cst_10 = arith.constant dense<0.000000e+00> : vector<120x32xf32>
    %11 = tpu.matmul %8, %10, %cst_10 {dimension_numbers = #tpu.dot_dimension_numbers<[1], [0], [0], [1], [0, 0, 1, 1], [], []>} : vector<120x14xbf16>, vector<14x32xbf16>, vector<120x32xf32> -> vector<120x32xf32>
    %12 = arith.addf %5, %11 : vector<120x32xf32>
    %c2 = arith.constant 2 : index
    %c0_11 = arith.constant 0 : index
    %c0_12 = arith.constant 0 : index
    %13 = vector.load %arg0[%c2, %c0_11, %c0_12] : memref<3x121x14xf32, #tpu.memory_space<vmem>>, vector<1x120x14xf32>
    %14 = vector.shape_cast %13 : vector<1x120x14xf32> to vector<120x14xf32>
    %15 = arith.truncf %14 : vector<120x14xf32> to vector<120x14xbf16>
    %c2_13 = arith.constant 2 : index
    %c0_14 = arith.constant 0 : index
    %c0_15 = arith.constant 0 : index
    %16 = vector.load %arg1[%c2_13, %c0_14, %c0_15] : memref<3x14x32xbf16, #tpu.memory_space<vmem>>, vector<1x14x32xbf16>
    %17 = vector.shape_cast %16 : vector<1x14x32xbf16> to vector<14x32xbf16>
    %cst_16 = arith.constant dense<0.000000e+00> : vector<120x32xf32>
    %18 = tpu.matmul %15, %17, %cst_16 {dimension_numbers = #tpu.dot_dimension_numbers<[1], [0], [0], [1], [0, 0, 1, 1], [], []>} : vector<120x14xbf16>, vector<14x32xbf16>, vector<120x32xf32> -> vector<120x32xf32>
    %19 = arith.addf %12, %18 : vector<120x32xf32>
    %c1_17 = arith.constant 1 : index
    %c0_18 = arith.constant 0 : index
    %c0_19 = arith.constant 0 : index
    %20 = vector.load %arg0[%c1_17, %c0_18, %c0_19] : memref<3x121x14xf32, #tpu.memory_space<vmem>>, vector<1x120x14xf32>
    %21 = vector.shape_cast %20 : vector<1x120x14xf32> to vector<120x14xf32>
    %22 = arith.truncf %21 : vector<120x14xf32> to vector<120x14xbf16>
    %c0_20 = arith.constant 0 : index
    %c0_21 = arith.constant 0 : index
    %c0_22 = arith.constant 0 : index
    %23 = vector.load %arg1[%c0_20, %c0_21, %c0_22] : memref<3x14x32xbf16, #tpu.memory_space<vmem>>, vector<1x14x32xbf16>
    %24 = vector.shape_cast %23 : vector<1x14x32xbf16> to vector<14x32xbf16>
    %cst_23 = arith.constant dense<0.000000e+00> : vector<120x32xf32>
    %25 = tpu.matmul %22, %24, %cst_23 {dimension_numbers = #tpu.dot_dimension_numbers<[1], [0], [0], [1], [0, 0, 1, 1], [], []>} : vector<120x14xbf16>, vector<14x32xbf16>, vector<120x32xf32> -> vector<120x32xf32>
    %c2_24 = arith.constant 2 : index
    %c0_25 = arith.constant 0 : index
    %c0_26 = arith.constant 0 : index
    %26 = vector.load %arg0[%c2_24, %c0_25, %c0_26] : memref<3x121x14xf32, #tpu.memory_space<vmem>>, vector<1x120x14xf32>
    %27 = vector.shape_cast %26 : vector<1x120x14xf32> to vector<120x14xf32>
    %28 = arith.truncf %27 : vector<120x14xf32> to vector<120x14xbf16>
    %c1_27 = arith.constant 1 : index
    %c0_28 = arith.constant 0 : index
    %c0_29 = arith.constant 0 : index
    %29 = vector.load %arg1[%c1_27, %c0_28, %c0_29] : memref<3x14x32xbf16, #tpu.memory_space<vmem>>, vector<1x14x32xbf16>
    %30 = vector.shape_cast %29 : vector<1x14x32xbf16> to vector<14x32xbf16>
    %cst_30 = arith.constant dense<0.000000e+00> : vector<120x32xf32>
    %31 = tpu.matmul %28, %30, %cst_30 {dimension_numbers = #tpu.dot_dimension_numbers<[1], [0], [0], [1], [0, 0, 1, 1], [], []>} : vector<120x14xbf16>, vector<14x32xbf16>, vector<120x32xf32> -> vector<120x32xf32>
    %32 = arith.addf %25, %31 : vector<120x32xf32>
    %c0_31 = arith.constant 0 : index
    %c1_32 = arith.constant 1 : index
    %c0_33 = arith.constant 0 : index
    %33 = vector.load %arg0[%c0_31, %c1_32, %c0_33] : memref<3x121x14xf32, #tpu.memory_space<vmem>>, vector<1x120x14xf32>
    %34 = vector.shape_cast %33 : vector<1x120x14xf32> to vector<120x14xf32>
    %35 = arith.truncf %34 : vector<120x14xf32> to vector<120x14xbf16>
    %c2_34 = arith.constant 2 : index
    %c0_35 = arith.constant 0 : index
    %c0_36 = arith.constant 0 : index
    %36 = vector.load %arg1[%c2_34, %c0_35, %c0_36] : memref<3x14x32xbf16, #tpu.memory_space<vmem>>, vector<1x14x32xbf16>
    %37 = vector.shape_cast %36 : vector<1x14x32xbf16> to vector<14x32xbf16>
    %cst_37 = arith.constant dense<0.000000e+00> : vector<120x32xf32>
    %38 = tpu.matmul %35, %37, %cst_37 {dimension_numbers = #tpu.dot_dimension_numbers<[1], [0], [0], [1], [0, 0, 1, 1], [], []>} : vector<120x14xbf16>, vector<14x32xbf16>, vector<120x32xf32> -> vector<120x32xf32>
    %39 = arith.addf %32, %38 : vector<120x32xf32>
    %40 = arith.maximumf %19, %39 : vector<120x32xf32>
    %c2_38 = arith.constant 2 : index
    %c0_39 = arith.constant 0 : index
    %c0_40 = arith.constant 0 : index
    %41 = vector.load %arg0[%c2_38, %c0_39, %c0_40] : memref<3x121x14xf32, #tpu.memory_space<vmem>>, vector<1x120x14xf32>
    %42 = vector.shape_cast %41 : vector<1x120x14xf32> to vector<120x14xf32>
    %43 = arith.truncf %42 : vector<120x14xf32> to vector<120x14xbf16>
    %c0_41 = arith.constant 0 : index
    %c0_42 = arith.constant 0 : index
    %c0_43 = arith.constant 0 : index
    %44 = vector.load %arg1[%c0_41, %c0_42, %c0_43] : memref<3x14x32xbf16, #tpu.memory_space<vmem>>, vector<1x14x32xbf16>
    %45 = vector.shape_cast %44 : vector<1x14x32xbf16> to vector<14x32xbf16>
    %cst_44 = arith.constant dense<0.000000e+00> : vector<120x32xf32>
    %46 = tpu.matmul %43, %45, %cst_44 {dimension_numbers = #tpu.dot_dimension_numbers<[1], [0], [0], [1], [0, 0, 1, 1], [], []>} : vector<120x14xbf16>, vector<14x32xbf16>, vector<120x32xf32> -> vector<120x32xf32>
    %c0_45 = arith.constant 0 : index
    %c1_46 = arith.constant 1 : index
    %c0_47 = arith.constant 0 : index
    %47 = vector.load %arg0[%c0_45, %c1_46, %c0_47] : memref<3x121x14xf32, #tpu.memory_space<vmem>>, vector<1x120x14xf32>
    %48 = vector.shape_cast %47 : vector<1x120x14xf32> to vector<120x14xf32>
    %49 = arith.truncf %48 : vector<120x14xf32> to vector<120x14xbf16>
    %c1_48 = arith.constant 1 : index
    %c0_49 = arith.constant 0 : index
    %c0_50 = arith.constant 0 : index
    %50 = vector.load %arg1[%c1_48, %c0_49, %c0_50] : memref<3x14x32xbf16, #tpu.memory_space<vmem>>, vector<1x14x32xbf16>
    %51 = vector.shape_cast %50 : vector<1x14x32xbf16> to vector<14x32xbf16>
    %cst_51 = arith.constant dense<0.000000e+00> : vector<120x32xf32>
    %52 = tpu.matmul %49, %51, %cst_51 {dimension_numbers = #tpu.dot_dimension_numbers<[1], [0], [0], [1], [0, 0, 1, 1], [], []>} : vector<120x14xbf16>, vector<14x32xbf16>, vector<120x32xf32> -> vector<120x32xf32>
    %53 = arith.addf %46, %52 : vector<120x32xf32>
    %c1_52 = arith.constant 1 : index
    %c1_53 = arith.constant 1 : index
    %c0_54 = arith.constant 0 : index
    %54 = vector.load %arg0[%c1_52, %c1_53, %c0_54] : memref<3x121x14xf32, #tpu.memory_space<vmem>>, vector<1x120x14xf32>
    %55 = vector.shape_cast %54 : vector<1x120x14xf32> to vector<120x14xf32>
    %56 = arith.truncf %55 : vector<120x14xf32> to vector<120x14xbf16>
    %c2_55 = arith.constant 2 : index
    %c0_56 = arith.constant 0 : index
    %c0_57 = arith.constant 0 : index
    %57 = vector.load %arg1[%c2_55, %c0_56, %c0_57] : memref<3x14x32xbf16, #tpu.memory_space<vmem>>, vector<1x14x32xbf16>
    %58 = vector.shape_cast %57 : vector<1x14x32xbf16> to vector<14x32xbf16>
    %cst_58 = arith.constant dense<0.000000e+00> : vector<120x32xf32>
    %59 = tpu.matmul %56, %58, %cst_58 {dimension_numbers = #tpu.dot_dimension_numbers<[1], [0], [0], [1], [0, 0, 1, 1], [], []>} : vector<120x14xbf16>, vector<14x32xbf16>, vector<120x32xf32> -> vector<120x32xf32>
    %60 = arith.addf %53, %59 : vector<120x32xf32>
    %61 = arith.maximumf %40, %60 : vector<120x32xf32>
    %c0_59 = arith.constant 0 : index
    %c0_60 = arith.constant 0 : index
    %62 = vector.load %arg2[%c0_59, %c0_60] : memref<1x32xf32, #tpu.memory_space<vmem>>, vector<1x32xf32>
    %63 = vector.broadcast %62 : vector<1x32xf32> to vector<120x32xf32>
    %64 = arith.addf %61, %63 : vector<120x32xf32>
    %cst_61 = arith.constant 0.000000e+00 : f32
    %65 = vector.broadcast %cst_61 : f32 to vector<120x32xf32>
    %66 = arith.maximumf %64, %65 : vector<120x32xf32>
    %c0_62 = arith.constant 0 : index
    %c0_63 = arith.constant 0 : index
    %67 = vector.load %arg3[%c0_62, %c0_63] : memref<120x32xf32, #tpu.memory_space<vmem>>, vector<120x32xf32>
    tpu.vector_store %arg3[%c0_62, %c0_63], %66 {strides = array<i32>} : memref<120x32xf32, #tpu.memory_space<vmem>>, vector<120x32xf32>,
    return
  }
}

module attributes {stable_mosaic.version = 11 : i64} {
  func.func @_conv_pool_kernel(%arg0: memref<3x41x32xf32, #tpu.memory_space<vmem>>, %arg1: memref<2x32x64xbf16, #tpu.memory_space<vmem>>, %arg2: memref<1x64xf32, #tpu.memory_space<vmem>>, %arg3: memref<40x64xf32, #tpu.memory_space<vmem>>) attributes {dimension_semantics = [], scalar_prefetch = 0 : i64, scratch_operands = 0 : i64, tpu.core_type = #tpu.core_type<tc>} {
    %c0 = arith.constant 0 : index
    %c0_0 = arith.constant 0 : index
    %c0_1 = arith.constant 0 : index
    %0 = vector.load %arg0[%c0, %c0_0, %c0_1] : memref<3x41x32xf32, #tpu.memory_space<vmem>>, vector<1x40x32xf32>
    %1 = vector.shape_cast %0 : vector<1x40x32xf32> to vector<40x32xf32>
    %2 = arith.truncf %1 : vector<40x32xf32> to vector<40x32xbf16>
    %c0_2 = arith.constant 0 : index
    %c0_3 = arith.constant 0 : index
    %c0_4 = arith.constant 0 : index
    %3 = vector.load %arg1[%c0_2, %c0_3, %c0_4] : memref<2x32x64xbf16, #tpu.memory_space<vmem>>, vector<1x32x64xbf16>
    %4 = vector.shape_cast %3 : vector<1x32x64xbf16> to vector<32x64xbf16>
    %cst = arith.constant dense<0.000000e+00> : vector<40x64xf32>
    %5 = tpu.matmul %2, %4, %cst {dimension_numbers = #tpu.dot_dimension_numbers<[1], [0], [0], [1], [0, 0, 1, 1], [], []>} : vector<40x32xbf16>, vector<32x64xbf16>, vector<40x64xf32> -> vector<40x64xf32>
    %c1 = arith.constant 1 : index
    %c0_5 = arith.constant 0 : index
    %c0_6 = arith.constant 0 : index
    %6 = vector.load %arg0[%c1, %c0_5, %c0_6] : memref<3x41x32xf32, #tpu.memory_space<vmem>>, vector<1x40x32xf32>
    %7 = vector.shape_cast %6 : vector<1x40x32xf32> to vector<40x32xf32>
    %8 = arith.truncf %7 : vector<40x32xf32> to vector<40x32xbf16>
    %c1_7 = arith.constant 1 : index
    %c0_8 = arith.constant 0 : index
    %c0_9 = arith.constant 0 : index
    %9 = vector.load %arg1[%c1_7, %c0_8, %c0_9] : memref<2x32x64xbf16, #tpu.memory_space<vmem>>, vector<1x32x64xbf16>
    %10 = vector.shape_cast %9 : vector<1x32x64xbf16> to vector<32x64xbf16>
    %cst_10 = arith.constant dense<0.000000e+00> : vector<40x64xf32>
    %11 = tpu.matmul %8, %10, %cst_10 {dimension_numbers = #tpu.dot_dimension_numbers<[1], [0], [0], [1], [0, 0, 1, 1], [], []>} : vector<40x32xbf16>, vector<32x64xbf16>, vector<40x64xf32> -> vector<40x64xf32>
    %12 = arith.addf %5, %11 : vector<40x64xf32>
    %c1_11 = arith.constant 1 : index
    %c0_12 = arith.constant 0 : index
    %c0_13 = arith.constant 0 : index
    %13 = vector.load %arg0[%c1_11, %c0_12, %c0_13] : memref<3x41x32xf32, #tpu.memory_space<vmem>>, vector<1x40x32xf32>
    %14 = vector.shape_cast %13 : vector<1x40x32xf32> to vector<40x32xf32>
    %15 = arith.truncf %14 : vector<40x32xf32> to vector<40x32xbf16>
    %c0_14 = arith.constant 0 : index
    %c0_15 = arith.constant 0 : index
    %c0_16 = arith.constant 0 : index
    %16 = vector.load %arg1[%c0_14, %c0_15, %c0_16] : memref<2x32x64xbf16, #tpu.memory_space<vmem>>, vector<1x32x64xbf16>
    %17 = vector.shape_cast %16 : vector<1x32x64xbf16> to vector<32x64xbf16>
    %cst_17 = arith.constant dense<0.000000e+00> : vector<40x64xf32>
    %18 = tpu.matmul %15, %17, %cst_17 {dimension_numbers = #tpu.dot_dimension_numbers<[1], [0], [0], [1], [0, 0, 1, 1], [], []>} : vector<40x32xbf16>, vector<32x64xbf16>, vector<40x64xf32> -> vector<40x64xf32>
    %c2 = arith.constant 2 : index
    %c0_18 = arith.constant 0 : index
    %c0_19 = arith.constant 0 : index
    %19 = vector.load %arg0[%c2, %c0_18, %c0_19] : memref<3x41x32xf32, #tpu.memory_space<vmem>>, vector<1x40x32xf32>
    %20 = vector.shape_cast %19 : vector<1x40x32xf32> to vector<40x32xf32>
    %21 = arith.truncf %20 : vector<40x32xf32> to vector<40x32xbf16>
    %c1_20 = arith.constant 1 : index
    %c0_21 = arith.constant 0 : index
    %c0_22 = arith.constant 0 : index
    %22 = vector.load %arg1[%c1_20, %c0_21, %c0_22] : memref<2x32x64xbf16, #tpu.memory_space<vmem>>, vector<1x32x64xbf16>
    %23 = vector.shape_cast %22 : vector<1x32x64xbf16> to vector<32x64xbf16>
    %cst_23 = arith.constant dense<0.000000e+00> : vector<40x64xf32>
    %24 = tpu.matmul %21, %23, %cst_23 {dimension_numbers = #tpu.dot_dimension_numbers<[1], [0], [0], [1], [0, 0, 1, 1], [], []>} : vector<40x32xbf16>, vector<32x64xbf16>, vector<40x64xf32> -> vector<40x64xf32>
    %25 = arith.addf %18, %24 : vector<40x64xf32>
    %26 = arith.maximumf %12, %25 : vector<40x64xf32>
    %c2_24 = arith.constant 2 : index
    %c0_25 = arith.constant 0 : index
    %c0_26 = arith.constant 0 : index
    %27 = vector.load %arg0[%c2_24, %c0_25, %c0_26] : memref<3x41x32xf32, #tpu.memory_space<vmem>>, vector<1x40x32xf32>
    %28 = vector.shape_cast %27 : vector<1x40x32xf32> to vector<40x32xf32>
    %29 = arith.truncf %28 : vector<40x32xf32> to vector<40x32xbf16>
    %c0_27 = arith.constant 0 : index
    %c0_28 = arith.constant 0 : index
    %c0_29 = arith.constant 0 : index
    %30 = vector.load %arg1[%c0_27, %c0_28, %c0_29] : memref<2x32x64xbf16, #tpu.memory_space<vmem>>, vector<1x32x64xbf16>
    %31 = vector.shape_cast %30 : vector<1x32x64xbf16> to vector<32x64xbf16>
    %cst_30 = arith.constant dense<0.000000e+00> : vector<40x64xf32>
    %32 = tpu.matmul %29, %31, %cst_30 {dimension_numbers = #tpu.dot_dimension_numbers<[1], [0], [0], [1], [0, 0, 1, 1], [], []>} : vector<40x32xbf16>, vector<32x64xbf16>, vector<40x64xf32> -> vector<40x64xf32>
    %c0_31 = arith.constant 0 : index
    %c1_32 = arith.constant 1 : index
    %c0_33 = arith.constant 0 : index
    %33 = vector.load %arg0[%c0_31, %c1_32, %c0_33] : memref<3x41x32xf32, #tpu.memory_space<vmem>>, vector<1x40x32xf32>
    %34 = vector.shape_cast %33 : vector<1x40x32xf32> to vector<40x32xf32>
    %35 = arith.truncf %34 : vector<40x32xf32> to vector<40x32xbf16>
    %c1_34 = arith.constant 1 : index
    %c0_35 = arith.constant 0 : index
    %c0_36 = arith.constant 0 : index
    %36 = vector.load %arg1[%c1_34, %c0_35, %c0_36] : memref<2x32x64xbf16, #tpu.memory_space<vmem>>, vector<1x32x64xbf16>
    %37 = vector.shape_cast %36 : vector<1x32x64xbf16> to vector<32x64xbf16>
    %cst_37 = arith.constant dense<0.000000e+00> : vector<40x64xf32>
    %38 = tpu.matmul %35, %37, %cst_37 {dimension_numbers = #tpu.dot_dimension_numbers<[1], [0], [0], [1], [0, 0, 1, 1], [], []>} : vector<40x32xbf16>, vector<32x64xbf16>, vector<40x64xf32> -> vector<40x64xf32>
    %39 = arith.addf %32, %38 : vector<40x64xf32>
    %40 = arith.maximumf %26, %39 : vector<40x64xf32>
    %c0_38 = arith.constant 0 : index
    %c0_39 = arith.constant 0 : index
    %41 = vector.load %arg2[%c0_38, %c0_39] : memref<1x64xf32, #tpu.memory_space<vmem>>, vector<1x64xf32>
    %42 = vector.broadcast %41 : vector<1x64xf32> to vector<40x64xf32>
    %43 = arith.addf %40, %42 : vector<40x64xf32>
    %cst_40 = arith.constant 0.000000e+00 : f32
    %44 = vector.broadcast %cst_40 : f32 to vector<40x64xf32>
    %45 = arith.maximumf %43, %44 : vector<40x64xf32>
    %c0_41 = arith.constant 0 : index
    %c0_42 = arith.constant 0 : index
    %46 = vector.load %arg3[%c0_41, %c0_42] : memref<40x64xf32, #tpu.memory_space<vmem>>, vector<40x64xf32>
    tpu.vector_store %arg3[%c0_41, %c0_42], %45 {strides = array<i32>} : memref<40x64xf32, #tpu.memory_space<vmem>>, vector<40x64xf32>,
    return
  }
}

module attributes {stable_mosaic.version = 11 : i64} {
  func.func @_conv_pool_kernel(%arg0: memref<2x25x64xf32, #tpu.memory_space<vmem>>, %arg1: memref<3x64x64xbf16, #tpu.memory_space<vmem>>, %arg2: memref<1x64xf32, #tpu.memory_space<vmem>>, %arg3: memref<24x64xf32, #tpu.memory_space<vmem>>) attributes {dimension_semantics = [], scalar_prefetch = 0 : i64, scratch_operands = 0 : i64, tpu.core_type = #tpu.core_type<tc>} {
    %c0 = arith.constant 0 : index
    %c0_0 = arith.constant 0 : index
    %c0_1 = arith.constant 0 : index
    %0 = vector.load %arg0[%c0, %c0_0, %c0_1] : memref<2x25x64xf32, #tpu.memory_space<vmem>>, vector<1x24x64xf32>
    %1 = vector.shape_cast %0 : vector<1x24x64xf32> to vector<24x64xf32>
    %2 = arith.truncf %1 : vector<24x64xf32> to vector<24x64xbf16>
    %c0_2 = arith.constant 0 : index
    %c0_3 = arith.constant 0 : index
    %c0_4 = arith.constant 0 : index
    %3 = vector.load %arg1[%c0_2, %c0_3, %c0_4] : memref<3x64x64xbf16, #tpu.memory_space<vmem>>, vector<1x64x64xbf16>
    %4 = vector.shape_cast %3 : vector<1x64x64xbf16> to vector<64x64xbf16>
    %cst = arith.constant dense<0.000000e+00> : vector<24x64xf32>
    %5 = tpu.matmul %2, %4, %cst {dimension_numbers = #tpu.dot_dimension_numbers<[1], [0], [0], [1], [0, 0, 1, 1], [], []>} : vector<24x64xbf16>, vector<64x64xbf16>, vector<24x64xf32> -> vector<24x64xf32>
    %c1 = arith.constant 1 : index
    %c0_5 = arith.constant 0 : index
    %c0_6 = arith.constant 0 : index
    %6 = vector.load %arg0[%c1, %c0_5, %c0_6] : memref<2x25x64xf32, #tpu.memory_space<vmem>>, vector<1x24x64xf32>
    %7 = vector.shape_cast %6 : vector<1x24x64xf32> to vector<24x64xf32>
    %8 = arith.truncf %7 : vector<24x64xf32> to vector<24x64xbf16>
    %c1_7 = arith.constant 1 : index
    %c0_8 = arith.constant 0 : index
    %c0_9 = arith.constant 0 : index
    %9 = vector.load %arg1[%c1_7, %c0_8, %c0_9] : memref<3x64x64xbf16, #tpu.memory_space<vmem>>, vector<1x64x64xbf16>
    %10 = vector.shape_cast %9 : vector<1x64x64xbf16> to vector<64x64xbf16>
    %cst_10 = arith.constant dense<0.000000e+00> : vector<24x64xf32>
    %11 = tpu.matmul %8, %10, %cst_10 {dimension_numbers = #tpu.dot_dimension_numbers<[1], [0], [0], [1], [0, 0, 1, 1], [], []>} : vector<24x64xbf16>, vector<64x64xbf16>, vector<24x64xf32> -> vector<24x64xf32>
    %12 = arith.addf %5, %11 : vector<24x64xf32>
    %c0_11 = arith.constant 0 : index
    %c1_12 = arith.constant 1 : index
    %c0_13 = arith.constant 0 : index
    %13 = vector.load %arg0[%c0_11, %c1_12, %c0_13] : memref<2x25x64xf32, #tpu.memory_space<vmem>>, vector<1x24x64xf32>
    %14 = vector.shape_cast %13 : vector<1x24x64xf32> to vector<24x64xf32>
    %15 = arith.truncf %14 : vector<24x64xf32> to vector<24x64xbf16>
    %c2 = arith.constant 2 : index
    %c0_14 = arith.constant 0 : index
    %c0_15 = arith.constant 0 : index
    %16 = vector.load %arg1[%c2, %c0_14, %c0_15] : memref<3x64x64xbf16, #tpu.memory_space<vmem>>, vector<1x64x64xbf16>
    %17 = vector.shape_cast %16 : vector<1x64x64xbf16> to vector<64x64xbf16>
    %cst_16 = arith.constant dense<0.000000e+00> : vector<24x64xf32>
    %18 = tpu.matmul %15, %17, %cst_16 {dimension_numbers = #tpu.dot_dimension_numbers<[1], [0], [0], [1], [0, 0, 1, 1], [], []>} : vector<24x64xbf16>, vector<64x64xbf16>, vector<24x64xf32> -> vector<24x64xf32>
    %19 = arith.addf %12, %18 : vector<24x64xf32>
    %c1_17 = arith.constant 1 : index
    %c0_18 = arith.constant 0 : index
    %c0_19 = arith.constant 0 : index
    %20 = vector.load %arg0[%c1_17, %c0_18, %c0_19] : memref<2x25x64xf32, #tpu.memory_space<vmem>>, vector<1x24x64xf32>
    %21 = vector.shape_cast %20 : vector<1x24x64xf32> to vector<24x64xf32>
    %22 = arith.truncf %21 : vector<24x64xf32> to vector<24x64xbf16>
    %c0_20 = arith.constant 0 : index
    %c0_21 = arith.constant 0 : index
    %c0_22 = arith.constant 0 : index
    %23 = vector.load %arg1[%c0_20, %c0_21, %c0_22] : memref<3x64x64xbf16, #tpu.memory_space<vmem>>, vector<1x64x64xbf16>
    %24 = vector.shape_cast %23 : vector<1x64x64xbf16> to vector<64x64xbf16>
    %cst_23 = arith.constant dense<0.000000e+00> : vector<24x64xf32>
    %25 = tpu.matmul %22, %24, %cst_23 {dimension_numbers = #tpu.dot_dimension_numbers<[1], [0], [0], [1], [0, 0, 1, 1], [], []>} : vector<24x64xbf16>, vector<64x64xbf16>, vector<24x64xf32> -> vector<24x64xf32>
    %c0_24 = arith.constant 0 : index
    %c1_25 = arith.constant 1 : index
    %c0_26 = arith.constant 0 : index
    %26 = vector.load %arg0[%c0_24, %c1_25, %c0_26] : memref<2x25x64xf32, #tpu.memory_space<vmem>>, vector<1x24x64xf32>
    %27 = vector.shape_cast %26 : vector<1x24x64xf32> to vector<24x64xf32>
    %28 = arith.truncf %27 : vector<24x64xf32> to vector<24x64xbf16>
    %c1_27 = arith.constant 1 : index
    %c0_28 = arith.constant 0 : index
    %c0_29 = arith.constant 0 : index
    %29 = vector.load %arg1[%c1_27, %c0_28, %c0_29] : memref<3x64x64xbf16, #tpu.memory_space<vmem>>, vector<1x64x64xbf16>
    %30 = vector.shape_cast %29 : vector<1x64x64xbf16> to vector<64x64xbf16>
    %cst_30 = arith.constant dense<0.000000e+00> : vector<24x64xf32>
    %31 = tpu.matmul %28, %30, %cst_30 {dimension_numbers = #tpu.dot_dimension_numbers<[1], [0], [0], [1], [0, 0, 1, 1], [], []>} : vector<24x64xbf16>, vector<64x64xbf16>, vector<24x64xf32> -> vector<24x64xf32>
    %32 = arith.addf %25, %31 : vector<24x64xf32>
    %c1_31 = arith.constant 1 : index
    %c1_32 = arith.constant 1 : index
    %c0_33 = arith.constant 0 : index
    %33 = vector.load %arg0[%c1_31, %c1_32, %c0_33] : memref<2x25x64xf32, #tpu.memory_space<vmem>>, vector<1x24x64xf32>
    %34 = vector.shape_cast %33 : vector<1x24x64xf32> to vector<24x64xf32>
    %35 = arith.truncf %34 : vector<24x64xf32> to vector<24x64xbf16>
    %c2_34 = arith.constant 2 : index
    %c0_35 = arith.constant 0 : index
    %c0_36 = arith.constant 0 : index
    %36 = vector.load %arg1[%c2_34, %c0_35, %c0_36] : memref<3x64x64xbf16, #tpu.memory_space<vmem>>, vector<1x64x64xbf16>
    %37 = vector.shape_cast %36 : vector<1x64x64xbf16> to vector<64x64xbf16>
    %cst_37 = arith.constant dense<0.000000e+00> : vector<24x64xf32>
    %38 = tpu.matmul %35, %37, %cst_37 {dimension_numbers = #tpu.dot_dimension_numbers<[1], [0], [0], [1], [0, 0, 1, 1], [], []>} : vector<24x64xbf16>, vector<64x64xbf16>, vector<24x64xf32> -> vector<24x64xf32>
    %39 = arith.addf %32, %38 : vector<24x64xf32>
    %40 = arith.maximumf %19, %39 : vector<24x64xf32>
    %c0_38 = arith.constant 0 : index
    %c0_39 = arith.constant 0 : index
    %41 = vector.load %arg2[%c0_38, %c0_39] : memref<1x64xf32, #tpu.memory_space<vmem>>, vector<1x64xf32>
    %42 = vector.broadcast %41 : vector<1x64xf32> to vector<24x64xf32>
    %43 = arith.addf %40, %42 : vector<24x64xf32>
    %cst_40 = arith.constant 0.000000e+00 : f32
    %44 = vector.broadcast %cst_40 : f32 to vector<24x64xf32>
    %45 = arith.maximumf %43, %44 : vector<24x64xf32>
    %c0_41 = arith.constant 0 : index
    %c0_42 = arith.constant 0 : index
    %46 = vector.load %arg3[%c0_41, %c0_42] : memref<24x64xf32, #tpu.memory_space<vmem>>, vector<24x64xf32>
    tpu.vector_store %arg3[%c0_41, %c0_42], %45 {strides = array<i32>} : memref<24x64xf32, #tpu.memory_space<vmem>>, vector<24x64xf32>,
    return
  }
}

module attributes {stable_mosaic.version = 11 : i64} {
  func.func @_conv_pool_kernel(%arg0: memref<2x17x64xf32, #tpu.memory_space<vmem>>, %arg1: memref<3x64x64xbf16, #tpu.memory_space<vmem>>, %arg2: memref<1x64xf32, #tpu.memory_space<vmem>>, %arg3: memref<16x64xf32, #tpu.memory_space<vmem>>) attributes {dimension_semantics = [], scalar_prefetch = 0 : i64, scratch_operands = 0 : i64, tpu.core_type = #tpu.core_type<tc>} {
    %c0 = arith.constant 0 : index
    %c0_0 = arith.constant 0 : index
    %c0_1 = arith.constant 0 : index
    %0 = vector.load %arg0[%c0, %c0_0, %c0_1] : memref<2x17x64xf32, #tpu.memory_space<vmem>>, vector<1x16x64xf32>
    %1 = vector.shape_cast %0 : vector<1x16x64xf32> to vector<16x64xf32>
    %2 = arith.truncf %1 : vector<16x64xf32> to vector<16x64xbf16>
    %c0_2 = arith.constant 0 : index
    %c0_3 = arith.constant 0 : index
    %c0_4 = arith.constant 0 : index
    %3 = vector.load %arg1[%c0_2, %c0_3, %c0_4] : memref<3x64x64xbf16, #tpu.memory_space<vmem>>, vector<1x64x64xbf16>
    %4 = vector.shape_cast %3 : vector<1x64x64xbf16> to vector<64x64xbf16>
    %cst = arith.constant dense<0.000000e+00> : vector<16x64xf32>
    %5 = tpu.matmul %2, %4, %cst {dimension_numbers = #tpu.dot_dimension_numbers<[1], [0], [0], [1], [0, 0, 1, 1], [], []>} : vector<16x64xbf16>, vector<64x64xbf16>, vector<16x64xf32> -> vector<16x64xf32>
    %c1 = arith.constant 1 : index
    %c0_5 = arith.constant 0 : index
    %c0_6 = arith.constant 0 : index
    %6 = vector.load %arg0[%c1, %c0_5, %c0_6] : memref<2x17x64xf32, #tpu.memory_space<vmem>>, vector<1x16x64xf32>
    %7 = vector.shape_cast %6 : vector<1x16x64xf32> to vector<16x64xf32>
    %8 = arith.truncf %7 : vector<16x64xf32> to vector<16x64xbf16>
    %c1_7 = arith.constant 1 : index
    %c0_8 = arith.constant 0 : index
    %c0_9 = arith.constant 0 : index
    %9 = vector.load %arg1[%c1_7, %c0_8, %c0_9] : memref<3x64x64xbf16, #tpu.memory_space<vmem>>, vector<1x64x64xbf16>
    %10 = vector.shape_cast %9 : vector<1x64x64xbf16> to vector<64x64xbf16>
    %cst_10 = arith.constant dense<0.000000e+00> : vector<16x64xf32>
    %11 = tpu.matmul %8, %10, %cst_10 {dimension_numbers = #tpu.dot_dimension_numbers<[1], [0], [0], [1], [0, 0, 1, 1], [], []>} : vector<16x64xbf16>, vector<64x64xbf16>, vector<16x64xf32> -> vector<16x64xf32>
    %12 = arith.addf %5, %11 : vector<16x64xf32>
    %c0_11 = arith.constant 0 : index
    %c1_12 = arith.constant 1 : index
    %c0_13 = arith.constant 0 : index
    %13 = vector.load %arg0[%c0_11, %c1_12, %c0_13] : memref<2x17x64xf32, #tpu.memory_space<vmem>>, vector<1x16x64xf32>
    %14 = vector.shape_cast %13 : vector<1x16x64xf32> to vector<16x64xf32>
    %15 = arith.truncf %14 : vector<16x64xf32> to vector<16x64xbf16>
    %c2 = arith.constant 2 : index
    %c0_14 = arith.constant 0 : index
    %c0_15 = arith.constant 0 : index
    %16 = vector.load %arg1[%c2, %c0_14, %c0_15] : memref<3x64x64xbf16, #tpu.memory_space<vmem>>, vector<1x64x64xbf16>
    %17 = vector.shape_cast %16 : vector<1x64x64xbf16> to vector<64x64xbf16>
    %cst_16 = arith.constant dense<0.000000e+00> : vector<16x64xf32>
    %18 = tpu.matmul %15, %17, %cst_16 {dimension_numbers = #tpu.dot_dimension_numbers<[1], [0], [0], [1], [0, 0, 1, 1], [], []>} : vector<16x64xbf16>, vector<64x64xbf16>, vector<16x64xf32> -> vector<16x64xf32>
    %19 = arith.addf %12, %18 : vector<16x64xf32>
    %c1_17 = arith.constant 1 : index
    %c0_18 = arith.constant 0 : index
    %c0_19 = arith.constant 0 : index
    %20 = vector.load %arg0[%c1_17, %c0_18, %c0_19] : memref<2x17x64xf32, #tpu.memory_space<vmem>>, vector<1x16x64xf32>
    %21 = vector.shape_cast %20 : vector<1x16x64xf32> to vector<16x64xf32>
    %22 = arith.truncf %21 : vector<16x64xf32> to vector<16x64xbf16>
    %c0_20 = arith.constant 0 : index
    %c0_21 = arith.constant 0 : index
    %c0_22 = arith.constant 0 : index
    %23 = vector.load %arg1[%c0_20, %c0_21, %c0_22] : memref<3x64x64xbf16, #tpu.memory_space<vmem>>, vector<1x64x64xbf16>
    %24 = vector.shape_cast %23 : vector<1x64x64xbf16> to vector<64x64xbf16>
    %cst_23 = arith.constant dense<0.000000e+00> : vector<16x64xf32>
    %25 = tpu.matmul %22, %24, %cst_23 {dimension_numbers = #tpu.dot_dimension_numbers<[1], [0], [0], [1], [0, 0, 1, 1], [], []>} : vector<16x64xbf16>, vector<64x64xbf16>, vector<16x64xf32> -> vector<16x64xf32>
    %c0_24 = arith.constant 0 : index
    %c1_25 = arith.constant 1 : index
    %c0_26 = arith.constant 0 : index
    %26 = vector.load %arg0[%c0_24, %c1_25, %c0_26] : memref<2x17x64xf32, #tpu.memory_space<vmem>>, vector<1x16x64xf32>
    %27 = vector.shape_cast %26 : vector<1x16x64xf32> to vector<16x64xf32>
    %28 = arith.truncf %27 : vector<16x64xf32> to vector<16x64xbf16>
    %c1_27 = arith.constant 1 : index
    %c0_28 = arith.constant 0 : index
    %c0_29 = arith.constant 0 : index
    %29 = vector.load %arg1[%c1_27, %c0_28, %c0_29] : memref<3x64x64xbf16, #tpu.memory_space<vmem>>, vector<1x64x64xbf16>
    %30 = vector.shape_cast %29 : vector<1x64x64xbf16> to vector<64x64xbf16>
    %cst_30 = arith.constant dense<0.000000e+00> : vector<16x64xf32>
    %31 = tpu.matmul %28, %30, %cst_30 {dimension_numbers = #tpu.dot_dimension_numbers<[1], [0], [0], [1], [0, 0, 1, 1], [], []>} : vector<16x64xbf16>, vector<64x64xbf16>, vector<16x64xf32> -> vector<16x64xf32>
    %32 = arith.addf %25, %31 : vector<16x64xf32>
    %c1_31 = arith.constant 1 : index
    %c1_32 = arith.constant 1 : index
    %c0_33 = arith.constant 0 : index
    %33 = vector.load %arg0[%c1_31, %c1_32, %c0_33] : memref<2x17x64xf32, #tpu.memory_space<vmem>>, vector<1x16x64xf32>
    %34 = vector.shape_cast %33 : vector<1x16x64xf32> to vector<16x64xf32>
    %35 = arith.truncf %34 : vector<16x64xf32> to vector<16x64xbf16>
    %c2_34 = arith.constant 2 : index
    %c0_35 = arith.constant 0 : index
    %c0_36 = arith.constant 0 : index
    %36 = vector.load %arg1[%c2_34, %c0_35, %c0_36] : memref<3x64x64xbf16, #tpu.memory_space<vmem>>, vector<1x64x64xbf16>
    %37 = vector.shape_cast %36 : vector<1x64x64xbf16> to vector<64x64xbf16>
    %cst_37 = arith.constant dense<0.000000e+00> : vector<16x64xf32>
    %38 = tpu.matmul %35, %37, %cst_37 {dimension_numbers = #tpu.dot_dimension_numbers<[1], [0], [0], [1], [0, 0, 1, 1], [], []>} : vector<16x64xbf16>, vector<64x64xbf16>, vector<16x64xf32> -> vector<16x64xf32>
    %39 = arith.addf %32, %38 : vector<16x64xf32>
    %40 = arith.maximumf %19, %39 : vector<16x64xf32>
    %c0_38 = arith.constant 0 : index
    %c0_39 = arith.constant 0 : index
    %41 = vector.load %arg2[%c0_38, %c0_39] : memref<1x64xf32, #tpu.memory_space<vmem>>, vector<1x64xf32>
    %42 = vector.broadcast %41 : vector<1x64xf32> to vector<16x64xf32>
    %43 = arith.addf %40, %42 : vector<16x64xf32>
    %cst_40 = arith.constant 0.000000e+00 : f32
    %44 = vector.broadcast %cst_40 : f32 to vector<16x64xf32>
    %45 = arith.maximumf %43, %44 : vector<16x64xf32>
    %c0_41 = arith.constant 0 : index
    %c0_42 = arith.constant 0 : index
    %46 = vector.load %arg3[%c0_41, %c0_42] : memref<16x64xf32, #tpu.memory_space<vmem>>, vector<16x64xf32>
    tpu.vector_store %arg3[%c0_41, %c0_42], %45 {strides = array<i32>} : memref<16x64xf32, #tpu.memory_space<vmem>>, vector<16x64xf32>,
    return
  }
}

module attributes {stable_mosaic.version = 11 : i64} {
  func.func @_head_kernel(%arg0: memref<4x128xf32, #tpu.memory_space<vmem>>, %arg1: memref<128x100xbf16, #tpu.memory_space<vmem>>, %arg2: memref<1x100xf32, #tpu.memory_space<vmem>>, %arg3: memref<100x100xbf16, #tpu.memory_space<vmem>>, %arg4: memref<1x100xf32, #tpu.memory_space<vmem>>, %arg5: memref<1x100xf32, #tpu.memory_space<vmem>>, %arg6: memref<1x1xf32, #tpu.memory_space<vmem>>, %arg7: memref<2x1xf32, #tpu.memory_space<vmem>>) attributes {dimension_semantics = [], scalar_prefetch = 0 : i64, scratch_operands = 0 : i64, tpu.core_type = #tpu.core_type<tc>} {
    %c0 = arith.constant 0 : index
    %c0_0 = arith.constant 0 : index
    %0 = vector.load %arg0[%c0, %c0_0] : memref<4x128xf32, #tpu.memory_space<vmem>>, vector<4x128xf32>
    %1 = arith.truncf %0 : vector<4x128xf32> to vector<4x128xbf16>
    %c0_1 = arith.constant 0 : index
    %c0_2 = arith.constant 0 : index
    %2 = vector.load %arg1[%c0_1, %c0_2] : memref<128x100xbf16, #tpu.memory_space<vmem>>, vector<128x100xbf16>
    %cst = arith.constant dense<0.000000e+00> : vector<4x100xf32>
    %3 = tpu.matmul %1, %2, %cst {dimension_numbers = #tpu.dot_dimension_numbers<[1], [0], [0], [1], [0, 0, 1, 1], [], []>} : vector<4x128xbf16>, vector<128x100xbf16>, vector<4x100xf32> -> vector<4x100xf32>
    %c0_3 = arith.constant 0 : index
    %c0_4 = arith.constant 0 : index
    %4 = vector.load %arg2[%c0_3, %c0_4] : memref<1x100xf32, #tpu.memory_space<vmem>>, vector<1x100xf32>
    %5 = vector.broadcast %4 : vector<1x100xf32> to vector<4x100xf32>
    %6 = arith.addf %3, %5 : vector<4x100xf32>
    %7 = arith.negf %6 : vector<4x100xf32>
    %8 = math.exp %7 : vector<4x100xf32>
    %cst_5 = arith.constant 1.000000e+00 : f32
    %9 = vector.broadcast %cst_5 : f32 to vector<4x100xf32>
    %10 = arith.addf %9, %8 : vector<4x100xf32>
    %11 = arith.divf %9, %10 : vector<4x100xf32>
    %12 = arith.truncf %11 : vector<4x100xf32> to vector<4x100xbf16>
    %c0_6 = arith.constant 0 : index
    %c0_7 = arith.constant 0 : index
    %13 = vector.load %arg3[%c0_6, %c0_7] : memref<100x100xbf16, #tpu.memory_space<vmem>>, vector<100x100xbf16>
    %cst_8 = arith.constant dense<0.000000e+00> : vector<4x100xf32>
    %14 = tpu.matmul %12, %13, %cst_8 {dimension_numbers = #tpu.dot_dimension_numbers<[1], [0], [0], [1], [0, 0, 1, 1], [], []>} : vector<4x100xbf16>, vector<100x100xbf16>, vector<4x100xf32> -> vector<4x100xf32>
    %c0_9 = arith.constant 0 : index
    %c0_10 = arith.constant 0 : index
    %15 = vector.load %arg4[%c0_9, %c0_10] : memref<1x100xf32, #tpu.memory_space<vmem>>, vector<1x100xf32>
    %16 = vector.broadcast %15 : vector<1x100xf32> to vector<4x100xf32>
    %17 = arith.addf %14, %16 : vector<4x100xf32>
    %18 = arith.negf %17 : vector<4x100xf32>
    %19 = math.exp %18 : vector<4x100xf32>
    %cst_11 = arith.constant 1.000000e+00 : f32
    %20 = vector.broadcast %cst_11 : f32 to vector<4x100xf32>
    %21 = arith.addf %20, %19 : vector<4x100xf32>
    %22 = arith.divf %20, %21 : vector<4x100xf32>
    %23 = vector.extract_strided_slice %22 {offsets = [0, 0], sizes = [2, 100], strides = [1, 1]} : vector<4x100xf32> to vector<2x100xf32>
    %24 = vector.extract_strided_slice %22 {offsets = [2, 0], sizes = [2, 100], strides = [1, 1]} : vector<4x100xf32> to vector<2x100xf32>
    %25 = arith.subf %23, %24 : vector<2x100xf32>
    %26 = math.absf %25 : vector<2x100xf32>
    %c0_12 = arith.constant 0 : index
    %c0_13 = arith.constant 0 : index
    %27 = vector.load %arg5[%c0_12, %c0_13] : memref<1x100xf32, #tpu.memory_space<vmem>>, vector<1x100xf32>
    %28 = vector.broadcast %27 : vector<1x100xf32> to vector<2x100xf32>
    %29 = arith.mulf %26, %28 : vector<2x100xf32>
    %cst_14 = arith.constant dense<0.000000e+00> : vector<2xf32>
    %30 = vector.multi_reduction <add>, %29, %cst_14 [1] : vector<2x100xf32> to vector<2xf32>
    %31 = vector.shape_cast %30 : vector<2xf32> to vector<2x1xf32>
    %c0_15 = arith.constant 0 : index
    %c0_16 = arith.constant 0 : index
    %32 = vector.load %arg6[%c0_15, %c0_16] : memref<1x1xf32, #tpu.memory_space<vmem>>, vector<1x1xf32>
    %33 = vector.broadcast %32 : vector<1x1xf32> to vector<2x1xf32>
    %34 = arith.addf %31, %33 : vector<2x1xf32>
    %35 = arith.negf %34 : vector<2x1xf32>
    %36 = math.exp %35 : vector<2x1xf32>
    %cst_17 = arith.constant 1.000000e+00 : f32
    %37 = vector.broadcast %cst_17 : f32 to vector<2x1xf32>
    %38 = arith.addf %37, %36 : vector<2x1xf32>
    %39 = arith.divf %37, %38 : vector<2x1xf32>
    %c0_18 = arith.constant 0 : index
    %c0_19 = arith.constant 0 : index
    %40 = vector.load %arg7[%c0_18, %c0_19] : memref<2x1xf32, #tpu.memory_space<vmem>>, vector<2x1xf32>
    tpu.vector_store %arg7[%c0_18, %c0_19], %39 {strides = array<i32>} : memref<2x1xf32, #tpu.memory_space<vmem>>, vector<2x1xf32>,
    return
  }
}

</mosaic_0001>

<bundles_post_ra>
// kernel: siamese_forward.8
= control target key start
LH: loop header
LB: loop body
LE: loop exit
PB: predicated region body
PF: predicated region fallthrough
CT: control target
= control target key end

     0   :  { %v690_v0 = vmov 0.0   ;;  %vm691_vm0 = vmmov 0   ;;  %vm53_vm1 = vcmask 261120   ;;  %vm482_vm2 = vcmask 523264   ;;  %s882_s1 = inlined_call_operand.vmem [shape: bf16[2,32,64], index: 1, kind: input, shape index: {}]   ;;  %s883_s0 = inlined_call_operand.vmem [shape: f32[3,41,32], index: 0, kind: input, shape index: {}]   ;;  %s884_s2 = inlined_call_operand.vmem [shape: f32[1,64], index: 2, kind: input, shape index: {}]   ;;  %s885_s3 = inlined_call_operand.vmem [shape: f32[40,64], index: 3, kind: output, shape index: {}]  }
   0x1   :  { %559 = vmatprep.subr.bf16.mxu1 %v690_v0  ;;  %575 = vmatprep.subr.bf16.mxu0 %v690_v0  ;;  %v686_v1 = vld [vmem:[%s882_s1 + $0x10] sm:$0xff]   ;;  %v687_v2 = vld [vmem:[%s882_s1] sm:$0xff]   ;;  %v688_v3 = vld [vmem:[%s882_s1 + $0x18] sm:$0xff]  }
   0x2   :  { %563 = vmatprep.mubr.msk.bf16.mxu1 %vm691_vm0, %v690_v0  ;;  %579 = vmatprep.mubr.msk.bf16.mxu0 %vm691_vm0, %v690_v0  ;;  %v731_v4 = vld [vmem:[%s882_s1 + $0x8] sm:$0xff]   ;;  %v492_v5 = vld [vmem:[%s883_s0 + $0x30] sm:$0xff]  ;;  %v493_v6 = vld [vmem:[%s883_s0 + $0x38] sm:$0xff] }
   0x3   :  { %560 = vmatpush3.bf16.msra.mxu1 %v686_v1  ;;  %576 = vmatpush3.bf16.msra.mxu0 %v687_v2  ;;  %v15_v7 = vld [vmem:[%s883_s0] sm:$0xff]  ;;  %v743_v8 = vpack.c.bf16 %v493_v6, %v492_v5  ;;  %v16_v9 = vld [vmem:[%s883_s0 + $0x8] sm:$0xff]  ;;  %v17_v13 = vld [vmem:[%s883_s0 + $0x10] sm:$0xff] }
   0x4   :  { %561 = vmatprep.subr.bf16.mxu1 %v690_v0  ;;  %577 = vmatprep.subr.bf16.mxu0 %v690_v0  ;;  %v20_v10 = vpack.c.bf16 %v16_v9, %v15_v7  ;;  %v494_v11 = vld [vmem:[%s883_s0 + $0x40] sm:$0xff]  ;;  %v495_v12 = vld [vmem:[%s883_s0 + $0x48] sm:$0xff]  ;;  %v18_v14 = vld [vmem:[%s883_s0 + $0x18] sm:$0xff] }
   0x5   :  { %v34_v15 = vpack.c.bf16 %v495_v12, %v494_v11  ;;  %v21_v16 = vpack.c.bf16 %v18_v14, %v17_v13  ;;  %v496_v17 = vld [vmem:[%s883_s0 + $0x50] sm:$0xff]  ;;  %v19_v18 = vld [vmem:[%s883_s0 + $0x20] sm:$0xff]  ;;  %v512_v22 = vld [vmem:[%s883_s0 + $0x68] sm:$0xff] }
   0x6   :  { %v35_v19 = vpack.c.bf16 %v496_v17, %v496_v17  ;;  %v22_v20 = vpack.c.bf16 %v19_v18, %v19_v18  ;;  %v511_v21 = vld [vmem:[%s883_s0 + $0x60] sm:$0xff]  ;;  %v332_v24 = vld [vmem:[%s883_s0 + $0x9] sm:$0xff]  ;;  %v514_v28 = vld [vmem:[%s883_s0 + $0x78] sm:$0xff] }
   0x7   :  { %562 = vmatpush3.bf16.msra.mxu1 %v688_v3  ;;  %578 = vmatpush3.bf16.msra.mxu0 %v731_v4  ;;  %v331_v23 = vld [vmem:[%s883_s0 + $0x1] sm:$0xff]  ;;  %v202_v25 = vpack.c.bf16 %v512_v22, %v511_v21  ;;  %v513_v27 = vld [vmem:[%s883_s0 + $0x70] sm:$0xff]  ;;  %v334_v30 = vld [vmem:[%s883_s0 + $0x19] sm:$0xff] }
   0x8   :  { %591 = vmatprep.subr.bf16.mxu1 %v690_v0  ;;  %623 = vmatprep.subr.bf16.mxu0 %v690_v0  ;;  %v336_v26 = vpack.c.bf16 %v332_v24, %v331_v23  ;;  %v333_v29 = vld [vmem:[%s883_s0 + $0x11] sm:$0xff]  ;;  %v203_v31 = vpack.c.bf16 %v514_v28, %v513_v27  ;;  %v515_v33 = vld [vmem:[%s883_s0 + $0x80] sm:$0xff] }
   0x9   :  { %v337_v32 = vpack.c.bf16 %v334_v30, %v333_v29  ;;  %v335_v34 = vld [vmem:[%s883_s0 + $0x21] sm:$0xff]  ;;  %v204_v35 = vpack.c.bf16 %v515_v33, %v515_v33  ;;  %v528_v6 = vld [vmem:[%s884_s2] ss:$0 sm:$0xff] }
   0xa   :  { %564 = vmatmul.mubr.msk.bf16.vlgmr.msra.gmra.mrb[0].mxu1 %vm53_vm1, %v743_v8  ;;  %580 = vmatmul.mubr.msk.bf16.vlgmr.msra.gmra.mrb[0].mxu0 %vm53_vm1, %v20_v10  ;;  %v338_v36 = vpack.c.bf16 %v335_v34, %v335_v34 }
   0xb   :  { %592 = vmatpush3.bf16.msra.mxu1 %v686_v1  ;;  %624 = vmatpush3.bf16.msra.mxu0 %v686_v1 }
   0xc   :  { %567 = vmatprep.mubr.msk.bf16.mxu1 %vm691_vm0, %v690_v0  ;;  %583 = vmatprep.mubr.msk.bf16.mxu0 %vm691_vm0, %v690_v0 }
   0xd   :  { %593 = vmatprep.subr.bf16.mxu1 %v690_v0  ;;  %625 = vmatprep.subr.bf16.mxu0 %v690_v0 }
   0xf   :  { %594 = vmatpush3.bf16.msra.mxu1 %v688_v3  ;;  %626 = vmatpush3.bf16.msra.mxu0 %v688_v3 }
  0x10   :  { %607 = vmatprep.subr.bf16.mxu1 %v690_v0  ;;  %639 = vmatprep.subr.bf16.mxu0 %v690_v0 }
  0x12   :  { %568 = vmatmul.mubr.msk.bf16.gmra.mrb[4].mxu1 %vm53_vm1, %v34_v15  ;;  %584 = vmatmul.mubr.msk.bf16.gmra.mrb[4].mxu0 %vm53_vm1, %v21_v16 }
  0x13   :  { %571 = vmatprep.mubr.msk.bf16.mxu1 %vm691_vm0, %v690_v0  ;;  %587 = vmatprep.mubr.msk.bf16.mxu0 %vm691_vm0, %v690_v0 }
  0x1a   :  { %572 = vmatmul.mubr.msk.bf16.gmra.mrb[8].mxu1 %vm53_vm1, %v35_v19  ;;  %588 = vmatmul.mubr.msk.bf16.gmra.mrb[8].mxu0 %vm53_vm1, %v22_v20 }
  0x1b   :  { %595 = vmatprep.mubr.msk.bf16.mxu1 %vm691_vm0, %v690_v0  ;;  %627 = vmatprep.mubr.msk.bf16.mxu0 %vm691_vm0, %v690_v0 }
  0x22   :  { %596 = vmatmul.mubr.msk.bf16.vlgmr.msra.gmra.mrb[12].mxu1 %vm53_vm1, %v202_v25  ;;  %628 = vmatmul.mubr.msk.bf16.vlgmr.msra.gmra.mrb[12].mxu0 %vm53_vm1, %v336_v26 }
  0x23   :  { %608 = vmatpush3.bf16.msra.mxu1 %v687_v2  ;;  %640 = vmatpush3.bf16.msra.mxu0 %v687_v2 }
  0x24   :  { %599 = vmatprep.mubr.msk.bf16.mxu1 %vm691_vm0, %v690_v0  ;;  %631 = vmatprep.mubr.msk.bf16.mxu0 %vm691_vm0, %v690_v0 }
  0x25   :  { %609 = vmatprep.subr.bf16.mxu1 %v690_v0  ;;  %641 = vmatprep.subr.bf16.mxu0 %v690_v0 }
  0x27   :  { %610 = vmatpush3.bf16.msra.mxu1 %v731_v4  ;;  %642 = vmatpush3.bf16.msra.mxu0 %v731_v4 }
  0x2a   :  { %600 = vmatmul.mubr.msk.bf16.gmra.mrb[16].mxu1 %vm53_vm1, %v203_v31  ;;  %632 = vmatmul.mubr.msk.bf16.gmra.mrb[16].mxu0 %vm53_vm1, %v337_v32 }
  0x2b   :  { %603 = vmatprep.mubr.msk.bf16.mxu1 %vm691_vm0, %v690_v0  ;;  %635 = vmatprep.mubr.msk.bf16.mxu0 %vm691_vm0, %v690_v0 }
  0x32   :  { %604 = vmatmul.mubr.msk.bf16.gmra.mrb[20].mxu1 %vm53_vm1, %v204_v35  ;;  %636 = vmatmul.mubr.msk.bf16.gmra.mrb[20].mxu0 %vm53_vm1, %v338_v36 }
  0x33   :  { %611 = vmatprep.mubr.msk.bf16.mxu1 %vm691_vm0, %v690_v0  ;;  %643 = vmatprep.mubr.msk.bf16.mxu0 %vm691_vm0, %v690_v0 }
  0x3a   :  { %612 = vmatmul.mubr.msk.bf16.vlgmr.msra.gmra.mrb[12].mxu1 %vm53_vm1, %v743_v8  ;;  %644 = vmatmul.mubr.msk.bf16.vlgmr.msra.gmra.mrb[12].mxu0 %vm53_vm1, %v202_v25 }
  0x3b   :  { %615 = vmatprep.mubr.msk.bf16.mxu1 %vm691_vm0, %v690_v0  ;;  %647 = vmatprep.mubr.msk.bf16.mxu0 %vm691_vm0, %v690_v0 }
  0x42   :  { %616 = vmatmul.mubr.msk.bf16.gmra.mrb[16].mxu1 %vm53_vm1, %v34_v15  ;;  %648 = vmatmul.mubr.msk.bf16.gmra.mrb[16].mxu0 %vm53_vm1, %v203_v31 }
  0x43   :  { %619 = vmatprep.mubr.msk.bf16.mxu1 %vm691_vm0, %v690_v0  ;;  %651 = vmatprep.mubr.msk.bf16.mxu0 %vm691_vm0, %v690_v0 }
  0x4a   :  { %620 = vmatmul.mubr.msk.bf16.gmra.mrb[20].mxu1 %vm53_vm1, %v35_v19  ;;  %652 = vmatmul.mubr.msk.bf16.gmra.mrb[20].mxu0 %vm53_vm1, %v204_v35 }
  0xdd   :  { %v97_v37 = vpop.f32.mrb[0].mxu1  ;;  %v174_v38 = vpop.f32.mrb[0].mxu0 }
  0xde   :  { %v565_v39 = vpop.f32.mrb[1].mxu1  ;;  %v175_v40 = vadd.f32 %v174_v38, %v97_v37  ;;  %v581_v41 = vpop.f32.mrb[1].mxu0 }
  0xdf   :  { %v100_v42 = vpop.f32.mrb[2].mxu1  ;;  %v177_v43 = vpop.f32.mrb[2].mxu0 }
  0xe0   :  { %v566_v44 = vpop.f32.mrb[3].mxu1  ;;  %v178_v45 = vadd.f32 %v177_v43, %v100_v42  ;;  %v582_v46 = vpop.f32.mrb[3].mxu0 }
  0xe5   :  { %v105_v47 = vpop.f32.mrb[4].mxu1  ;;  %v182_v48 = vpop.f32.mrb[4].mxu0 }
  0xe6   :  { %v569_v49 = vpop.f32.mrb[5].mxu1  ;;  %v183_v50 = vadd.f32 %v182_v48, %v105_v47  ;;  %v585_v51 = vpop.f32.mrb[5].mxu0 }
  0xe7   :  { %v108_v52 = vpop.f32.mrb[6].mxu1  ;;  %v185_v53 = vpop.f32.mrb[6].mxu0 }
  0xe8   :  { %v570_v54 = vpop.f32.mrb[7].mxu1  ;;  %v186_v55 = vadd.f32 %v185_v53, %v108_v52  ;;  %v586_v56 = vpop.f32.mrb[7].mxu0 }
  0xed   :  { %v113_v57 = vpop.f32.mrb[8].mxu1  ;;  %v190_v58 = vpop.f32.mrb[8].mxu0 }
  0xee   :  { %v573_v59 = vpop.f32.mrb[9].mxu1  ;;  %v191_v60 = vadd.f32 %v190_v58, %v113_v57  ;;  %v589_v61 = vpop.f32.mrb[9].mxu0 }
  0xef   :  { %v116_v62 = vpop.f32.mrb[10].mxu1  ;;  %v193_v63 = vpop.f32.mrb[10].mxu0 }
  0xf0   :  { %v574_v0 = vpop.f32.mrb[11].mxu1  ;;  %v590_v1 = vpop.f32.mrb[11].mxu0 }
 0x10d   :  { %v304_v2 = vpop.f32.mrb[12].mxu1  ;;  %v438_v4 = vpop.f32.mrb[12].mxu0 }
 0x10e   :  { %v326_v3 = vmax.f32 %v175_v40, %v304_v2  ;;  %v613_v5 = vpop.f32.mrb[13].mxu1  ;;  %v645_v7 = vpop.f32.mrb[13].mxu0 }
 0x10f   :  { %v307_v8 = vpop.f32.mrb[14].mxu1  ;;  %v441_v11 = vpop.f32.mrb[14].mxu0 }
 0x110   :  { %v460_v9 = vmax.f32 %v326_v3, %v438_v4  ;;  %v327_v10 = vmax.f32 %v178_v45, %v307_v8  ;;  %v614_v12 = vpop.f32.mrb[15].mxu1  ;;  %v646_v13 = vpop.f32.mrb[15].mxu0 }
 0x112   :  { %v472_v14 = vadd.f32 %v528_v6, %v460_v9  ;;  %v461_v15 = vmax.f32 %v327_v10, %v441_v11 }
 0x114   :  { %v477_v16 = vmax.f32 %v472_v14, 0.0  ;;  %v473_v17 = vadd.f32 %v528_v6, %v461_v15 }
 0x115   :  { %v312_v18 = vpop.f32.mrb[16].mxu1  ;;  %v446_v21 = vpop.f32.mrb[16].mxu0 }
 0x116   :  { %483 = vst.msk [vmem:[%s885_s3] sm:$0xff] %vm482_vm2, %v477_v16  ;;  %v478_v19 = vmax.f32 %v473_v17, 0.0  ;;  %v328_v20 = vmax.f32 %v183_v50, %v312_v18  ;;  %v617_v22 = vpop.f32.mrb[17].mxu1  ;;  %v649_v23 = vpop.f32.mrb[17].mxu0 }
 0x117   :  { %v315_v24 = vpop.f32.mrb[18].mxu1  ;;  %v449_v27 = vpop.f32.mrb[18].mxu0 }
 0x118   :  { %484 = vst.msk [vmem:[%s885_s3 + $0x8] sm:$0xff] %vm482_vm2, %v478_v19  ;;  %v462_v25 = vmax.f32 %v328_v20, %v446_v21  ;;  %v329_v26 = vmax.f32 %v186_v55, %v315_v24  ;;  %v618_v28 = vpop.f32.mrb[19].mxu1  ;;  %v650_v29 = vpop.f32.mrb[19].mxu0 }
 0x11a   :  { %v474_v30 = vadd.f32 %v528_v6, %v462_v25  ;;  %v463_v31 = vmax.f32 %v329_v26, %v449_v27 }
 0x11c   :  { %v479_v32 = vmax.f32 %v474_v30, 0.0  ;;  %v475_v33 = vadd.f32 %v528_v6, %v463_v31 }
 0x11d   :  { %v320_v34 = vpop.f32.mrb[20].mxu1  ;;  %v454_v37 = vpop.f32.mrb[20].mxu0 }
 0x11e   :  { %485 = vst.msk [vmem:[%s885_s3 + $0x10] sm:$0xff] %vm482_vm2, %v479_v32  ;;  %v480_v35 = vmax.f32 %v475_v33, 0.0  ;;  %v330_v36 = vmax.f32 %v191_v60, %v320_v34  ;;  %v621_v38 = vpop.f32.mrb[21].mxu1  ;;  %v653_v39 = vpop.f32.mrb[21].mxu0 }
 0x11f   :  { %v323_v40 = vpop.f32.mrb[22].mxu1  ;;  %v457_v42 = vpop.f32.mrb[22].mxu0 }
 0x120   :  { %486 = vst.msk [vmem:[%s885_s3 + $0x18] sm:$0xff] %vm482_vm2, %v480_v35  ;;  %v464_v41 = vmax.f32 %v330_v36, %v454_v37  ;;  %v622_v43 = vpop.f32.mrb[23].mxu1  ;;  %v654_v44 = vpop.f32.mrb[23].mxu0 }
 0x122   :  { %v476_v45 = vadd.f32 %v528_v6, %v464_v41 }
 0x124   :  { %v481_v46 = vmax.f32 %v476_v45, 0.0 }
 0x126   :  { %487 = vst.msk [vmem:[%s885_s3 + $0x20] sm:$0xff] %vm482_vm2, %v481_v46 }

// kernel: siamese_forward.7
= control target key start
LH: loop header
LB: loop body
LE: loop exit
PB: predicated region body
PF: predicated region fallthrough
CT: control target
= control target key end

     0   :  { %vm97_vm0 = vcmask 1046528   ;;  %vm72_vm1 = vcmask 113664   ;;  %vm1262_vm2 = vcmask 261120   ;;  %s2325_s1 = inlined_call_operand.vmem [shape: bf16[3,14,32], index: 1, kind: input, shape index: {}]   ;;  %s2326_s0 = inlined_call_operand.vmem [shape: f32[3,121,14], index: 0, kind: input, shape index: {}]   ;;  %s2327_s2 = inlined_call_operand.vmem [shape: f32[1,32], index: 2, kind: input, shape index: {}]   ;;  %s2328_s3 = inlined_call_operand.vmem [shape: f32[120,32], index: 3, kind: output, shape index: {}]  }
   0x1   :  { %v1757_v0 = vld [vmem:[%s2325_s1 + $0x8] sm:$0x7f]   ;;  %v1786_v1 = vld [vmem:[%s2325_s1] sm:$0x7f]   ;;  %v1284_v9 = vld [vmem:[%s2326_s0 + $0x90] sm:$0xff] }
   0x2   :  { %1747 = vmatprep.subr.msk.bf16.mxu1 %vm97_vm0, %v1757_v0  ;;  %v1790_v2 = vsel %vm97_vm0, %v1757_v0, 0  ;;  %v1282_v3 = vld [vmem:[%s2326_s0 + $0x80] sm:$0xff]  ;;  %v1283_v4 = vld [vmem:[%s2326_s0 + $0x88] sm:$0xff]  ;;  %1748 = vmatprep.subr.msk.bf16.mxu0 %vm97_vm0, %v1786_v1  ;;  %v1806_v6 = vsel %vm97_vm0, %v1786_v1, 0  ;;  %v1285_v10 = vld [vmem:[%s2326_s0 + $0x98] sm:$0xff] }
   0x3   :  { %v15_v5 = vld [vmem:[%s2326_s0] sm:$0xff]  ;;  %1489 = vmatpush3.bf16.msra.mxu1 %v1790_v2  ;;  %v1808_v7 = vpack.c.bf16 %v1283_v4, %v1282_v3  ;;  %v16_v8 = vld [vmem:[%s2326_s0 + $0x8] sm:$0xff]  ;;  %1507 = vmatpush3.bf16.msra.mxu0 %v1806_v6  ;;  %v1820_v12 = vpack.c.bf16 %v1285_v10, %v1284_v9  ;;  %v17_v13 = vld [vmem:[%s2326_s0 + $0x10] sm:$0xff] }
   0x4   :  { %v30_v11 = vpack.c.bf16 %v16_v8, %v15_v5  ;;  %1749 = vmatprep.subr.msk.bf16.mxu1 %vm97_vm0, %v1786_v1  ;;  %v18_v14 = vld [vmem:[%s2326_s0 + $0x18] sm:$0xff]  ;;  %v1835_v16 = vld [vmem:[%s2325_s1 + $0x10] sm:$0x7f]   ;;  %v1286_v17 = vld [vmem:[%s2326_s0 + $0xa0] sm:$0xff] }
   0x5   :  { %1490 = vmatprep.mubr.msk.bf16.mxu1 %vm72_vm1, %v1808_v7  ;;  %v31_v15 = vpack.c.bf16 %v18_v14, %v17_v13  ;;  %v1287_v18 = vld [vmem:[%s2326_s0 + $0xa8] sm:$0xff]  ;;  %v19_v19 = vld [vmem:[%s2326_s0 + $0x20] sm:$0xff]  ;;  %v1856_v21 = vsel %vm97_vm0, %v1835_v16, 0  ;;  %v1288_v24 = vld [vmem:[%s2326_s0 + $0xb0] sm:$0xff]  ;;  %1750 = vmatprep.subr.msk.bf16.mxu0 %vm97_vm0, %v1835_v16 }
   0x6   :  { %1508 = vmatprep.mubr.msk.bf16.mxu0 %vm72_vm1, %v30_v11  ;;  %1491 = vmatmul.mubr.msk.bf16.vlgmr.msra.gmra.mrb[0].mxu1 %vm72_vm1, %v1820_v12  ;;  %v20_v20 = vld [vmem:[%s2326_s0 + $0x28] sm:$0xff]  ;;  %v1858_v22 = vpack.c.bf16 %v1287_v18, %v1286_v17  ;;  %v1289_v25 = vld [vmem:[%s2326_s0 + $0xb8] sm:$0xff]  ;;  %v21_v26 = vld [vmem:[%s2326_s0 + $0x30] sm:$0xff] }
   0x7   :  { %1509 = vmatmul.mubr.msk.bf16.vlgmr.msra.gmra.mrb[0].mxu0 %vm72_vm1, %v31_v15  ;;  %1651 = vmatpush3.bf16.msra.mxu1 %v1806_v6  ;;  %v32_v23 = vpack.c.bf16 %v20_v20, %v19_v19  ;;  %v22_v27 = vld [vmem:[%s2326_s0 + $0x38] sm:$0xff]  ;;  %v1290_v28 = vld [vmem:[%s2326_s0 + $0xc0] sm:$0xff]  ;;  %v1291_v29 = vld [vmem:[%s2326_s0 + $0xc8] sm:$0xff]  ;;  %v1891_v32 = vpack.c.bf16 %v1289_v25, %v1288_v24 }
   0x8   :  { %1751 = vmatprep.subr.msk.bf16.mxu1 %vm97_vm0, %v1757_v0  ;;  %1525 = vmatpush3.bf16.msra.mxu0 %v1856_v21  ;;  %v1317_v30 = vld [vmem:[%s2326_s0 + $0x100] sm:$0xff]  ;;  %v1318_v31 = vld [vmem:[%s2326_s0 + $0x108] sm:$0xff]  ;;  %v33_v33 = vpack.c.bf16 %v22_v27, %v21_v26  ;;  %v1894_v34 = vpack.c.bf16 %v1291_v29, %v1290_v28  ;;  %v1292_v36 = vld [vmem:[%s2326_s0 + $0xd0] sm:$0xff] }
   0x9   :  { %1494 = vmatprep.mubr.msk.bf16.mxu1 %vm72_vm1, %v1858_v22  ;;  %1512 = vmatprep.mubr.msk.bf16.mxu0 %vm72_vm1, %v32_v23  ;;  %v1896_v35 = vpack.c.bf16 %v1318_v31, %v1317_v30  ;;  %v1293_v37 = vld [vmem:[%s2326_s0 + $0xd8] sm:$0xff]  ;;  %v1319_v38 = vld [vmem:[%s2326_s0 + $0x110] sm:$0xff]  ;;  %v1294_v40 = vld [vmem:[%s2326_s0 + $0xe0] sm:$0xff] }
   0xa   :  { %1754 = vmatprep.subr.msk.bf16.mxu0 %vm97_vm0, %v1757_v0  ;;  %v1320_v39 = vld [vmem:[%s2326_s0 + $0x118] sm:$0xff]  ;;  %v1295_v41 = vld [vmem:[%s2326_s0 + $0xe8] sm:$0xff]  ;;  %v1321_v42 = vld [vmem:[%s2326_s0 + $0x120] sm:$0xff]  ;;  %v1929_v44 = vpack.c.bf16 %v1293_v37, %v1292_v36 }
   0xb   :  { %v1322_v43 = vld [vmem:[%s2326_s0 + $0x128] sm:$0xff]  ;;  %v1931_v45 = vpack.c.bf16 %v1320_v39, %v1319_v38  ;;  %v1933_v46 = vpack.c.bf16 %v1295_v41, %v1294_v40  ;;  %v1296_v48 = vld [vmem:[%s2326_s0 + $0xf0] sm:$0xff]  ;;  %v1324_v50 = vld [vmem:[%s2326_s0 + $0x138] sm:$0xff] }
   0xc   :  { %v1935_v47 = vpack.c.bf16 %v1322_v43, %v1321_v42  ;;  %v1323_v49 = vld [vmem:[%s2326_s0 + $0x130] sm:$0xff]  ;;  %v23_v51 = vld [vmem:[%s2326_s0 + $0x40] sm:$0xff]  ;;  %v24_v52 = vld [vmem:[%s2326_s0 + $0x48] sm:$0xff]  ;;  %v1969_v55 = vpack.c.bf16 %v1296_v48, %v1296_v48 }
   0xd   :  { %v1325_v53 = vld [vmem:[%s2326_s0 + $0x140] sm:$0xff]  ;;  %v1326_v54 = vld [vmem:[%s2326_s0 + $0x148] sm:$0xff]  ;;  %v1971_v56 = vpack.c.bf16 %v1324_v50, %v1323_v49  ;;  %v34_v57 = vpack.c.bf16 %v24_v52, %v23_v51  ;;  %v25_v59 = vld [vmem:[%s2326_s0 + $0x50] sm:$0xff] }
   0xe   :  { %1495 = vmatmul.mubr.msk.bf16.gmra.mrb[4].mxu1 %vm72_vm1, %v1891_v32  ;;  %v1973_v58 = vpack.c.bf16 %v1326_v54, %v1325_v53  ;;  %v26_v60 = vld [vmem:[%s2326_s0 + $0x58] sm:$0xff]  ;;  %v1327_v61 = vld [vmem:[%s2326_s0 + $0x150] sm:$0xff]  ;;  %v27_v63 = vld [vmem:[%s2326_s0 + $0x60] sm:$0xff] }
   0xf   :  { %1513 = vmatmul.mubr.msk.bf16.gmra.mrb[4].mxu0 %vm72_vm1, %v33_v33  ;;  %1498 = vmatprep.mubr.msk.bf16.mxu1 %vm72_vm1, %v1894_v34  ;;  %v1328_v62 = vld [vmem:[%s2326_s0 + $0x158] sm:$0xff]  ;;  %v28_v0 = vld [vmem:[%s2326_s0 + $0x68] sm:$0xff]  ;;  %v1329_v3 = vld [vmem:[%s2326_s0 + $0x160] sm:$0xff]  ;;  %v35_v5 = vpack.c.bf16 %v26_v60, %v25_v59 }
  0x10   :  { %1526 = vmatprep.mubr.msk.bf16.mxu0 %vm72_vm1, %v1896_v35  ;;  %v1330_v4 = vld [vmem:[%s2326_s0 + $0x168] sm:$0xff]  ;;  %v2006_v8 = vpack.c.bf16 %v1328_v62, %v1327_v61  ;;  %v36_v9 = vpack.c.bf16 %v28_v0, %v27_v63  ;;  %v29_v11 = vld [vmem:[%s2326_s0 + $0x70] sm:$0xff]  ;;  %v690_v19 = vld [vmem:[%s2326_s0 + $0x19] sm:$0xff] }
  0x11   :  { %v2008_v10 = vpack.c.bf16 %v1330_v4, %v1329_v3  ;;  %v1331_v13 = vld [vmem:[%s2326_s0 + $0x170] sm:$0xff]  ;;  %v687_v14 = vld [vmem:[%s2326_s0 + $0x1] sm:$0xff]  ;;  %v37_v15 = vpack.c.bf16 %v29_v11, %v29_v11  ;;  %v694_v27 = vld [vmem:[%s2326_s0 + $0x39] sm:$0xff] }
  0x12   :  { %v2031_v17 = vpack.c.bf16 %v1331_v13, %v1331_v13  ;;  %v691_v20 = vld [vmem:[%s2326_s0 + $0x21] sm:$0xff]  ;;  %v692_v23 = vld [vmem:[%s2326_s0 + $0x29] sm:$0xff]  ;;  %v693_v26 = vld [vmem:[%s2326_s0 + $0x31] sm:$0xff] }
  0x13   :  { %v2056_v25 = vpack.c.bf16 %v692_v23, %v691_v20  ;;  %v695_v28 = vld [vmem:[%s2326_s0 + $0x41] sm:$0xff]  ;;  %v705_v29 = vpack.c.bf16 %v694_v27, %v693_v26  ;;  %v697_v31 = vld [vmem:[%s2326_s0 + $0x51] sm:$0xff]  ;;  %v700_v36 = vld [vmem:[%s2326_s0 + $0x69] sm:$0xff] }
  0x14   :  { %v699_v33 = vld [vmem:[%s2326_s0 + $0x61] sm:$0xff]  ;;  %v701_v39 = vld [vmem:[%s2326_s0 + $0x71] sm:$0xff]  ;;  %v1394_v50 = vld [vmem:[%s2326_s0 + $0xd9] sm:$0xff] }
  0x15   :  { %v708_v38 = vpack.c.bf16 %v700_v36, %v699_v33  ;;  %v709_v40 = vpack.c.bf16 %v701_v39, %v701_v39  ;;  %v1389_v43 = vld [vmem:[%s2326_s0 + $0xb1] sm:$0xff]  ;;  %v1395_v51 = vld [vmem:[%s2326_s0 + $0xe1] sm:$0xff]  ;;  %v1396_v52 = vld [vmem:[%s2326_s0 + $0xe9] sm:$0xff] }
  0x16   :  { %1499 = vmatmul.mubr.msk.bf16.gmra.mrb[8].mxu1 %vm72_vm1, %v1929_v44  ;;  %v1393_v49 = vld [vmem:[%s2326_s0 + $0xd1] sm:$0xff]  ;;  %v1073_v54 = vpack.c.bf16 %v1396_v52, %v1395_v51 }
  0x17   :  { %1527 = vmatmul.mubr.msk.bf16.vlgmr.msra.gmra.mrb[0].mxu0 %vm72_vm1, %v1931_v45  ;;  %1502 = vmatprep.mubr.msk.bf16.mxu1 %vm72_vm1, %v1933_v46  ;;  %v1072_v53 = vpack.c.bf16 %v1394_v50, %v1393_v49 }
  0x18   :  { %1597 = vmatpush3.bf16.msra.mxu0 %v1790_v2  ;;  %1530 = vmatprep.mubr.msk.bf16.mxu0 %vm72_vm1, %v1935_v47 }
  0x19   :  { %1755 = vmatprep.subr.msk.bf16.mxu0 %vm97_vm0, %v1786_v1 }
  0x1e   :  { %1503 = vmatmul.mubr.msk.bf16.gmra.mrb[12].mxu1 %vm72_vm1, %v1969_v55 }
  0x1f   :  { %1531 = vmatmul.mubr.msk.bf16.gmra.mrb[4].mxu0 %vm72_vm1, %v1971_v56  ;;  %1516 = vmatprep.mubr.msk.bf16.mxu1 %vm72_vm1, %v34_v57 }
  0x20   :  { %1534 = vmatprep.mubr.msk.bf16.mxu0 %vm72_vm1, %v1973_v58 }
  0x26   :  { %1517 = vmatmul.mubr.msk.bf16.vlgmr.msra.gmra.mrb[8].mxu1 %vm72_vm1, %v35_v5 }
  0x27   :  { %1535 = vmatmul.mubr.msk.bf16.gmra.mrb[8].mxu0 %vm72_vm1, %v2006_v8  ;;  %1543 = vmatpush3.bf16.msra.mxu1 %v1790_v2  ;;  %v688_v2 = vld [vmem:[%s2326_s0 + $0x9] sm:$0xff] }
  0x28   :  { %1520 = vmatprep.mubr.msk.bf16.mxu1 %vm72_vm1, %v36_v9  ;;  %1538 = vmatprep.mubr.msk.bf16.mxu0 %vm72_vm1, %v2008_v10  ;;  %v2033_v18 = vpack.c.bf16 %v688_v2, %v687_v14 }
  0x29   :  { %1752 = vmatprep.subr.msk.bf16.mxu1 %vm97_vm0, %v1786_v1  ;;  %v689_v1 = vld [vmem:[%s2326_s0 + $0x11] sm:$0xff] }
  0x2a   :  { %v2054_v24 = vpack.c.bf16 %v690_v19, %v689_v1 }
  0x2e   :  { %1521 = vmatmul.mubr.msk.bf16.gmra.mrb[12].mxu1 %vm72_vm1, %v37_v15 }
  0x2f   :  { %1539 = vmatmul.mubr.msk.bf16.gmra.mrb[12].mxu0 %vm72_vm1, %v2031_v17  ;;  %1544 = vmatprep.mubr.msk.bf16.mxu1 %vm72_vm1, %v1896_v35 }
  0x30   :  { %1598 = vmatprep.mubr.msk.bf16.mxu0 %vm72_vm1, %v2033_v18 }
  0x36   :  { %1545 = vmatmul.mubr.msk.bf16.vlgmr.msra.gmra.mrb[16].mxu1 %vm72_vm1, %v1931_v45 }
  0x37   :  { %1599 = vmatmul.mubr.msk.bf16.vlgmr.msra.gmra.mrb[16].mxu0 %vm72_vm1, %v2054_v24  ;;  %1561 = vmatpush3.bf16.msra.mxu1 %v1806_v6 }
  0x38   :  { %1615 = vmatpush3.bf16.msra.mxu0 %v1806_v6  ;;  %1548 = vmatprep.mubr.msk.bf16.mxu1 %vm72_vm1, %v1935_v47  ;;  %v696_v6 = vld [vmem:[%s2326_s0 + $0x49] sm:$0xff] }
  0x39   :  { %1602 = vmatprep.mubr.msk.bf16.mxu0 %vm72_vm1, %v2056_v25  ;;  %1753 = vmatprep.subr.msk.bf16.mxu1 %vm97_vm0, %v1835_v16  ;;  %v706_v30 = vpack.c.bf16 %v696_v6, %v695_v28 }
  0x3a   :  { %1756 = vmatprep.subr.msk.bf16.mxu0 %vm97_vm0, %v1835_v16  ;;  %v698_v16 = vld [vmem:[%s2326_s0 + $0x59] sm:$0xff] }
  0x3b   :  { %v707_v37 = vpack.c.bf16 %v698_v16, %v697_v31 }
  0x3e   :  { %1549 = vmatmul.mubr.msk.bf16.gmra.mrb[20].mxu1 %vm72_vm1, %v1971_v56 }
  0x3f   :  { %1603 = vmatmul.mubr.msk.bf16.gmra.mrb[20].mxu0 %vm72_vm1, %v705_v29  ;;  %1552 = vmatprep.mubr.msk.bf16.mxu1 %vm72_vm1, %v1973_v58 }
  0x40   :  { %1606 = vmatprep.mubr.msk.bf16.mxu0 %vm72_vm1, %v706_v30 }
  0x46   :  { %1553 = vmatmul.mubr.msk.bf16.gmra.mrb[24].mxu1 %vm72_vm1, %v2006_v8 }
  0x47   :  { %1607 = vmatmul.mubr.msk.bf16.gmra.mrb[24].mxu0 %vm72_vm1, %v707_v37  ;;  %1556 = vmatprep.mubr.msk.bf16.mxu1 %vm72_vm1, %v2008_v10 }
  0x48   :  { %1610 = vmatprep.mubr.msk.bf16.mxu0 %vm72_vm1, %v708_v38 }
  0x4e   :  { %1557 = vmatmul.mubr.msk.bf16.gmra.mrb[28].mxu1 %vm72_vm1, %v2031_v17 }
  0x4f   :  { %1611 = vmatmul.mubr.msk.bf16.gmra.mrb[28].mxu0 %vm72_vm1, %v709_v40  ;;  %1562 = vmatprep.mubr.msk.bf16.mxu1 %vm72_vm1, %v1808_v7  ;;  %v1383_v7 = vld [vmem:[%s2326_s0 + $0x81] sm:$0xff] }
  0x50   :  { %1616 = vmatprep.mubr.msk.bf16.mxu0 %vm72_vm1, %v1896_v35  ;;  %v1388_v35 = vld [vmem:[%s2326_s0 + $0xa9] sm:$0xff] }
  0x56   :  { %1563 = vmatmul.mubr.msk.bf16.vlgmr.msra.gmra.mrb[16].mxu1 %vm72_vm1, %v1820_v12  ;;  %v1384_v12 = vld [vmem:[%s2326_s0 + $0x89] sm:$0xff] }
  0x57   :  { %1617 = vmatmul.mubr.msk.bf16.vlgmr.msra.gmra.mrb[16].mxu0 %vm72_vm1, %v1931_v45  ;;  %1579 = vmatpush3.bf16.msra.mxu1 %v1856_v21  ;;  %v1391_v45 = vld [vmem:[%s2326_s0 + $0xc1] sm:$0xff] }
  0x58   :  { %1633 = vmatpush3.bf16.msra.mxu0 %v1856_v21  ;;  %1566 = vmatprep.mubr.msk.bf16.mxu1 %vm72_vm1, %v1858_v22  ;;  %v1067_v21 = vpack.c.bf16 %v1384_v12, %v1383_v7  ;;  %v1385_v22 = vld [vmem:[%s2326_s0 + $0x91] sm:$0xff] }
  0x59   :  { %1620 = vmatprep.mubr.msk.bf16.mxu0 %vm72_vm1, %v1935_v47 }
  0x5e   :  { %1567 = vmatmul.mubr.msk.bf16.gmra.mrb[20].mxu1 %vm72_vm1, %v1891_v32  ;;  %v1386_v32 = vld [vmem:[%s2326_s0 + $0x99] sm:$0xff] }
  0x5f   :  { %1621 = vmatmul.mubr.msk.bf16.gmra.mrb[20].mxu0 %vm72_vm1, %v1971_v56  ;;  %1570 = vmatprep.mubr.msk.bf16.mxu1 %vm72_vm1, %v1894_v34  ;;  %v1387_v34 = vld [vmem:[%s2326_s0 + $0xa1] sm:$0xff]  ;;  %v1068_v41 = vpack.c.bf16 %v1386_v32, %v1385_v22 }
  0x60   :  { %1624 = vmatprep.mubr.msk.bf16.mxu0 %vm72_vm1, %v1973_v58  ;;  %v1069_v42 = vpack.c.bf16 %v1388_v35, %v1387_v34 }
  0x66   :  { %1571 = vmatmul.mubr.msk.bf16.gmra.mrb[24].mxu1 %vm72_vm1, %v1929_v44  ;;  %v1390_v44 = vld [vmem:[%s2326_s0 + $0xb9] sm:$0xff] }
  0x67   :  { %1625 = vmatmul.mubr.msk.bf16.gmra.mrb[24].mxu0 %vm72_vm1, %v2006_v8  ;;  %1574 = vmatprep.mubr.msk.bf16.mxu1 %vm72_vm1, %v1933_v46  ;;  %v1392_v46 = vld [vmem:[%s2326_s0 + $0xc9] sm:$0xff]  ;;  %v1070_v47 = vpack.c.bf16 %v1390_v44, %v1389_v43  ;;  %v2237_v44 = vld [vmem:[%s2327_s2] ss:$0 sm:$0xff] }
  0x68   :  { %1628 = vmatprep.mubr.msk.bf16.mxu0 %vm72_vm1, %v2008_v10  ;;  %v1071_v48 = vpack.c.bf16 %v1392_v46, %v1391_v45 }
  0x6e   :  { %1575 = vmatmul.mubr.msk.bf16.gmra.mrb[28].mxu1 %vm72_vm1, %v1969_v55  ;;  %v1397_v55 = vld [vmem:[%s2326_s0 + $0xf1] sm:$0xff] }
  0x6f   :  { %1629 = vmatmul.mubr.msk.bf16.gmra.mrb[28].mxu0 %vm72_vm1, %v2031_v17  ;;  %1580 = vmatprep.mubr.msk.bf16.mxu1 %vm72_vm1, %v2033_v18  ;;  %v1074_v56 = vpack.c.bf16 %v1397_v55, %v1397_v55 }
  0x70   :  { %1634 = vmatprep.mubr.msk.bf16.mxu0 %vm72_vm1, %v1067_v21 }
  0x76   :  { %1581 = vmatmul.mubr.msk.bf16.vlgmr.msra.gmra.mrb[16].mxu1 %vm72_vm1, %v2054_v24 }
  0x77   :  { %1635 = vmatmul.mubr.msk.bf16.vlgmr.msra.gmra.mrb[16].mxu0 %vm72_vm1, %v1068_v41  ;;  %1584 = vmatprep.mubr.msk.bf16.mxu1 %vm72_vm1, %v2056_v25 }
  0x78   :  { %1638 = vmatprep.mubr.msk.bf16.mxu0 %vm72_vm1, %v1069_v42 }
  0x7e   :  { %1585 = vmatmul.mubr.msk.bf16.gmra.mrb[20].mxu1 %vm72_vm1, %v705_v29 }
  0x7f   :  { %1639 = vmatmul.mubr.msk.bf16.gmra.mrb[20].mxu0 %vm72_vm1, %v1070_v47  ;;  %1588 = vmatprep.mubr.msk.bf16.mxu1 %vm72_vm1, %v706_v30 }
  0x80   :  { %1642 = vmatprep.mubr.msk.bf16.mxu0 %vm72_vm1, %v1071_v48 }
  0x86   :  { %1589 = vmatmul.mubr.msk.bf16.gmra.mrb[24].mxu1 %vm72_vm1, %v707_v37 }
  0x87   :  { %1643 = vmatmul.mubr.msk.bf16.gmra.mrb[24].mxu0 %vm72_vm1, %v1072_v53  ;;  %1592 = vmatprep.mubr.msk.bf16.mxu1 %vm72_vm1, %v708_v38 }
  0x88   :  { %1646 = vmatprep.mubr.msk.bf16.mxu0 %vm72_vm1, %v1073_v54 }
  0x8e   :  { %1593 = vmatmul.mubr.msk.bf16.gmra.mrb[28].mxu1 %vm72_vm1, %v709_v40 }
  0x8f   :  { %1647 = vmatmul.mubr.msk.bf16.gmra.mrb[28].mxu0 %vm72_vm1, %v1074_v56 }
  0xd9   :  { %v1492_v57 = vpop.f32.mrb[0].mxu1 }
  0xda   :  { %v135_v58 = vpop.f32.mrb[1].mxu1 }
  0xdb   :  { %v1493_v59 = vpop.f32.mrb[2].mxu1 }
  0xdc   :  { %v138_v60 = vpop.f32.mrb[3].mxu1 }
  0xe1   :  { %v1496_v61 = vpop.f32.mrb[4].mxu1 }
  0xe2   :  { %v151_v62 = vpop.f32.mrb[5].mxu1 }
  0xe3   :  { %v1497_v63 = vpop.f32.mrb[6].mxu1 }
  0xe4   :  { %v154_v0 = vpop.f32.mrb[7].mxu1 }
  0xea   :  { %v1528_v3 = vpop.f32.mrb[0].mxu0 }
  0xeb   :  { %v1652_v4 = vadd.f32 %v1528_v3, %v1492_v57  ;;  %v418_v5 = vpop.f32.mrb[1].mxu0 }
  0xec   :  { %v1653_v8 = vadd.f32 %v418_v5, %v135_v58  ;;  %v1529_v9 = vpop.f32.mrb[2].mxu0 }
  0xed   :  { %v1654_v10 = vadd.f32 %v1529_v9, %v1493_v59  ;;  %v421_v11 = vpop.f32.mrb[3].mxu0 }
  0xee   :  { %v1655_v13 = vadd.f32 %v421_v11, %v138_v60 }
  0xf2   :  { %v1532_v14 = vpop.f32.mrb[4].mxu0 }
  0xf3   :  { %v2212_v2 = vadd.f32 %v1532_v14, %v1496_v61  ;;  %v434_v15 = vpop.f32.mrb[5].mxu0 }
  0xf4   :  { %v2214_v17 = vadd.f32 %v434_v15, %v151_v62  ;;  %v1533_v18 = vpop.f32.mrb[6].mxu0 }
  0xf5   :  { %v2216_v1 = vadd.f32 %v1533_v18, %v1497_v63  ;;  %v437_v19 = vpop.f32.mrb[7].mxu0 }
  0xf6   :  { %v2218_v20 = vadd.f32 %v437_v19, %v154_v0 }
  0xf9   :  { %v1518_v23 = vpop.f32.mrb[8].mxu1 }
  0xfa   :  { %v1536_v24 = vpop.f32.mrb[8].mxu0  ;;  %v295_v25 = vpop.f32.mrb[9].mxu1 }
  0xfb   :  { %v2220_v26 = vadd.f32 %v1536_v24, %v1518_v23  ;;  %v450_v27 = vpop.f32.mrb[9].mxu0  ;;  %v1519_v28 = vpop.f32.mrb[10].mxu1 }
  0xfc   :  { %v2222_v6 = vadd.f32 %v450_v27, %v295_v25  ;;  %v1537_v29 = vpop.f32.mrb[10].mxu0  ;;  %v298_v30 = vpop.f32.mrb[11].mxu1 }
  0xfd   :  { %v2224_v31 = vadd.f32 %v1537_v29, %v1519_v28  ;;  %v453_v16 = vpop.f32.mrb[11].mxu0 }
  0xfe   :  { %v2226_v33 = vadd.f32 %v453_v16, %v298_v30 }
 0x101   :  { %v1522_v36 = vpop.f32.mrb[12].mxu1 }
 0x102   :  { %v1540_v37 = vpop.f32.mrb[12].mxu0  ;;  %v311_v38 = vpop.f32.mrb[13].mxu1 }
 0x103   :  { %v2228_v39 = vadd.f32 %v1540_v37, %v1522_v36  ;;  %v466_v40 = vpop.f32.mrb[13].mxu0  ;;  %v1523_v7 = vpop.f32.mrb[14].mxu1 }
 0x104   :  { %v2230_v12 = vadd.f32 %v466_v40, %v311_v38  ;;  %v1541_v21 = vpop.f32.mrb[14].mxu0  ;;  %v314_v22 = vpop.f32.mrb[15].mxu1 }
 0x105   :  { %v469_v32 = vpop.f32.mrb[15].mxu0 }
 0x106   :  { %v2232_v34 = vadd.f32 %v469_v32, %v314_v22 }
 0x149   :  { %v1582_v35 = vpop.f32.mrb[16].mxu1 }
 0x14a   :  { %v847_v41 = vmax.f32 %v1652_v4, %v1582_v35  ;;  %v1636_v42 = vpop.f32.mrb[16].mxu0  ;;  %v768_v43 = vpop.f32.mrb[17].mxu1 }
 0x14b   :  { %v845_v45 = vmax.f32 %v1653_v8, %v768_v43  ;;  %v1133_v46 = vpop.f32.mrb[17].mxu0  ;;  %v1583_v47 = vpop.f32.mrb[18].mxu1 }
 0x14c   :  { %v1212_v48 = vmax.f32 %v847_v41, %v1636_v42  ;;  %v848_v49 = vmax.f32 %v1654_v10, %v1583_v47  ;;  %v1637_v50 = vpop.f32.mrb[18].mxu0  ;;  %v771_v51 = vpop.f32.mrb[19].mxu1 }
 0x14d   :  { %v1210_v52 = vmax.f32 %v845_v45, %v1133_v46  ;;  %v846_v53 = vmax.f32 %v1655_v13, %v771_v51  ;;  %v1136_v54 = vpop.f32.mrb[19].mxu0 }
 0x14e   :  { %v1234_v55 = vadd.f32 %v2237_v44, %v1212_v48  ;;  %v1213_v56 = vmax.f32 %v848_v49, %v1637_v50 }
 0x14f   :  { %v1232_v57 = vadd.f32 %v2237_v44, %v1210_v52  ;;  %v1211_v58 = vmax.f32 %v846_v53, %v1136_v54 }
 0x150   :  { %v1249_v59 = vmax.f32 %v1234_v55, 0.0  ;;  %v1235_v60 = vadd.f32 %v2237_v44, %v1213_v56 }
 0x151   :  { %v1247_v61 = vmax.f32 %v1232_v57, 0.0  ;;  %v1233_v62 = vadd.f32 %v2237_v44, %v1211_v58  ;;  %v1586_v63 = vpop.f32.mrb[20].mxu1 }
 0x152   :  { %1265 = vst.msk [vmem:[%s2328_s3 + $0x10] sm:$0xff] %vm1262_vm2, %v1249_v59  ;;  %v1250_v0 = vmax.f32 %v1235_v60, 0.0  ;;  %v851_v3 = vmax.f32 %v2212_v2, %v1586_v63  ;;  %v1640_v4 = vpop.f32.mrb[20].mxu0  ;;  %v784_v5 = vpop.f32.mrb[21].mxu1 }
 0x153   :  { %1263 = vst.msk [vmem:[%s2328_s3] sm:$0xff] %vm1262_vm2, %v1247_v61  ;;  %v1248_v8 = vmax.f32 %v1233_v62, 0.0  ;;  %v849_v9 = vmax.f32 %v2214_v17, %v784_v5  ;;  %v1149_v10 = vpop.f32.mrb[21].mxu0  ;;  %v1587_v11 = vpop.f32.mrb[22].mxu1 }
 0x154   :  { %1266 = vst.msk [vmem:[%s2328_s3 + $0x18] sm:$0xff] %vm1262_vm2, %v1250_v0  ;;  %v1216_v13 = vmax.f32 %v851_v3, %v1640_v4  ;;  %v852_v14 = vmax.f32 %v2216_v1, %v1587_v11  ;;  %v1641_v2 = vpop.f32.mrb[22].mxu0  ;;  %v787_v15 = vpop.f32.mrb[23].mxu1 }
 0x155   :  { %1264 = vst.msk [vmem:[%s2328_s3 + $0x8] sm:$0xff] %vm1262_vm2, %v1248_v8  ;;  %v1214_v18 = vmax.f32 %v849_v9, %v1149_v10  ;;  %v850_v17 = vmax.f32 %v2218_v20, %v787_v15  ;;  %v1152_v19 = vpop.f32.mrb[23].mxu0 }
 0x156   :  { %v1238_v23 = vadd.f32 %v2237_v44, %v1216_v13  ;;  %v1217_v24 = vmax.f32 %v852_v14, %v1641_v2 }
 0x157   :  { %v1236_v25 = vadd.f32 %v2237_v44, %v1214_v18  ;;  %v1215_v27 = vmax.f32 %v850_v17, %v1152_v19 }
 0x158   :  { %v1253_v28 = vmax.f32 %v1238_v23, 0.0  ;;  %v1239_v1 = vadd.f32 %v2237_v44, %v1217_v24 }
 0x159   :  { %v1251_v29 = vmax.f32 %v1236_v25, 0.0  ;;  %v1237_v30 = vadd.f32 %v2237_v44, %v1215_v27  ;;  %v1590_v16 = vpop.f32.mrb[24].mxu1 }
 0x15a   :  { %1269 = vst.msk [vmem:[%s2328_s3 + $0x30] sm:$0xff] %vm1262_vm2, %v1253_v28  ;;  %v1254_v20 = vmax.f32 %v1239_v1, 0.0  ;;  %v855_v36 = vmax.f32 %v2220_v26, %v1590_v16  ;;  %v1644_v37 = vpop.f32.mrb[24].mxu0  ;;  %v800_v38 = vpop.f32.mrb[25].mxu1 }
 0x15b   :  { %1267 = vst.msk [vmem:[%s2328_s3 + $0x20] sm:$0xff] %vm1262_vm2, %v1251_v29  ;;  %v1252_v40 = vmax.f32 %v1237_v30, 0.0  ;;  %v853_v7 = vmax.f32 %v2222_v6, %v800_v38  ;;  %v1165_v21 = vpop.f32.mrb[25].mxu0  ;;  %v1591_v22 = vpop.f32.mrb[26].mxu1 }
 0x15c   :  { %1270 = vst.msk [vmem:[%s2328_s3 + $0x38] sm:$0xff] %vm1262_vm2, %v1254_v20  ;;  %v1220_v32 = vmax.f32 %v855_v36, %v1644_v37  ;;  %v856_v26 = vmax.f32 %v2224_v31, %v1591_v22  ;;  %v1645_v35 = vpop.f32.mrb[26].mxu0  ;;  %v803_v41 = vpop.f32.mrb[27].mxu1 }
 0x15d   :  { %1268 = vst.msk [vmem:[%s2328_s3 + $0x28] sm:$0xff] %vm1262_vm2, %v1252_v40  ;;  %v1218_v42 = vmax.f32 %v853_v7, %v1165_v21  ;;  %v854_v6 = vmax.f32 %v2226_v33, %v803_v41  ;;  %v1168_v43 = vpop.f32.mrb[27].mxu0 }
 0x15e   :  { %v1242_v45 = vadd.f32 %v2237_v44, %v1220_v32  ;;  %v1221_v46 = vmax.f32 %v856_v26, %v1645_v35 }
 0x15f   :  { %v1240_v47 = vadd.f32 %v2237_v44, %v1218_v42  ;;  %v1219_v48 = vmax.f32 %v854_v6, %v1168_v43 }
 0x160   :  { %v1257_v49 = vmax.f32 %v1242_v45, 0.0  ;;  %v1243_v31 = vadd.f32 %v2237_v44, %v1221_v46 }
 0x161   :  { %v1255_v50 = vmax.f32 %v1240_v47, 0.0  ;;  %v1241_v51 = vadd.f32 %v2237_v44, %v1219_v48  ;;  %v1594_v52 = vpop.f32.mrb[28].mxu1 }
 0x162   :  { %1273 = vst.msk [vmem:[%s2328_s3 + $0x50] sm:$0xff] %vm1262_vm2, %v1257_v49  ;;  %v1258_v33 = vmax.f32 %v1243_v31, 0.0  ;;  %v859_v53 = vmax.f32 %v2228_v39, %v1594_v52  ;;  %v1648_v54 = vpop.f32.mrb[28].mxu0  ;;  %v816_v55 = vpop.f32.mrb[29].mxu1 }
 0x163   :  { %1271 = vst.msk [vmem:[%s2328_s3 + $0x40] sm:$0xff] %vm1262_vm2, %v1255_v50  ;;  %v1256_v56 = vmax.f32 %v1241_v51, 0.0  ;;  %v857_v57 = vmax.f32 %v2230_v12, %v816_v55  ;;  %v1181_v58 = vpop.f32.mrb[29].mxu0  ;;  %v1595_v59 = vpop.f32.mrb[30].mxu1 }
 0x164   :  { %1274 = vst.msk [vmem:[%s2328_s3 + $0x58] sm:$0xff] %vm1262_vm2, %v1258_v33  ;;  %v1224_v60 = vmax.f32 %v859_v53, %v1648_v54  ;;  %v1649_v61 = vpop.f32.mrb[30].mxu0  ;;  %v819_v39 = vpop.f32.mrb[31].mxu1 }
 0x165   :  { %1272 = vst.msk [vmem:[%s2328_s3 + $0x48] sm:$0xff] %vm1262_vm2, %v1256_v56  ;;  %v1222_v62 = vmax.f32 %v857_v57, %v1181_v58  ;;  %v858_v63 = vmax.f32 %v2232_v34, %v819_v39  ;;  %v1184_v0 = vpop.f32.mrb[31].mxu0 }
 0x166   :  { %v1246_v12 = vadd.f32 %v2237_v44, %v1224_v60 }
 0x167   :  { %v1244_v3 = vadd.f32 %v2237_v44, %v1222_v62  ;;  %v1223_v4 = vmax.f32 %v858_v63, %v1184_v0 }
 0x168   :  { %v1261_v5 = vmax.f32 %v1246_v12, 0.0 }
 0x169   :  { %v1259_v8 = vmax.f32 %v1244_v3, 0.0  ;;  %v1245_v9 = vadd.f32 %v2237_v44, %v1223_v4 }
 0x16a   :  { %1277 = vst.msk [vmem:[%s2328_s3 + $0x70] sm:$0xff] %vm1262_vm2, %v1261_v5 }
 0x16b   :  { %1275 = vst.msk [vmem:[%s2328_s3 + $0x60] sm:$0xff] %vm1262_vm2, %v1259_v8  ;;  %v1260_v34 = vmax.f32 %v1245_v9, 0.0 }
 0x16d   :  { %1276 = vst.msk [vmem:[%s2328_s3 + $0x68] sm:$0xff] %vm1262_vm2, %v1260_v34 }

// kernel: siamese_forward.9
= control target key start
LH: loop header
LB: loop body
LE: loop exit
PB: predicated region body
PF: predicated region fallthrough
CT: control target
= control target key end

     0   :  { %vm67_vm0 = vcmask 523264   ;;  %s778_s1 = inlined_call_operand.vmem [shape: bf16[3,64,64], index: 1, kind: input, shape index: {}]   ;;  %s779_s0 = inlined_call_operand.vmem [shape: f32[2,25,64], index: 0, kind: input, shape index: {}]   ;;  %s780_s2 = inlined_call_operand.vmem [shape: f32[1,64], index: 2, kind: input, shape index: {}]   ;;  %s781_s3 = inlined_call_operand.vmem [shape: f32[24,64], index: 3, kind: output, shape index: {}]  }
   0x1   :  { %v647_v0 = vld [vmem:[%s778_s1 + $0x20] sm:$0xff]   ;;  %v648_v1 = vld [vmem:[%s778_s1 + $0x28] sm:$0xff]   ;;  %v649_v2 = vld [vmem:[%s778_s1 + $0x30] sm:$0xff]  }
   0x2   :  { %559 = vmatprep.subr.bf16.mxu0 %v647_v0  ;;  %595 = vmatprep.subr.bf16.mxu1 %v647_v0  ;;  %v476_v3 = vld [vmem:[%s779_s0 + $0x20] sm:$0xff]  ;;  %v477_v4 = vld [vmem:[%s779_s0 + $0x28] sm:$0xff]  ;;  %v650_v9 = vld [vmem:[%s778_s1 + $0x38] sm:$0xff]  }
   0x3   :  { %560 = vmatpush3.bf16.msra.mxu0 %v647_v0  ;;  %596 = vmatpush3.bf16.msra.mxu1 %v647_v0  ;;  %v32_v5 = vpack.c.bf16 %v477_v4, %v476_v3  ;;  %v200_v6 = vld [vmem:[%s779_s0 + $0x1] sm:$0xff]  ;;  %v201_v7 = vld [vmem:[%s779_s0 + $0x9] sm:$0xff]  ;;  %v202_v11 = vld [vmem:[%s779_s0 + $0x11] sm:$0xff] }
   0x4   :  { %561 = vmatprep.subr.bf16.mxu0 %v648_v1  ;;  %597 = vmatprep.subr.bf16.mxu1 %v648_v1  ;;  %v203_v8 = vpack.c.bf16 %v201_v7, %v200_v6  ;;  %v478_v10 = vld [vmem:[%s779_s0 + $0x30] sm:$0xff]  ;;  %v651_v12 = vld [vmem:[%s778_s1] sm:$0xff]   ;;  %v204_v15 = vpack.c.bf16 %v202_v11, %v202_v11  ;;  %v16_v16 = vld [vmem:[%s779_s0 + $0x8] sm:$0xff] }
   0x5   :  { %567 = vmatprep.mubr.msk.bf16.mxu0 %vm67_vm0, %v32_v5  ;;  %v15_v13 = vld [vmem:[%s779_s0] sm:$0xff]  ;;  %v33_v14 = vpack.c.bf16 %v478_v10, %v478_v10  ;;  %v652_v17 = vld [vmem:[%s778_s1 + $0x8] sm:$0xff]   ;;  %v653_v19 = vld [vmem:[%s778_s1 + $0x10] sm:$0xff]  }
   0x6   :  { %603 = vmatprep.mubr.msk.bf16.mxu1 %vm67_vm0, %v203_v8  ;;  %v18_v18 = vpack.c.bf16 %v16_v16, %v15_v13  ;;  %v654_v20 = vld [vmem:[%s778_s1 + $0x18] sm:$0xff]   ;;  %v17_v21 = vld [vmem:[%s779_s0 + $0x10] sm:$0xff]  ;;  %v655_v22 = vld [vmem:[%s778_s1 + $0x40] sm:$0xff]  }
   0x7   :  { %562 = vmatpush3.bf16.msra.mxu0 %v648_v1  ;;  %598 = vmatpush3.bf16.msra.mxu1 %v648_v1  ;;  %v19_v23 = vpack.c.bf16 %v17_v21, %v17_v21  ;;  %v517_v24 = vld [vmem:[%s779_s0 + $0x21] sm:$0xff]  ;;  %v518_v25 = vld [vmem:[%s779_s0 + $0x29] sm:$0xff]  ;;  %v658_v29 = vld [vmem:[%s778_s1 + $0x58] sm:$0xff]  }
   0x8   :  { %563 = vmatprep.subr.bf16.mxu0 %v649_v2  ;;  %599 = vmatprep.subr.bf16.mxu1 %v649_v2  ;;  %v656_v26 = vld [vmem:[%s778_s1 + $0x48] sm:$0xff]   ;;  %v394_v27 = vpack.c.bf16 %v518_v25, %v517_v24  ;;  %v657_v28 = vld [vmem:[%s778_s1 + $0x50] sm:$0xff]   ;;  %v522_v34 = vld [vmem:[%s780_s2] ss:$0 sm:$0xff] }
   0x9   :  { %v519_v30 = vld [vmem:[%s779_s0 + $0x31] sm:$0xff] }
   0xa   :  { %v395_v31 = vpack.c.bf16 %v519_v30, %v519_v30 }
   0xb   :  { %564 = vmatpush3.bf16.msra.mxu0 %v649_v2  ;;  %600 = vmatpush3.bf16.msra.mxu1 %v649_v2 }
   0xc   :  { %565 = vmatprep.subr.bf16.mxu0 %v650_v9  ;;  %601 = vmatprep.subr.bf16.mxu1 %v650_v9 }
   0xf   :  { %566 = vmatpush3.bf16.msra.mxu0 %v650_v9  ;;  %602 = vmatpush3.bf16.msra.mxu1 %v650_v9 }
  0x10   :  { %571 = vmatprep.subr.bf16.mxu0 %v651_v12  ;;  %607 = vmatprep.subr.bf16.mxu1 %v651_v12 }
  0x12   :  { %568 = vmatmul.mubr.msk.bf16.vlgmr.msra.gmra.mrb[0].mxu0 %vm67_vm0, %v33_v14  ;;  %604 = vmatmul.mubr.msk.bf16.vlgmr.msra.gmra.mrb[0].mxu1 %vm67_vm0, %v204_v15 }
  0x13   :  { %572 = vmatpush3.bf16.msra.mxu0 %v651_v12  ;;  %608 = vmatpush3.bf16.msra.mxu1 %v651_v12 }
  0x14   :  { %573 = vmatprep.subr.bf16.mxu0 %v652_v17  ;;  %609 = vmatprep.subr.bf16.mxu1 %v652_v17 }
  0x15   :  { %579 = vmatprep.mubr.msk.bf16.mxu0 %vm67_vm0, %v18_v18  ;;  %615 = vmatprep.mubr.msk.bf16.mxu1 %vm67_vm0, %v32_v5 }
  0x17   :  { %574 = vmatpush3.bf16.msra.mxu0 %v652_v17  ;;  %610 = vmatpush3.bf16.msra.mxu1 %v652_v17 }
  0x18   :  { %575 = vmatprep.subr.bf16.mxu0 %v653_v19  ;;  %611 = vmatprep.subr.bf16.mxu1 %v653_v19 }
  0x1b   :  { %576 = vmatpush3.bf16.msra.mxu0 %v653_v19  ;;  %612 = vmatpush3.bf16.msra.mxu1 %v653_v19 }
  0x1c   :  { %577 = vmatprep.subr.bf16.mxu0 %v654_v20  ;;  %613 = vmatprep.subr.bf16.mxu1 %v654_v20 }
  0x1f   :  { %578 = vmatpush3.bf16.msra.mxu0 %v654_v20  ;;  %614 = vmatpush3.bf16.msra.mxu1 %v654_v20 }
  0x20   :  { %583 = vmatprep.subr.bf16.mxu0 %v655_v22  ;;  %619 = vmatprep.subr.bf16.mxu1 %v655_v22 }
  0x22   :  { %580 = vmatmul.mubr.msk.bf16.vlgmr.msra.gmra.mrb[0].mxu0 %vm67_vm0, %v19_v23  ;;  %616 = vmatmul.mubr.msk.bf16.vlgmr.msra.gmra.mrb[0].mxu1 %vm67_vm0, %v33_v14 }
  0x23   :  { %584 = vmatpush3.bf16.msra.mxu0 %v655_v22  ;;  %620 = vmatpush3.bf16.msra.mxu1 %v655_v22 }
  0x24   :  { %585 = vmatprep.subr.bf16.mxu0 %v656_v26  ;;  %621 = vmatprep.subr.bf16.mxu1 %v656_v26 }
  0x25   :  { %591 = vmatprep.mubr.msk.bf16.mxu0 %vm67_vm0, %v203_v8  ;;  %627 = vmatprep.mubr.msk.bf16.mxu1 %vm67_vm0, %v394_v27 }
  0x27   :  { %586 = vmatpush3.bf16.msra.mxu0 %v656_v26  ;;  %622 = vmatpush3.bf16.msra.mxu1 %v656_v26 }
  0x28   :  { %587 = vmatprep.subr.bf16.mxu0 %v657_v28  ;;  %623 = vmatprep.subr.bf16.mxu1 %v657_v28 }
  0x2b   :  { %588 = vmatpush3.bf16.msra.mxu0 %v657_v28  ;;  %624 = vmatpush3.bf16.msra.mxu1 %v657_v28 }
  0x2c   :  { %589 = vmatprep.subr.bf16.mxu0 %v658_v29  ;;  %625 = vmatprep.subr.bf16.mxu1 %v658_v29 }
  0x2f   :  { %590 = vmatpush3.bf16.msra.mxu0 %v658_v29  ;;  %626 = vmatpush3.bf16.msra.mxu1 %v658_v29 }
  0x32   :  { %592 = vmatmul.mubr.msk.bf16.vlgmr.msra.gmra.mrb[0].mxu0 %vm67_vm0, %v204_v15  ;;  %628 = vmatmul.mubr.msk.bf16.vlgmr.msra.gmra.mrb[0].mxu1 %vm67_vm0, %v395_v31 }
 0x105   :  { %v593_v32 = vpop.f32.mrb[0].mxu0  ;;  %v629_v33 = vpop.f32.mrb[0].mxu1 }
 0x106   :  { %v455_v35 = vmax.f32 %v593_v32, %v629_v33  ;;  %v278_v36 = vpop.f32.mrb[1].mxu0  ;;  %v436_v37 = vpop.f32.mrb[1].mxu1 }
 0x107   :  { %v453_v38 = vmax.f32 %v278_v36, %v436_v37  ;;  %v594_v39 = vpop.f32.mrb[2].mxu0  ;;  %v630_v40 = vpop.f32.mrb[2].mxu1 }
 0x108   :  { %v465_v41 = vadd.f32 %v522_v34, %v455_v35  ;;  %v281_v42 = vpop.f32.mrb[3].mxu0  ;;  %v439_v43 = vpop.f32.mrb[3].mxu1 }
 0x109   :  { %v463_v44 = vadd.f32 %v522_v34, %v453_v38  ;;  %v454_v45 = vmax.f32 %v281_v42, %v439_v43 }
 0x10a   :  { %v468_v46 = vmax.f32 %v465_v41, 0.0 }
 0x10b   :  { %v466_v47 = vmax.f32 %v463_v44, 0.0  ;;  %v464_v48 = vadd.f32 %v522_v34, %v454_v45 }
 0x10c   :  { %471 = vst.msk [vmem:[%s781_s3 + $0x10] sm:$0xff] %vm67_vm0, %v468_v46 }
 0x10d   :  { %469 = vst.msk [vmem:[%s781_s3] sm:$0xff] %vm67_vm0, %v466_v47  ;;  %v467_v49 = vmax.f32 %v464_v48, 0.0 }
 0x10f   :  { %470 = vst.msk [vmem:[%s781_s3 + $0x8] sm:$0xff] %vm67_vm0, %v467_v49 }

// kernel: siamese_forward.10
= control target key start
LH: loop header
LB: loop body
LE: loop exit
PB: predicated region body
PF: predicated region fallthrough
CT: control target
= control target key end

     0   :  { %v579_v0 = vmov 0.0   ;;  %vm580_vm0 = vmmov 0   ;;  %vm63_vm1 = vcmask 523264   ;;  %s714_s1 = inlined_call_operand.vmem [shape: bf16[3,64,64], index: 1, kind: input, shape index: {}]   ;;  %s715_s0 = inlined_call_operand.vmem [shape: f32[2,17,64], index: 0, kind: input, shape index: {}]   ;;  %s716_s2 = inlined_call_operand.vmem [shape: f32[1,64], index: 2, kind: input, shape index: {}]   ;;  %s717_s3 = inlined_call_operand.vmem [shape: f32[16,64], index: 3, kind: output, shape index: {}]  }
   0x1   :  { %477 = vmatprep.subr.bf16.mxu0 %v579_v0  ;;  %513 = vmatprep.subr.bf16.mxu1 %v579_v0  ;;  %v567_v1 = vld [vmem:[%s714_s1 + $0x20] sm:$0xff]   ;;  %v568_v2 = vld [vmem:[%s714_s1 + $0x28] sm:$0xff]   ;;  %v569_v3 = vld [vmem:[%s714_s1 + $0x30] sm:$0xff]  }
   0x2   :  { %485 = vmatprep.mubr.msk.bf16.mxu0 %vm580_vm0, %v579_v0  ;;  %521 = vmatprep.mubr.msk.bf16.mxu1 %vm580_vm0, %v579_v0  ;;  %v570_v4 = vld [vmem:[%s714_s1 + $0x38] sm:$0xff]   ;;  %v409_v6 = vld [vmem:[%s715_s0 + $0x20] sm:$0xff]  ;;  %v177_v8 = vld [vmem:[%s715_s0 + $0x9] sm:$0xff] }
   0x3   :  { %478 = vmatpush3.bf16.msra.mxu0 %v567_v1  ;;  %514 = vmatpush3.bf16.msra.mxu1 %v567_v1  ;;  %v408_v5 = vld [vmem:[%s715_s0 + $0x18] sm:$0xff]  ;;  %v176_v7 = vld [vmem:[%s715_s0 + $0x1] sm:$0xff]  ;;  %v573_v13 = vld [vmem:[%s714_s1 + $0x10] sm:$0xff]  }
   0x4   :  { %479 = vmatprep.subr.bf16.mxu0 %v579_v0  ;;  %515 = vmatprep.subr.bf16.mxu1 %v579_v0  ;;  %v29_v9 = vpack.c.bf16 %v409_v6, %v408_v5  ;;  %v178_v10 = vpack.c.bf16 %v177_v8, %v176_v7  ;;  %v571_v11 = vld [vmem:[%s714_s1] sm:$0xff]   ;;  %v572_v12 = vld [vmem:[%s714_s1 + $0x8] sm:$0xff]   ;;  %v574_v14 = vld [vmem:[%s714_s1 + $0x18] sm:$0xff]  }
   0x5   :  { %v15_v15 = vld [vmem:[%s715_s0] sm:$0xff]  ;;  %v16_v16 = vld [vmem:[%s715_s0 + $0x8] sm:$0xff]  ;;  %v577_v20 = vld [vmem:[%s714_s1 + $0x50] sm:$0xff]  }
   0x6   :  { %v17_v17 = vpack.c.bf16 %v16_v16, %v15_v15  ;;  %v575_v18 = vld [vmem:[%s714_s1 + $0x40] sm:$0xff]   ;;  %v576_v19 = vld [vmem:[%s714_s1 + $0x48] sm:$0xff]   ;;  %v578_v21 = vld [vmem:[%s714_s1 + $0x58] sm:$0xff]  }
   0x7   :  { %480 = vmatpush3.bf16.msra.mxu0 %v568_v2  ;;  %516 = vmatpush3.bf16.msra.mxu1 %v568_v2  ;;  %v443_v22 = vld [vmem:[%s715_s0 + $0x19] sm:$0xff]  ;;  %v444_v23 = vld [vmem:[%s715_s0 + $0x21] sm:$0xff] }
   0x8   :  { %481 = vmatprep.subr.bf16.mxu0 %v579_v0  ;;  %517 = vmatprep.subr.bf16.mxu1 %v579_v0  ;;  %v342_v24 = vpack.c.bf16 %v444_v23, %v443_v22  ;;  %v446_v27 = vld [vmem:[%s716_s2] ss:$0 sm:$0xff] }
   0xb   :  { %482 = vmatpush3.bf16.msra.mxu0 %v569_v3  ;;  %518 = vmatpush3.bf16.msra.mxu1 %v569_v3 }
   0xc   :  { %483 = vmatprep.subr.bf16.mxu0 %v579_v0  ;;  %519 = vmatprep.subr.bf16.mxu1 %v579_v0 }
   0xf   :  { %484 = vmatpush3.bf16.msra.mxu0 %v570_v4  ;;  %520 = vmatpush3.bf16.msra.mxu1 %v570_v4 }
  0x10   :  { %489 = vmatprep.subr.bf16.mxu0 %v579_v0  ;;  %525 = vmatprep.subr.bf16.mxu1 %v579_v0 }
  0x12   :  { %486 = vmatmul.mubr.msk.bf16.vlgmr.msra.gmra.mrb[0].mxu0 %vm63_vm1, %v29_v9  ;;  %522 = vmatmul.mubr.msk.bf16.vlgmr.msra.gmra.mrb[0].mxu1 %vm63_vm1, %v178_v10 }
  0x13   :  { %490 = vmatpush3.bf16.msra.mxu0 %v571_v11  ;;  %526 = vmatpush3.bf16.msra.mxu1 %v571_v11 }
  0x14   :  { %491 = vmatprep.subr.bf16.mxu0 %v579_v0  ;;  %527 = vmatprep.subr.bf16.mxu1 %v579_v0 }
  0x15   :  { %497 = vmatprep.mubr.msk.bf16.mxu0 %vm580_vm0, %v579_v0  ;;  %533 = vmatprep.mubr.msk.bf16.mxu1 %vm580_vm0, %v579_v0 }
  0x17   :  { %492 = vmatpush3.bf16.msra.mxu0 %v572_v12  ;;  %528 = vmatpush3.bf16.msra.mxu1 %v572_v12 }
  0x18   :  { %493 = vmatprep.subr.bf16.mxu0 %v579_v0  ;;  %529 = vmatprep.subr.bf16.mxu1 %v579_v0 }
  0x1b   :  { %494 = vmatpush3.bf16.msra.mxu0 %v573_v13  ;;  %530 = vmatpush3.bf16.msra.mxu1 %v573_v13 }
  0x1c   :  { %495 = vmatprep.subr.bf16.mxu0 %v579_v0  ;;  %531 = vmatprep.subr.bf16.mxu1 %v579_v0 }
  0x1f   :  { %496 = vmatpush3.bf16.msra.mxu0 %v574_v14  ;;  %532 = vmatpush3.bf16.msra.mxu1 %v574_v14 }
  0x20   :  { %501 = vmatprep.subr.bf16.mxu0 %v579_v0  ;;  %537 = vmatprep.subr.bf16.mxu1 %v579_v0 }
  0x22   :  { %498 = vmatmul.mubr.msk.bf16.vlgmr.msra.gmra.mrb[0].mxu0 %vm63_vm1, %v17_v17  ;;  %534 = vmatmul.mubr.msk.bf16.vlgmr.msra.gmra.mrb[0].mxu1 %vm63_vm1, %v29_v9 }
  0x23   :  { %502 = vmatpush3.bf16.msra.mxu0 %v575_v18  ;;  %538 = vmatpush3.bf16.msra.mxu1 %v575_v18 }
  0x24   :  { %503 = vmatprep.subr.bf16.mxu0 %v579_v0  ;;  %539 = vmatprep.subr.bf16.mxu1 %v579_v0 }
  0x25   :  { %509 = vmatprep.mubr.msk.bf16.mxu0 %vm580_vm0, %v579_v0  ;;  %545 = vmatprep.mubr.msk.bf16.mxu1 %vm580_vm0, %v579_v0 }
  0x27   :  { %504 = vmatpush3.bf16.msra.mxu0 %v576_v19  ;;  %540 = vmatpush3.bf16.msra.mxu1 %v576_v19 }
  0x28   :  { %505 = vmatprep.subr.bf16.mxu0 %v579_v0  ;;  %541 = vmatprep.subr.bf16.mxu1 %v579_v0 }
  0x2b   :  { %506 = vmatpush3.bf16.msra.mxu0 %v577_v20  ;;  %542 = vmatpush3.bf16.msra.mxu1 %v577_v20 }
  0x2c   :  { %507 = vmatprep.subr.bf16.mxu0 %v579_v0  ;;  %543 = vmatprep.subr.bf16.mxu1 %v579_v0 }
  0x2f   :  { %508 = vmatpush3.bf16.msra.mxu0 %v578_v21  ;;  %544 = vmatpush3.bf16.msra.mxu1 %v578_v21 }
  0x32   :  { %510 = vmatmul.mubr.msk.bf16.vlgmr.msra.gmra.mrb[0].mxu0 %vm63_vm1, %v178_v10  ;;  %546 = vmatmul.mubr.msk.bf16.vlgmr.msra.gmra.mrb[0].mxu1 %vm63_vm1, %v342_v24 }
 0x105   :  { %v249_v25 = vpop.f32.mrb[0].mxu0  ;;  %v380_v26 = vpop.f32.mrb[0].mxu1 }
 0x106   :  { %v389_v28 = vmax.f32 %v249_v25, %v380_v26  ;;  %v511_v29 = vpop.f32.mrb[1].mxu0  ;;  %v547_v30 = vpop.f32.mrb[1].mxu1 }
 0x107   :  { %v252_v31 = vpop.f32.mrb[2].mxu0  ;;  %v383_v32 = vpop.f32.mrb[2].mxu1 }
 0x108   :  { %v398_v33 = vadd.f32 %v446_v27, %v389_v28  ;;  %v390_v34 = vmax.f32 %v252_v31, %v383_v32  ;;  %v512_v35 = vpop.f32.mrb[3].mxu0  ;;  %v548_v36 = vpop.f32.mrb[3].mxu1 }
 0x10a   :  { %v400_v37 = vmax.f32 %v398_v33, 0.0  ;;  %v399_v38 = vadd.f32 %v446_v27, %v390_v34 }
 0x10c   :  { %402 = vst.msk [vmem:[%s717_s3] sm:$0xff] %vm63_vm1, %v400_v37  ;;  %v401_v39 = vmax.f32 %v399_v38, 0.0 }
 0x10e   :  { %403 = vst.msk [vmem:[%s717_s3 + $0x8] sm:$0xff] %vm63_vm1, %v401_v39 }

// kernel: siamese_forward.11
= control target key start
LH: loop header
LB: loop body
LE: loop exit
PB: predicated region body
PF: predicated region fallthrough
CT: control target
= control target key end

     0   :  { %v406_v0 = vmov 0.0   ;;  %vm407_vm0 = vmmov 0   ;;  %vm212_vm1 = vcmask 1041408   ;;  %vm208_vm2 = vcmask 818176   ;;  %s511_s1 = inlined_call_operand.vmem [shape: bf16[128,100], index: 1, kind: input, shape index: {}]   ;;  %s512_s0 = inlined_call_operand.vmem [shape: f32[4,128], index: 0, kind: input, shape index: {}]   ;;  %s513_s3 = inlined_call_operand.vmem [shape: bf16[100,100], index: 3, kind: input, shape index: {}]   ;;  %s514_s2 = inlined_call_operand.vmem [shape: f32[1,100], index: 2, kind: input, shape index: {}]   ;;  %s515_s6 = inlined_call_operand.<no memory space> [shape: f32[1,1], index: 6, kind: input, shape index: {}]   ;;  %s516_s4 = inlined_call_operand.vmem [shape: f32[1,100], index: 4, kind: input, shape index: {}]   ;;  %s517_s5 = inlined_call_operand.vmem [shape: f32[1,100], index: 5, kind: input, shape index: {}]   ;;  %s518_s7 = inlined_call_operand.vmem [shape: f32[2,1], index: 7, kind: output, shape index: {}]  }
   0x1   :  { %339 = vmatprep.subr.bf16.mxu0 %v406_v0  ;;  %v379_v1 = vld [vmem:[%s511_s1] sm:$0xff]   ;;  %355 = vmatprep.mubr.msk.bf16.mxu0 %vm407_vm0, %v406_v0  ;;  %v380_v2 = vld [vmem:[%s511_s1 + $0x8] sm:$0xff]   ;;  %v381_v3 = vld [vmem:[%s511_s1 + $0x10] sm:$0xff]   ;;  %v12_v30 = vstv %s515_s6  ;;  %vm275_vm3 = vcmask 812032   ;;  %vm293_vm4 = vcmask 1024  }
   0x2   :  { %359 = vmatprep.subr.bf16.mxu1 %v406_v0  ;;  %373 = vmatprep.mubr.msk.bf16.mxu1 %vm407_vm0, %v406_v0  ;;  %v382_v4 = vld [vmem:[%s511_s1 + $0x18] sm:$0xff]   ;;  %v383_v5 = vld [vmem:[%s511_s1 + $0x20] sm:$0xff]   ;;  %v384_v6 = vld [vmem:[%s511_s1 + $0x28] sm:$0xff]   ;;  %13 = vst [vmem:[#allocation2] sm:$0x1] %v12_v30 }
   0x3   :  { %340 = vmatpush3.bf16.msra.mxu0 %v379_v1  ;;  %v385_v7 = vld [vmem:[%s511_s1 + $0x30] sm:$0xff]   ;;  %v386_v8 = vld [vmem:[%s511_s1 + $0x38] sm:$0xff]   ;;  %v29_v9 = vld [vmem:[%s512_s0] sm:$0xf] }
   0x4   :  { %341 = vmatprep.subr.bf16.mxu0 %v406_v0  ;;  %v30_v10 = vpack.c.bf16 %v29_v9, %v29_v9  ;;  %v387_v11 = vld [vmem:[%s513_s3] sm:$0xff]   ;;  %v388_v12 = vld [vmem:[%s513_s3 + $0x8] sm:$0xff]   ;;  %v389_v13 = vld [vmem:[%s513_s3 + $0x10] sm:$0xff]  }
   0x5   :  { %360 = vmatpush3.bf16.msra.mxu1 %v387_v11  ;;  %v390_v14 = vld [vmem:[%s513_s3 + $0x18] sm:$0xff]   ;;  %v391_v15 = vld [vmem:[%s513_s3 + $0x20] sm:$0xff]   ;;  %v392_v16 = vld [vmem:[%s513_s3 + $0x28] sm:$0xff]  }
   0x6   :  { %361 = vmatprep.subr.bf16.mxu1 %v406_v0  ;;  %v393_v17 = vld [vmem:[%s513_s3 + $0x30] ss:$0 sps:$4 sm:$0x33]   ;;  %v299_v19 = vld [vmem:[%s514_s2] ss:$0 sm:$0xff] }
   0x7   :  { %342 = vmatpush3.bf16.msra.mxu0 %v380_v2  ;;  %v214_v18 = vsel %vm212_vm1, %v393_v17, 0  ;;  %v309_v31 = vld [vmem:[%s516_s4] ss:$0 sm:$0xff] }
   0x8   :  { %343 = vmatprep.subr.bf16.mxu0 %v406_v0  ;;  %v319_v43 = vld [vmem:[%s517_s5] ss:$0 sm:$0xff] }
   0x9   :  { %362 = vmatpush3.bf16.msra.mxu1 %v388_v12  ;;  %v320_v47 = vld [vmem:[#allocation2] ss:$0 sm:$0xff] }
   0xa   :  { %363 = vmatprep.subr.bf16.mxu1 %v406_v0 }
   0xb   :  { %344 = vmatpush3.bf16.msra.mxu0 %v381_v3 }
   0xc   :  { %345 = vmatprep.subr.bf16.mxu0 %v406_v0 }
   0xd   :  { %364 = vmatpush3.bf16.msra.mxu1 %v389_v13 }
   0xe   :  { %365 = vmatprep.subr.bf16.mxu1 %v406_v0 }
   0xf   :  { %346 = vmatpush3.bf16.msra.mxu0 %v382_v4 }
  0x10   :  { %347 = vmatprep.subr.bf16.mxu0 %v406_v0 }
  0x11   :  { %366 = vmatpush3.bf16.msra.mxu1 %v390_v14 }
  0x12   :  { %367 = vmatprep.subr.bf16.mxu1 %v406_v0 }
  0x13   :  { %348 = vmatpush3.bf16.msra.mxu0 %v383_v5 }
  0x14   :  { %349 = vmatprep.subr.bf16.mxu0 %v406_v0 }
  0x15   :  { %368 = vmatpush3.bf16.msra.mxu1 %v391_v15 }
  0x16   :  { %369 = vmatprep.subr.bf16.mxu1 %v406_v0 }
  0x17   :  { %350 = vmatpush3.bf16.msra.mxu0 %v384_v6 }
  0x18   :  { %351 = vmatprep.subr.bf16.mxu0 %v406_v0 }
  0x19   :  { %370 = vmatpush3.bf16.msra.mxu1 %v392_v16 }
  0x1a   :  { %371 = vmatprep.subr.bf16.mxu1 %v406_v0 }
  0x1b   :  { %352 = vmatpush3.bf16.msra.mxu0 %v385_v7 }
  0x1c   :  { %353 = vmatprep.subr.bf16.mxu0 %v406_v0 }
  0x1d   :  { %372 = vmatpush3.bf16.msra.mxu1 %v214_v18 }
  0x1f   :  { %354 = vmatpush3.bf16.msra.mxu0 %v386_v8 }
  0x22   :  { %356 = vmatmul.mubr.bf16.vlgmr.msra.gmra.mrb[0].mxu0 %v30_v10 }
  0xf5   :  { %v136_v20 = vpop.f32.mrb[0].mxu0 }
  0xf6   :  { %v137_v21 = vadd.f32 %v299_v19, %v136_v20  ;;  %v357_v22 = vpop.f32.mrb[1].mxu0 }
  0xf7   :  { %v139_v23 = vpop.f32.mrb[2].mxu0 }
  0xf8   :  { %v308_v24 = vmul.f32 -1.442695, %v137_v21  ;;  %v358_v25 = vpop.f32.mrb[3].mxu0 }
  0xfa   :  { %394 = vpow2.f32 %v308_v24 }
 0x104   :  { %v395_v26 = vpop.eup %394 }
 0x105   :  { %v145_v27 = vadd.f32 1.0, %v395_v26 }
 0x107   :  { %396 = vrcp.f32 %v145_v27 }
 0x111   :  { %v397_v28 = vpop.eup %396 }
 0x112   :  { %v148_v29 = vpack.c.bf16 %v397_v28, %v397_v28 }
 0x114   :  { %374 = vmatmul.mubr.msk.bf16.vlgmr.msra.gmra.mrb[0].mxu1 %vm208_vm2, %v148_v29 }
 0x1e7   :  { %v250_v32 = vpop.f32.mrb[0].mxu1 }
 0x1e8   :  { %v251_v33 = vadd.f32 %v309_v31, %v250_v32  ;;  %v375_v34 = vpop.f32.mrb[1].mxu1 }
 0x1e9   :  { %v253_v35 = vpop.f32.mrb[2].mxu1 }
 0x1ea   :  { %v318_v36 = vmul.f32 -1.442695, %v251_v33  ;;  %v376_v37 = vpop.f32.mrb[3].mxu1 }
 0x1ec   :  { %398 = vpow2.f32 %v318_v36 }
 0x1f6   :  { %v399_v38 = vpop.eup %398 }
 0x1f7   :  { %v259_v39 = vadd.f32 1.0, %v399_v38 }
 0x1f9   :  { %400 = vrcp.f32 %v259_v39 }
 0x203   :  { %v401_v40 = vpop.eup %400 }
 0x204   :  { %v263_v41 = vrot.slane %v401_v40, 2 }
 0x206   :  { %v265_v42 = vsub.f32 %v401_v40, %v263_v41 }
 0x208   :  { %v266_v44 = vand.u32 2147483647, %v265_v42 }
 0x20a   :  { %v274_v45 = vmul.f32 %v319_v43, %v266_v44 }
 0x20c   :  { %v276_v46 = vsel %vm275_vm3, %v274_v45, 0.0 }
 0x20d   :  { %277 = vadd.xlane.f32.xlu0 %v276_v46 }
 0x29a   :  { %v278_v48 = vpop.xlane.xlu0 %277 }
 0x29b   :  { %v286_v49 = vadd.f32 %v320_v47, %v278_v48 }
 0x29d   :  { %v321_v50 = vmul.f32 -1.442695, %v286_v49 }
 0x29f   :  { %402 = vpow2.f32 %v321_v50 }
 0x2a9   :  { %v403_v51 = vpop.eup %402 }
 0x2aa   :  { %v290_v52 = vadd.f32 1.0, %v403_v51 }
 0x2ac   :  { %404 = vrcp.f32 %v290_v52 }
 0x2b6   :  { %v405_v53 = vpop.eup %404 }
 0x2b7   :  { %294 = vst.msk [vmem:[%s518_s7] sm:$0x3] %vm293_vm4, %v405_v53 }

// kernel: siamese_forward.6
= control target key start
LH: loop header
LB: loop body
LE: loop exit
PB: predicated region body
PF: predicated region fallthrough
CT: control target
= control target key end

     0   :  { %vm159_vm0 = vcmask 130048   ;;  %vm7400_vm1 = vcmask 113664   ;;  %s14009_s1 = inlined_call_operand.vmem [shape: bf16[8,16,14], index: 1, kind: input, shape index: {}]   ;;  %s14010_s0 = inlined_call_operand.vmem [shape: f32[3,355,16], index: 0, kind: input, shape index: {}]   ;;  %s14011_s2 = inlined_call_operand.vmem [shape: f32[1,14], index: 2, kind: input, shape index: {}]   ;;  %s14012_s3 = inlined_call_operand.vmem [shape: f32[352,14], index: 3, kind: output, shape index: {}]  }
   0x1   :  { %v10883_v0 = vld [vmem:[%s14009_s1 + $0x8] sm:$0xff]   ;;  %v10845_v1 = vld [vmem:[%s14009_s1 + $0x20] sm:$0xff]   ;;  %v7450_v3 = vld [vmem:[%s14010_s0 + $0x170] sm:$0xff] }
   0x2   :  { %8816 = vmatprep.subr.bf16.mxu1 %v10883_v0  ;;  %v7449_v2 = vld [vmem:[%s14010_s0 + $0x168] sm:$0xff]  ;;  %9000 = vmatprep.subr.bf16.mxu0 %v10845_v1  ;;  %v7636_v6 = vld [vmem:[%s14010_s0 + $0x171] sm:$0xff]  ;;  %v7452_v8 = vld [vmem:[%s14010_s0 + $0x180] sm:$0xff] }
   0x3   :  { %v7635_v4 = vld [vmem:[%s14010_s0 + $0x169] sm:$0xff]  ;;  %8817 = vmatpush3.bf16.msra.mxu1 %v10883_v0  ;;  %v10899_v5 = vpack.c.bf16 %v7450_v3, %v7449_v2  ;;  %v7451_v7 = vld [vmem:[%s14010_s0 + $0x178] sm:$0xff]  ;;  %9001 = vmatpush3.bf16.msra.mxu0 %v10845_v1  ;;  %v10846_v11 = vld [vmem:[%s14009_s1] sm:$0xff]  }
   0x4   :  { %v10910_v9 = vpack.c.bf16 %v7636_v6, %v7635_v4  ;;  %v10912_v10 = vpack.c.bf16 %v7452_v8, %v7451_v7  ;;  %v7637_v12 = vld [vmem:[%s14010_s0 + $0x179] sm:$0xff]  ;;  %v7638_v13 = vld [vmem:[%s14010_s0 + $0x181] sm:$0xff]  ;;  %8862 = vmatprep.subr.bf16.mxu1 %v10846_v11  ;;  %v7454_v17 = vld [vmem:[%s14010_s0 + $0x190] sm:$0xff] }
   0x5   :  { %8818 = vmatprep.mubr.msk.bf16.mxu1 %vm159_vm0, %v10899_v5  ;;  %v10929_v14 = vpack.c.bf16 %v7638_v13, %v7637_v12  ;;  %v10847_v15 = vld [vmem:[%s14009_s1 + $0x28] sm:$0xff]   ;;  %v7640_v19 = vld [vmem:[%s14010_s0 + $0x191] sm:$0xff]  ;;  %v7456_v23 = vld [vmem:[%s14010_s0 + $0x1a0] sm:$0xff] }
   0x6   :  { %14195 = vst [vmem:[#allocation2_spill] sm:$0xff] %v10910_v9  ;;  %9002 = vmatprep.mubr.msk.bf16.mxu0 %vm159_vm0, %v10910_v9  ;;  %8819 = vmatmul.mubr.msk.bf16.vlgmr.msra.gmra.mrb[0].mxu1 %vm159_vm0, %v10912_v10  ;;  %v7453_v16 = vld [vmem:[%s14010_s0 + $0x188] sm:$0xff]  ;;  %v7455_v22 = vld [vmem:[%s14010_s0 + $0x198] sm:$0xff]  ;;  %v7458_v27 = vld [vmem:[%s14010_s0 + $0x1b0] sm:$0xff] }
   0x7   :  { %14196 = vst [vmem:[#allocation3_spill] sm:$0xff] %v10929_v14  ;;  %v7639_v18 = vld [vmem:[%s14010_s0 + $0x189] sm:$0xff]  ;;  %9003 = vmatmul.mubr.msk.bf16.vlgmr.msra.gmra.mrb[0].mxu0 %vm159_vm0, %v10929_v14  ;;  %8863 = vmatpush3.bf16.msra.mxu1 %v10846_v11  ;;  %v10948_v20 = vpack.c.bf16 %v7454_v17, %v7453_v16  ;;  %v7641_v24 = vld [vmem:[%s14010_s0 + $0x199] sm:$0xff]  ;;  %v7642_v25 = vld [vmem:[%s14010_s0 + $0x1a1] sm:$0xff]  ;;  %v10972_v28 = vpack.c.bf16 %v7456_v23, %v7455_v22 }
   0x8   :  { %v10950_v21 = vpack.c.bf16 %v7640_v19, %v7639_v18  ;;  %9046 = vmatprep.subr.bf16.mxu0 %v10847_v15  ;;  %v7457_v26 = vld [vmem:[%s14010_s0 + $0x1a8] sm:$0xff]  ;;  %v7644_v30 = vld [vmem:[%s14010_s0 + $0x1b1] sm:$0xff]  ;;  %v10984_v32 = vpack.c.bf16 %v7642_v25, %v7641_v24  ;;  %v7460_v35 = vld [vmem:[%s14010_s0 + $0x1c0] sm:$0xff] }
   0x9   :  { %9047 = vmatpush3.bf16.msra.mxu0 %v10847_v15  ;;  %8822 = vmatprep.mubr.msk.bf16.mxu1 %vm159_vm0, %v10948_v20  ;;  %v7643_v29 = vld [vmem:[%s14010_s0 + $0x1a9] sm:$0xff]  ;;  %v10982_v31 = vpack.c.bf16 %v7458_v27, %v7457_v26  ;;  %v7459_v34 = vld [vmem:[%s14010_s0 + $0x1b8] sm:$0xff]  ;;  %v7646_v39 = vld [vmem:[%s14010_s0 + $0x1c1] sm:$0xff] }
   0xa   :  { %14197 = vst [vmem:[#allocation4_spill] sm:$0xff] %v10950_v21  ;;  %9006 = vmatprep.mubr.msk.bf16.mxu0 %vm159_vm0, %v10950_v21  ;;  %14198 = vst [vmem:[#allocation5_spill] sm:$0xff] %v10984_v32  ;;  %v10986_v33 = vpack.c.bf16 %v7644_v30, %v7643_v29  ;;  %v7461_v36 = vld [vmem:[%s14010_s0 + $0x1c8] sm:$0xff]  ;;  %v7462_v37 = vld [vmem:[%s14010_s0 + $0x1d0] sm:$0xff]  ;;  %v11014_v40 = vpack.c.bf16 %v7460_v35, %v7459_v34 }
   0xb   :  { %v7645_v38 = vld [vmem:[%s14010_s0 + $0x1b9] sm:$0xff]  ;;  %v7647_v41 = vld [vmem:[%s14010_s0 + $0x1c9] sm:$0xff]  ;;  %v7648_v42 = vld [vmem:[%s14010_s0 + $0x1d1] sm:$0xff]  ;;  %v11022_v43 = vpack.c.bf16 %v7462_v37, %v7461_v36 }
   0xc   :  { %14199 = vst [vmem:[#allocation6_spill] sm:$0xff] %v10986_v33  ;;  %v11024_v44 = vpack.c.bf16 %v7646_v39, %v7645_v38  ;;  %v11026_v45 = vpack.c.bf16 %v7648_v42, %v7647_v41  ;;  %v7463_v46 = vld [vmem:[%s14010_s0 + $0x1d8] sm:$0xff]  ;;  %v7464_v47 = vld [vmem:[%s14010_s0 + $0x1e0] sm:$0xff]  ;;  %v7465_v48 = vld [vmem:[%s14010_s0 + $0x1e8] sm:$0xff] }
   0xd   :  { %v7466_v49 = vld [vmem:[%s14010_s0 + $0x1f0] sm:$0xff]  ;;  %v7649_v50 = vld [vmem:[%s14010_s0 + $0x1d9] sm:$0xff]  ;;  %v7650_v51 = vld [vmem:[%s14010_s0 + $0x1e1] sm:$0xff]  ;;  %v11054_v52 = vpack.c.bf16 %v7464_v47, %v7463_v46 }
   0xe   :  { %8823 = vmatmul.mubr.msk.bf16.gmra.mrb[4].mxu1 %vm159_vm0, %v10972_v28  ;;  %14200 = vst [vmem:[#allocation7_spill] sm:$0xff] %v11024_v44  ;;  %14201 = vst [vmem:[#allocation8_spill] sm:$0xff] %v11026_v45  ;;  %v7651_v53 = vld [vmem:[%s14010_s0 + $0x1e9] sm:$0xff]  ;;  %v7652_v54 = vld [vmem:[%s14010_s0 + $0x1f1] sm:$0xff]  ;;  %v11062_v55 = vpack.c.bf16 %v7466_v49, %v7465_v48  ;;  %v11064_v56 = vpack.c.bf16 %v7650_v51, %v7649_v50 }
   0xf   :  { %8826 = vmatprep.mubr.msk.bf16.mxu1 %vm159_vm0, %v10982_v31  ;;  %9007 = vmatmul.mubr.msk.bf16.gmra.mrb[4].mxu0 %vm159_vm0, %v10984_v32  ;;  %v11066_v57 = vpack.c.bf16 %v7652_v54, %v7651_v53  ;;  %v7467_v58 = vld [vmem:[%s14010_s0 + $0x1f8] sm:$0xff]  ;;  %v7468_v59 = vld [vmem:[%s14010_s0 + $0x200] sm:$0xff]  ;;  %v7469_v60 = vld [vmem:[%s14010_s0 + $0x208] sm:$0xff] }
  0x10   :  { %9010 = vmatprep.mubr.msk.bf16.mxu0 %vm159_vm0, %v10986_v33  ;;  %14202 = vst [vmem:[#allocation9_spill] sm:$0xff] %v11064_v56  ;;  %v7470_v61 = vld [vmem:[%s14010_s0 + $0x210] sm:$0xff]  ;;  %v7653_v62 = vld [vmem:[%s14010_s0 + $0x1f9] sm:$0xff]  ;;  %v7654_v63 = vld [vmem:[%s14010_s0 + $0x201] sm:$0xff]  ;;  %v11094_v1 = vpack.c.bf16 %v7468_v59, %v7467_v58 }
  0x11   :  { %14203 = vst [vmem:[#allocation10_spill] sm:$0xff] %v11066_v57  ;;  %v7655_v2 = vld [vmem:[%s14010_s0 + $0x209] sm:$0xff]  ;;  %v7656_v3 = vld [vmem:[%s14010_s0 + $0x211] sm:$0xff]  ;;  %v11102_v4 = vpack.c.bf16 %v7470_v61, %v7469_v60  ;;  %v11104_v6 = vpack.c.bf16 %v7654_v63, %v7653_v62  ;;  %v7472_v13 = vld [vmem:[%s14010_s0 + $0x220] sm:$0xff] }
  0x12   :  { %v11109_v7 = vld [vmem:[%s14009_s1 + $0x10] sm:$0xff]   ;;  %v11111_v8 = vpack.c.bf16 %v7656_v3, %v7655_v2  ;;  %v7471_v12 = vld [vmem:[%s14010_s0 + $0x218] sm:$0xff]  ;;  %v7473_v15 = vld [vmem:[%s14010_s0 + $0x228] sm:$0xff] }
  0x13   :  { %14204 = vst [vmem:[#allocation11_spill] sm:$0xff] %v11102_v4  ;;  %14205 = vst [vmem:[#allocation12_spill] sm:$0xff] %v11104_v6  ;;  %v11116_v11 = vld [vmem:[%s14009_s1 + $0x30] sm:$0xff]   ;;  %8908 = vmatprep.subr.bf16.mxu1 %v11109_v7  ;;  %v7657_v17 = vld [vmem:[%s14010_s0 + $0x219] sm:$0xff]  ;;  %v11146_v19 = vpack.c.bf16 %v7472_v13, %v7471_v12 }
  0x14   :  { %14206 = vst [vmem:[#allocation13_spill] sm:$0xff] %v11111_v8  ;;  %9092 = vmatprep.subr.bf16.mxu0 %v11116_v11  ;;  %v7474_v16 = vld [vmem:[%s14010_s0 + $0x230] sm:$0xff]  ;;  %v7658_v18 = vld [vmem:[%s14010_s0 + $0x221] sm:$0xff]  ;;  %v7475_v27 = vld [vmem:[%s14010_s0 + $0x238] sm:$0xff] }
  0x15   :  { %14207 = vst [vmem:[#allocation14_spill] sm:$0xff] %v11146_v19  ;;  %v7659_v22 = vld [vmem:[%s14010_s0 + $0x229] sm:$0xff]  ;;  %v7660_v23 = vld [vmem:[%s14010_s0 + $0x231] sm:$0xff]  ;;  %v11154_v24 = vpack.c.bf16 %v7474_v16, %v7473_v15  ;;  %v11156_v25 = vpack.c.bf16 %v7658_v18, %v7657_v17  ;;  %v7476_v29 = vld [vmem:[%s14010_s0 + $0x240] sm:$0xff] }
  0x16   :  { %8827 = vmatmul.mubr.msk.bf16.gmra.mrb[8].mxu1 %vm159_vm0, %v11014_v40  ;;  %v11158_v26 = vpack.c.bf16 %v7660_v23, %v7659_v22  ;;  %v7477_v30 = vld [vmem:[%s14010_s0 + $0x248] sm:$0xff]  ;;  %v7478_v34 = vld [vmem:[%s14010_s0 + $0x250] sm:$0xff]  ;;  %v7661_v35 = vld [vmem:[%s14010_s0 + $0x239] sm:$0xff]  ;;  %v11186_v37 = vpack.c.bf16 %v7476_v29, %v7475_v27 }
  0x17   :  { %8830 = vmatprep.mubr.msk.bf16.mxu1 %vm159_vm0, %v11022_v43  ;;  %9011 = vmatmul.mubr.msk.bf16.gmra.mrb[8].mxu0 %vm159_vm0, %v11024_v44  ;;  %14208 = vst [vmem:[#allocation15_spill] sm:$0xff] %v11154_v24  ;;  %14209 = vst [vmem:[#allocation16_spill] sm:$0xff] %v11156_v25  ;;  %v7662_v36 = vld [vmem:[%s14010_s0 + $0x241] sm:$0xff]  ;;  %v7663_v38 = vld [vmem:[%s14010_s0 + $0x249] sm:$0xff]  ;;  %v11194_v41 = vpack.c.bf16 %v7478_v34, %v7477_v30 }
  0x18   :  { %9014 = vmatprep.mubr.msk.bf16.mxu0 %vm159_vm0, %v11026_v45  ;;  %14210 = vst [vmem:[#allocation17_spill] sm:$0xff] %v11158_v26  ;;  %14211 = vst [vmem:[#allocation18_spill] sm:$0xff] %v11186_v37  ;;  %v7664_v39 = vld [vmem:[%s14010_s0 + $0x251] sm:$0xff]  ;;  %v11196_v42 = vpack.c.bf16 %v7662_v36, %v7661_v35  ;;  %v7480_v48 = vld [vmem:[%s14010_s0 + $0x260] sm:$0xff] }
  0x19   :  { %14212 = vst [vmem:[#allocation19_spill] sm:$0xff] %v11194_v41  ;;  %v11198_v46 = vpack.c.bf16 %v7664_v39, %v7663_v38  ;;  %v7479_v47 = vld [vmem:[%s14010_s0 + $0x258] sm:$0xff]  ;;  %v7481_v49 = vld [vmem:[%s14010_s0 + $0x268] sm:$0xff]  ;;  %v7482_v50 = vld [vmem:[%s14010_s0 + $0x270] sm:$0xff] }
  0x1a   :  { %14213 = vst [vmem:[#allocation20_spill] sm:$0xff] %v11196_v42  ;;  %v7665_v51 = vld [vmem:[%s14010_s0 + $0x259] sm:$0xff]  ;;  %v7666_v53 = vld [vmem:[%s14010_s0 + $0x261] sm:$0xff]  ;;  %v11226_v54 = vpack.c.bf16 %v7480_v48, %v7479_v47  ;;  %v7667_v58 = vld [vmem:[%s14010_s0 + $0x269] sm:$0xff]  ;;  %v11234_v60 = vpack.c.bf16 %v7482_v50, %v7481_v49 }
  0x1b   :  { %14214 = vst [vmem:[#allocation21_spill] sm:$0xff] %v11198_v46  ;;  %v7668_v59 = vld [vmem:[%s14010_s0 + $0x271] sm:$0xff]  ;;  %v11236_v61 = vpack.c.bf16 %v7666_v53, %v7665_v51  ;;  %v7484_v2 = vld [vmem:[%s14010_s0 + $0x280] sm:$0xff]  ;;  %v7485_v3 = vld [vmem:[%s14010_s0 + $0x288] sm:$0xff] }
  0x1c   :  { %14215 = vst [vmem:[#allocation22_spill] sm:$0xff] %v11226_v54  ;;  %14216 = vst [vmem:[#allocation23_spill] sm:$0xff] %v11234_v60  ;;  %v11238_v62 = vpack.c.bf16 %v7668_v59, %v7667_v58  ;;  %v7483_v63 = vld [vmem:[%s14010_s0 + $0x278] sm:$0xff]  ;;  %v7486_v12 = vld [vmem:[%s14010_s0 + $0x290] sm:$0xff] }
  0x1d   :  { %14217 = vst [vmem:[#allocation24_spill] sm:$0xff] %v11236_v61  ;;  %v7669_v13 = vld [vmem:[%s14010_s0 + $0x279] sm:$0xff]  ;;  %v7670_v15 = vld [vmem:[%s14010_s0 + $0x281] sm:$0xff]  ;;  %v11266_v16 = vpack.c.bf16 %v7484_v2, %v7483_v63  ;;  %v7671_v17 = vld [vmem:[%s14010_s0 + $0x289] sm:$0xff]  ;;  %v11274_v22 = vpack.c.bf16 %v7486_v12, %v7485_v3 }
  0x1e   :  { %8831 = vmatmul.mubr.msk.bf16.gmra.mrb[12].mxu1 %vm159_vm0, %v11054_v52  ;;  %14218 = vst [vmem:[#allocation25_spill] sm:$0xff] %v11238_v62  ;;  %v7672_v18 = vld [vmem:[%s14010_s0 + $0x291] sm:$0xff]  ;;  %v11276_v23 = vpack.c.bf16 %v7670_v15, %v7669_v13  ;;  %v7488_v30 = vld [vmem:[%s14010_s0 + $0x2a0] sm:$0xff]  ;;  %v7489_v34 = vld [vmem:[%s14010_s0 + $0x2a8] sm:$0xff] }
  0x1f   :  { %8834 = vmatprep.mubr.msk.bf16.mxu1 %vm159_vm0, %v11062_v55  ;;  %9015 = vmatmul.mubr.msk.bf16.gmra.mrb[12].mxu0 %vm159_vm0, %v11064_v56  ;;  %14219 = vst [vmem:[#allocation26_spill] sm:$0xff] %v11266_v16  ;;  %14220 = vst [vmem:[#allocation27_spill] sm:$0xff] %v11274_v22  ;;  %v11278_v27 = vpack.c.bf16 %v7672_v18, %v7671_v17  ;;  %v7487_v29 = vld [vmem:[%s14010_s0 + $0x298] sm:$0xff]  ;;  %v7490_v35 = vld [vmem:[%s14010_s0 + $0x2b0] sm:$0xff] }
  0x20   :  { %9018 = vmatprep.mubr.msk.bf16.mxu0 %vm159_vm0, %v11066_v57  ;;  %14221 = vst [vmem:[#allocation28_spill] sm:$0xff] %v11276_v23  ;;  %v7673_v36 = vld [vmem:[%s14010_s0 + $0x299] sm:$0xff]  ;;  %v7674_v38 = vld [vmem:[%s14010_s0 + $0x2a1] sm:$0xff]  ;;  %v11306_v39 = vpack.c.bf16 %v7488_v30, %v7487_v29  ;;  %v7675_v47 = vld [vmem:[%s14010_s0 + $0x2a9] sm:$0xff]  ;;  %v11314_v49 = vpack.c.bf16 %v7490_v35, %v7489_v34 }
  0x21   :  { %14222 = vst [vmem:[#allocation29_spill] sm:$0xff] %v11278_v27  ;;  %v7676_v48 = vld [vmem:[%s14010_s0 + $0x2b1] sm:$0xff]  ;;  %v11316_v50 = vpack.c.bf16 %v7674_v38, %v7673_v36  ;;  %v7492_v58 = vld [vmem:[%s14010_s0 + $0x2c0] sm:$0xff]  ;;  %v16_v63 = vld [vmem:[%s14010_s0 + $0x8] sm:$0xff] }
  0x22   :  { %14223 = vst [vmem:[#allocation30_spill] sm:$0xff] %v11306_v39  ;;  %14224 = vst [vmem:[#allocation31_spill] sm:$0xff] %v11314_v49  ;;  %v11318_v51 = vpack.c.bf16 %v7676_v48, %v7675_v47  ;;  %v7491_v53 = vld [vmem:[%s14010_s0 + $0x2b8] sm:$0xff]  ;;  %v15_v59 = vld [vmem:[%s14010_s0] sm:$0xff] }
  0x23   :  { %14225 = vst [vmem:[#allocation32_spill] sm:$0xff] %v11316_v50  ;;  %v7677_v2 = vld [vmem:[%s14010_s0 + $0x2b9] sm:$0xff]  ;;  %v7678_v3 = vld [vmem:[%s14010_s0 + $0x2c1] sm:$0xff]  ;;  %v11346_v12 = vpack.c.bf16 %v7492_v58, %v7491_v53  ;;  %v7704_v13 = vld [vmem:[%s14010_s0 + $0x2d1] sm:$0xff]  ;;  %v59_v17 = vpack.c.bf16 %v16_v63, %v15_v59 }
  0x24   :  { %14226 = vst [vmem:[#allocation33_spill] sm:$0xff] %v11318_v51  ;;  %v7705_v15 = vld [vmem:[%s14010_s0 + $0x2d9] sm:$0xff]  ;;  %v11354_v18 = vpack.c.bf16 %v7678_v3, %v7677_v2  ;;  %v17_v30 = vld [vmem:[%s14010_s0 + $0x10] sm:$0xff]  ;;  %v20_v36 = vld [vmem:[%s14010_s0 + $0x28] sm:$0xff] }
  0x25   :  { %14227 = vst [vmem:[#allocation34_spill] sm:$0xff] %v11346_v12  ;;  %v11356_v29 = vpack.c.bf16 %v7705_v15, %v7704_v13  ;;  %v18_v34 = vld [vmem:[%s14010_s0 + $0x18] sm:$0xff]  ;;  %v19_v35 = vld [vmem:[%s14010_s0 + $0x20] sm:$0xff]  ;;  %v7707_v47 = vld [vmem:[%s14010_s0 + $0x2e9] sm:$0xff] }
  0x26   :  { %8835 = vmatmul.mubr.msk.bf16.gmra.mrb[16].mxu1 %vm159_vm0, %v11094_v1  ;;  %14228 = vst [vmem:[#allocation35_spill] sm:$0xff] %v11354_v18  ;;  %v7706_v38 = vld [vmem:[%s14010_s0 + $0x2e1] sm:$0xff]  ;;  %v60_v48 = vpack.c.bf16 %v18_v34, %v17_v30  ;;  %v7708_v53 = vld [vmem:[%s14010_s0 + $0x2f1] sm:$0xff]  ;;  %v7709_v58 = vld [vmem:[%s14010_s0 + $0x2f9] sm:$0xff]  ;;  %v61_v59 = vpack.c.bf16 %v20_v36, %v19_v35 }
  0x27   :  { %8838 = vmatprep.mubr.msk.bf16.mxu1 %vm159_vm0, %v11102_v4  ;;  %9019 = vmatmul.mubr.msk.bf16.gmra.mrb[16].mxu0 %vm159_vm0, %v11104_v6  ;;  %14229 = vst [vmem:[#allocation36_spill] sm:$0xff] %v11356_v29  ;;  %v11389_v63 = vpack.c.bf16 %v7707_v47, %v7706_v38  ;;  %v11394_v2 = vld [vmem:[%s14009_s1 + $0x18] sm:$0xff]   ;;  %v11396_v3 = vpack.c.bf16 %v7709_v58, %v7708_v53  ;;  %v21_v15 = vld [vmem:[%s14010_s0 + $0x30] sm:$0xff]  ;;  %v23_v30 = vld [vmem:[%s14010_s0 + $0x40] sm:$0xff] }
  0x28   :  { %9022 = vmatprep.mubr.msk.bf16.mxu0 %vm159_vm0, %v11111_v8  ;;  %v11402_v13 = vld [vmem:[%s14009_s1 + $0x38] sm:$0xff]   ;;  %v7710_v34 = vld [vmem:[%s14010_s0 + $0x301] sm:$0xff]  ;;  %v7711_v35 = vld [vmem:[%s14010_s0 + $0x309] sm:$0xff] }
  0x29   :  { %14230 = vst [vmem:[#allocation37_spill] sm:$0xff] %v11389_v63  ;;  %14231 = vst [vmem:[#allocation38_spill] sm:$0xff] %v11396_v3  ;;  %v7712_v38 = vld [vmem:[%s14010_s0 + $0x311] sm:$0xff] }
  0x2a   :  { %v25_v58 = vld [vmem:[%s14010_s0 + $0x50] sm:$0xff] }
  0x2b   :  { %v7806_v45 = vld [vmem:[%s14010_s0 + $0x1aa] sm:$0xff] }
  0x2e   :  { %8839 = vmatmul.mubr.msk.bf16.gmra.mrb[20].mxu1 %vm159_vm0, %v11146_v19 }
  0x2f   :  { %8842 = vmatprep.mubr.msk.bf16.mxu1 %vm159_vm0, %v11154_v24  ;;  %9023 = vmatmul.mubr.msk.bf16.gmra.mrb[20].mxu0 %vm159_vm0, %v11156_v25 }
  0x30   :  { %9026 = vmatprep.mubr.msk.bf16.mxu0 %vm159_vm0, %v11158_v26 }
  0x36   :  { %8843 = vmatmul.mubr.msk.bf16.gmra.mrb[24].mxu1 %vm159_vm0, %v11186_v37 }
  0x37   :  { %8846 = vmatprep.mubr.msk.bf16.mxu1 %vm159_vm0, %v11194_v41  ;;  %9027 = vmatmul.mubr.msk.bf16.gmra.mrb[24].mxu0 %vm159_vm0, %v11196_v42 }
  0x38   :  { %9030 = vmatprep.mubr.msk.bf16.mxu0 %vm159_vm0, %v11198_v46 }
  0x3e   :  { %8847 = vmatmul.mubr.msk.bf16.gmra.mrb[28].mxu1 %vm159_vm0, %v11226_v54 }
  0x3f   :  { %8850 = vmatprep.mubr.msk.bf16.mxu1 %vm159_vm0, %v11234_v60  ;;  %9031 = vmatmul.mubr.msk.bf16.gmra.mrb[28].mxu0 %vm159_vm0, %v11236_v61 }
  0x40   :  { %9034 = vmatprep.mubr.msk.bf16.mxu0 %vm159_vm0, %v11238_v62 }
  0x46   :  { %8851 = vmatmul.mubr.msk.bf16.gmra.mrb[32].mxu1 %vm159_vm0, %v11266_v16 }
  0x47   :  { %8854 = vmatprep.mubr.msk.bf16.mxu1 %vm159_vm0, %v11274_v22  ;;  %9035 = vmatmul.mubr.msk.bf16.gmra.mrb[32].mxu0 %vm159_vm0, %v11276_v23 }
  0x48   :  { %9038 = vmatprep.mubr.msk.bf16.mxu0 %vm159_vm0, %v11278_v27 }
  0x4e   :  { %8855 = vmatmul.mubr.msk.bf16.gmra.mrb[36].mxu1 %vm159_vm0, %v11306_v39 }
  0x4f   :  { %8858 = vmatprep.mubr.msk.bf16.mxu1 %vm159_vm0, %v11314_v49  ;;  %9039 = vmatmul.mubr.msk.bf16.gmra.mrb[36].mxu0 %vm159_vm0, %v11316_v50 }
  0x50   :  { %9042 = vmatprep.mubr.msk.bf16.mxu0 %vm159_vm0, %v11318_v51 }
  0x56   :  { %8859 = vmatmul.mubr.msk.bf16.gmra.mrb[40].mxu1 %vm159_vm0, %v11346_v12 }
  0x57   :  { %8864 = vmatprep.mubr.msk.bf16.mxu1 %vm159_vm0, %v59_v17  ;;  %9043 = vmatmul.mubr.msk.bf16.gmra.mrb[40].mxu0 %vm159_vm0, %v11354_v18  ;;  %v22_v17 = vld [vmem:[%s14010_s0 + $0x38] sm:$0xff] }
  0x58   :  { %9048 = vmatprep.mubr.msk.bf16.mxu0 %vm159_vm0, %v11356_v29  ;;  %v62_v36 = vpack.c.bf16 %v22_v17, %v21_v15  ;;  %v27_v15 = vld [vmem:[%s14010_s0 + $0x60] sm:$0xff]  ;;  %v28_v17 = vld [vmem:[%s14010_s0 + $0x68] sm:$0xff] }
  0x5e   :  { %8865 = vmatmul.mubr.msk.bf16.vlgmr.msra.gmra.mrb[0].mxu1 %vm159_vm0, %v60_v48  ;;  %v11437_v48 = vpack.c.bf16 %v7711_v35, %v7710_v34  ;;  %v7716_v35 = vld [vmem:[%s14010_s0 + $0x331] sm:$0xff] }
  0x5f   :  { %8909 = vmatpush3.bf16.msra.mxu1 %v11109_v7  ;;  %8868 = vmatprep.mubr.msk.bf16.mxu1 %vm159_vm0, %v61_v59  ;;  %v24_v7 = vld [vmem:[%s14010_s0 + $0x48] sm:$0xff]  ;;  %v26_v59 = vld [vmem:[%s14010_s0 + $0x58] sm:$0xff] }
  0x60   :  { %9049 = vmatmul.mubr.msk.bf16.vlgmr.msra.gmra.mrb[0].mxu0 %vm159_vm0, %v11389_v63  ;;  %8954 = vmatprep.subr.bf16.mxu1 %v11394_v2  ;;  %v63_v47 = vpack.c.bf16 %v24_v7, %v23_v30  ;;  %14232 = vst [vmem:[#allocation39_spill] sm:$0xff] %v11437_v48  ;;  %v7714_v30 = vld [vmem:[%s14010_s0 + $0x321] sm:$0xff]  ;;  %v7715_v7 = vld [vmem:[%s14010_s0 + $0x329] sm:$0xff]  ;;  %v64_v34 = vpack.c.bf16 %v26_v59, %v25_v58  ;;  %v30_v59 = vld [vmem:[%s14010_s0 + $0x78] sm:$0xff] }
  0x61   :  { %9093 = vmatpush3.bf16.msra.mxu0 %v11116_v11  ;;  %9052 = vmatprep.mubr.msk.bf16.mxu0 %vm159_vm0, %v11396_v3  ;;  %v7713_v11 = vld [vmem:[%s14010_s0 + $0x319] sm:$0xff]  ;;  %v29_v58 = vld [vmem:[%s14010_s0 + $0x70] sm:$0xff] }
  0x62   :  { %9138 = vmatprep.subr.bf16.mxu0 %v11402_v13  ;;  %v11439_v53 = vpack.c.bf16 %v7713_v11, %v7712_v38  ;;  %v65_v38 = vpack.c.bf16 %v28_v17, %v27_v15  ;;  %v11471_v11 = vpack.c.bf16 %v7715_v7, %v7714_v30  ;;  %v31_v15 = vld [vmem:[%s14010_s0 + $0x80] sm:$0xff]  ;;  %v32_v17 = vld [vmem:[%s14010_s0 + $0x88] sm:$0xff] }
  0x63   :  { %v7718_v30 = vld [vmem:[%s14010_s0 + $0x341] sm:$0xff]  ;;  %v7719_v7 = vld [vmem:[%s14010_s0 + $0x349] sm:$0xff] }
  0x64   :  { %14233 = vst [vmem:[#allocation40_spill] sm:$0xff] %v11439_v53  ;;  %14234 = vst [vmem:[#allocation41_spill] sm:$0xff] %v11471_v11 }
  0x66   :  { %8869 = vmatmul.mubr.msk.bf16.gmra.mrb[4].mxu1 %vm159_vm0, %v62_v36  ;;  %v7717_v36 = vld [vmem:[%s14010_s0 + $0x339] sm:$0xff] }
  0x67   :  { %8872 = vmatprep.mubr.msk.bf16.mxu1 %vm159_vm0, %v63_v47  ;;  %v11473_v47 = vpack.c.bf16 %v7717_v36, %v7716_v35  ;;  %v7720_v35 = vld [vmem:[%s14010_s0 + $0x351] sm:$0xff]  ;;  %v7721_v36 = vld [vmem:[%s14010_s0 + $0x359] sm:$0xff] }
  0x68   :  { %9053 = vmatmul.mubr.msk.bf16.gmra.mrb[4].mxu0 %vm159_vm0, %v11437_v48 }
  0x69   :  { %9056 = vmatprep.mubr.msk.bf16.mxu0 %vm159_vm0, %v11439_v53  ;;  %14235 = vst [vmem:[#allocation42_spill] sm:$0xff] %v11473_v47 }
  0x6e   :  { %8873 = vmatmul.mubr.msk.bf16.gmra.mrb[8].mxu1 %vm159_vm0, %v64_v34  ;;  %v66_v34 = vpack.c.bf16 %v30_v59, %v29_v58  ;;  %v33_v58 = vld [vmem:[%s14010_s0 + $0x90] sm:$0xff]  ;;  %v34_v59 = vld [vmem:[%s14010_s0 + $0x98] sm:$0xff] }
  0x6f   :  { %8876 = vmatprep.mubr.msk.bf16.mxu1 %vm159_vm0, %v65_v38  ;;  %v67_v38 = vpack.c.bf16 %v32_v17, %v31_v15  ;;  %v35_v15 = vld [vmem:[%s14010_s0 + $0xa0] sm:$0xff]  ;;  %v36_v17 = vld [vmem:[%s14010_s0 + $0xa8] sm:$0xff] }
  0x70   :  { %9057 = vmatmul.mubr.msk.bf16.gmra.mrb[8].mxu0 %vm159_vm0, %v11471_v11  ;;  %v11505_v11 = vpack.c.bf16 %v7719_v7, %v7718_v30  ;;  %v7722_v30 = vld [vmem:[%s14010_s0 + $0x361] sm:$0xff]  ;;  %v7723_v7 = vld [vmem:[%s14010_s0 + $0x369] sm:$0xff] }
  0x71   :  { %9060 = vmatprep.mubr.msk.bf16.mxu0 %vm159_vm0, %v11473_v47  ;;  %v11507_v47 = vpack.c.bf16 %v7721_v36, %v7720_v35  ;;  %v7724_v35 = vld [vmem:[%s14010_s0 + $0x371] sm:$0xff]  ;;  %v7725_v36 = vld [vmem:[%s14010_s0 + $0x379] sm:$0xff] }
  0x72   :  { %14236 = vst [vmem:[#allocation43_spill] sm:$0xff] %v11505_v11 }
  0x73   :  { %14237 = vst [vmem:[#allocation44_spill] sm:$0xff] %v11507_v47 }
  0x76   :  { %8877 = vmatmul.mubr.msk.bf16.gmra.mrb[12].mxu1 %vm159_vm0, %v66_v34  ;;  %v68_v34 = vpack.c.bf16 %v34_v59, %v33_v58  ;;  %v37_v58 = vld [vmem:[%s14010_s0 + $0xb0] sm:$0xff]  ;;  %v38_v59 = vld [vmem:[%s14010_s0 + $0xb8] sm:$0xff] }
  0x77   :  { %8880 = vmatprep.mubr.msk.bf16.mxu1 %vm159_vm0, %v67_v38  ;;  %v69_v38 = vpack.c.bf16 %v36_v17, %v35_v15  ;;  %v39_v15 = vld [vmem:[%s14010_s0 + $0xc0] sm:$0xff]  ;;  %v40_v17 = vld [vmem:[%s14010_s0 + $0xc8] sm:$0xff] }
  0x78   :  { %9061 = vmatmul.mubr.msk.bf16.gmra.mrb[12].mxu0 %vm159_vm0, %v11505_v11  ;;  %v11539_v11 = vpack.c.bf16 %v7723_v7, %v7722_v30  ;;  %v7726_v30 = vld [vmem:[%s14010_s0 + $0x381] sm:$0xff]  ;;  %v7727_v7 = vld [vmem:[%s14010_s0 + $0x389] sm:$0xff] }
  0x79   :  { %9064 = vmatprep.mubr.msk.bf16.mxu0 %vm159_vm0, %v11507_v47  ;;  %v11541_v47 = vpack.c.bf16 %v7725_v36, %v7724_v35  ;;  %v7728_v35 = vld [vmem:[%s14010_s0 + $0x391] sm:$0xff]  ;;  %v7729_v36 = vld [vmem:[%s14010_s0 + $0x399] sm:$0xff] }
  0x7a   :  { %14238 = vst [vmem:[#allocation45_spill] sm:$0xff] %v11539_v11 }
  0x7b   :  { %14239 = vst [vmem:[#allocation46_spill] sm:$0xff] %v11541_v47 }
  0x7e   :  { %8881 = vmatmul.mubr.msk.bf16.gmra.mrb[16].mxu1 %vm159_vm0, %v68_v34  ;;  %v70_v34 = vpack.c.bf16 %v38_v59, %v37_v58  ;;  %v41_v58 = vld [vmem:[%s14010_s0 + $0xd0] sm:$0xff]  ;;  %v42_v59 = vld [vmem:[%s14010_s0 + $0xd8] sm:$0xff] }
  0x7f   :  { %8884 = vmatprep.mubr.msk.bf16.mxu1 %vm159_vm0, %v69_v38  ;;  %v71_v38 = vpack.c.bf16 %v40_v17, %v39_v15  ;;  %v43_v15 = vld [vmem:[%s14010_s0 + $0xe0] sm:$0xff]  ;;  %v44_v17 = vld [vmem:[%s14010_s0 + $0xe8] sm:$0xff] }
  0x80   :  { %9065 = vmatmul.mubr.msk.bf16.gmra.mrb[16].mxu0 %vm159_vm0, %v11539_v11  ;;  %v11573_v11 = vpack.c.bf16 %v7727_v7, %v7726_v30  ;;  %v7730_v30 = vld [vmem:[%s14010_s0 + $0x3a1] sm:$0xff]  ;;  %v7731_v7 = vld [vmem:[%s14010_s0 + $0x3a9] sm:$0xff] }
  0x81   :  { %9068 = vmatprep.mubr.msk.bf16.mxu0 %vm159_vm0, %v11541_v47  ;;  %v11575_v47 = vpack.c.bf16 %v7729_v36, %v7728_v35  ;;  %v7732_v35 = vld [vmem:[%s14010_s0 + $0x3b1] sm:$0xff]  ;;  %v7733_v36 = vld [vmem:[%s14010_s0 + $0x3b9] sm:$0xff] }
  0x82   :  { %14240 = vst [vmem:[#allocation47_spill] sm:$0xff] %v11573_v11 }
  0x83   :  { %14241 = vst [vmem:[#allocation48_spill] sm:$0xff] %v11575_v47 }
  0x86   :  { %8885 = vmatmul.mubr.msk.bf16.gmra.mrb[20].mxu1 %vm159_vm0, %v70_v34  ;;  %v72_v34 = vpack.c.bf16 %v42_v59, %v41_v58  ;;  %v45_v58 = vld [vmem:[%s14010_s0 + $0xf0] sm:$0xff]  ;;  %v46_v59 = vld [vmem:[%s14010_s0 + $0xf8] sm:$0xff] }
  0x87   :  { %8888 = vmatprep.mubr.msk.bf16.mxu1 %vm159_vm0, %v71_v38  ;;  %v73_v38 = vpack.c.bf16 %v44_v17, %v43_v15  ;;  %v47_v15 = vld [vmem:[%s14010_s0 + $0x100] sm:$0xff]  ;;  %v48_v17 = vld [vmem:[%s14010_s0 + $0x108] sm:$0xff] }
  0x88   :  { %9069 = vmatmul.mubr.msk.bf16.gmra.mrb[20].mxu0 %vm159_vm0, %v11573_v11  ;;  %v11607_v11 = vpack.c.bf16 %v7731_v7, %v7730_v30  ;;  %v7734_v30 = vld [vmem:[%s14010_s0 + $0x3c1] sm:$0xff]  ;;  %v7735_v7 = vld [vmem:[%s14010_s0 + $0x3c9] sm:$0xff] }
  0x89   :  { %9072 = vmatprep.mubr.msk.bf16.mxu0 %vm159_vm0, %v11575_v47  ;;  %v11609_v47 = vpack.c.bf16 %v7733_v36, %v7732_v35  ;;  %v7736_v35 = vld [vmem:[%s14010_s0 + $0x3d1] sm:$0xff]  ;;  %v7737_v36 = vld [vmem:[%s14010_s0 + $0x3d9] sm:$0xff] }
  0x8a   :  { %14242 = vst [vmem:[#allocation49_spill] sm:$0xff] %v11607_v11 }
  0x8b   :  { %14243 = vst [vmem:[#allocation50_spill] sm:$0xff] %v11609_v47 }
  0x8e   :  { %8889 = vmatmul.mubr.msk.bf16.gmra.mrb[24].mxu1 %vm159_vm0, %v72_v34  ;;  %v74_v34 = vpack.c.bf16 %v46_v59, %v45_v58  ;;  %v49_v58 = vld [vmem:[%s14010_s0 + $0x110] sm:$0xff]  ;;  %v50_v59 = vld [vmem:[%s14010_s0 + $0x118] sm:$0xff] }
  0x8f   :  { %8892 = vmatprep.mubr.msk.bf16.mxu1 %vm159_vm0, %v73_v38  ;;  %v75_v38 = vpack.c.bf16 %v48_v17, %v47_v15  ;;  %v51_v15 = vld [vmem:[%s14010_s0 + $0x120] sm:$0xff]  ;;  %v52_v17 = vld [vmem:[%s14010_s0 + $0x128] sm:$0xff] }
  0x90   :  { %9073 = vmatmul.mubr.msk.bf16.gmra.mrb[24].mxu0 %vm159_vm0, %v11607_v11  ;;  %v11641_v11 = vpack.c.bf16 %v7735_v7, %v7734_v30  ;;  %v7738_v30 = vld [vmem:[%s14010_s0 + $0x3e1] sm:$0xff]  ;;  %v7739_v7 = vld [vmem:[%s14010_s0 + $0x3e9] sm:$0xff] }
  0x91   :  { %9076 = vmatprep.mubr.msk.bf16.mxu0 %vm159_vm0, %v11609_v47  ;;  %v11643_v47 = vpack.c.bf16 %v7737_v36, %v7736_v35  ;;  %v7740_v35 = vld [vmem:[%s14010_s0 + $0x3f1] sm:$0xff]  ;;  %v7741_v36 = vld [vmem:[%s14010_s0 + $0x3f9] sm:$0xff] }
  0x92   :  { %14244 = vst [vmem:[#allocation51_spill] sm:$0xff] %v11641_v11 }
  0x93   :  { %14245 = vst [vmem:[#allocation52_spill] sm:$0xff] %v11643_v47 }
  0x96   :  { %8893 = vmatmul.mubr.msk.bf16.gmra.mrb[28].mxu1 %vm159_vm0, %v74_v34  ;;  %v76_v34 = vpack.c.bf16 %v50_v59, %v49_v58  ;;  %v53_v58 = vld [vmem:[%s14010_s0 + $0x130] sm:$0xff]  ;;  %v54_v59 = vld [vmem:[%s14010_s0 + $0x138] sm:$0xff] }
  0x97   :  { %8896 = vmatprep.mubr.msk.bf16.mxu1 %vm159_vm0, %v75_v38  ;;  %v77_v38 = vpack.c.bf16 %v52_v17, %v51_v15  ;;  %v55_v15 = vld [vmem:[%s14010_s0 + $0x140] sm:$0xff]  ;;  %v56_v17 = vld [vmem:[%s14010_s0 + $0x148] sm:$0xff] }
  0x98   :  { %9077 = vmatmul.mubr.msk.bf16.gmra.mrb[28].mxu0 %vm159_vm0, %v11641_v11  ;;  %v11675_v11 = vpack.c.bf16 %v7739_v7, %v7738_v30  ;;  %v7742_v30 = vld [vmem:[%s14010_s0 + $0x401] sm:$0xff]  ;;  %v7743_v7 = vld [vmem:[%s14010_s0 + $0x409] sm:$0xff] }
  0x99   :  { %9080 = vmatprep.mubr.msk.bf16.mxu0 %vm159_vm0, %v11643_v47  ;;  %v11677_v47 = vpack.c.bf16 %v7741_v36, %v7740_v35  ;;  %v7744_v35 = vld [vmem:[%s14010_s0 + $0x411] sm:$0xff]  ;;  %v7745_v36 = vld [vmem:[%s14010_s0 + $0x419] sm:$0xff] }
  0x9a   :  { %14246 = vst [vmem:[#allocation53_spill] sm:$0xff] %v11675_v11 }
  0x9b   :  { %14247 = vst [vmem:[#allocation54_spill] sm:$0xff] %v11677_v47 }
  0x9e   :  { %8897 = vmatmul.mubr.msk.bf16.gmra.mrb[32].mxu1 %vm159_vm0, %v76_v34  ;;  %v78_v34 = vpack.c.bf16 %v54_v59, %v53_v58  ;;  %v57_v58 = vld [vmem:[%s14010_s0 + $0x150] sm:$0xff]  ;;  %v58_v59 = vld [vmem:[%s14010_s0 + $0x158] sm:$0xff] }
  0x9f   :  { %8900 = vmatprep.mubr.msk.bf16.mxu1 %vm159_vm0, %v77_v38  ;;  %v79_v38 = vpack.c.bf16 %v56_v17, %v55_v15  ;;  %v7541_v15 = vld [vmem:[%s14010_s0 + $0x2d0] sm:$0xff]  ;;  %v7542_v17 = vld [vmem:[%s14010_s0 + $0x2d8] sm:$0xff] }
  0xa0   :  { %9081 = vmatmul.mubr.msk.bf16.gmra.mrb[32].mxu0 %vm159_vm0, %v11675_v11  ;;  %v11709_v11 = vpack.c.bf16 %v7743_v7, %v7742_v30  ;;  %v7746_v30 = vld [vmem:[%s14010_s0 + $0x421] sm:$0xff]  ;;  %v7747_v7 = vld [vmem:[%s14010_s0 + $0x429] sm:$0xff] }
  0xa1   :  { %9084 = vmatprep.mubr.msk.bf16.mxu0 %vm159_vm0, %v11677_v47  ;;  %v11711_v47 = vpack.c.bf16 %v7745_v36, %v7744_v35  ;;  %v2293_v35 = vld [vmem:[%s14010_s0 + $0x2] sm:$0xff]  ;;  %v2294_v36 = vld [vmem:[%s14010_s0 + $0xa] sm:$0xff] }
  0xa2   :  { %14248 = vst [vmem:[#allocation55_spill] sm:$0xff] %v11709_v11 }
  0xa3   :  { %14249 = vst [vmem:[#allocation56_spill] sm:$0xff] %v11711_v47 }
  0xa6   :  { %8901 = vmatmul.mubr.msk.bf16.gmra.mrb[36].mxu1 %vm159_vm0, %v78_v34  ;;  %v80_v34 = vpack.c.bf16 %v58_v59, %v57_v58  ;;  %v7543_v58 = vld [vmem:[%s14010_s0 + $0x2e0] sm:$0xff]  ;;  %v7544_v59 = vld [vmem:[%s14010_s0 + $0x2e8] sm:$0xff] }
  0xa7   :  { %8904 = vmatprep.mubr.msk.bf16.mxu1 %vm159_vm0, %v79_v38  ;;  %v11743_v38 = vpack.c.bf16 %v7542_v17, %v7541_v15  ;;  %v7545_v15 = vld [vmem:[%s14010_s0 + $0x2f0] sm:$0xff]  ;;  %v7546_v17 = vld [vmem:[%s14010_s0 + $0x2f8] sm:$0xff] }
  0xa8   :  { %9085 = vmatmul.mubr.msk.bf16.gmra.mrb[36].mxu0 %vm159_vm0, %v11709_v11  ;;  %v11747_v11 = vpack.c.bf16 %v2294_v36, %v2293_v35  ;;  %v2297_v35 = vld [vmem:[%s14010_s0 + $0x22] sm:$0xff]  ;;  %v2298_v36 = vld [vmem:[%s14010_s0 + $0x2a] sm:$0xff] }
  0xa9   :  { %9088 = vmatprep.mubr.msk.bf16.mxu0 %vm159_vm0, %v11711_v47  ;;  %v11745_v47 = vpack.c.bf16 %v7747_v7, %v7746_v30  ;;  %v2295_v30 = vld [vmem:[%s14010_s0 + $0x12] sm:$0xff]  ;;  %v2296_v7 = vld [vmem:[%s14010_s0 + $0x1a] sm:$0xff]  ;;  %v11786_v53 = vpack.c.bf16 %v2298_v36, %v2297_v35  ;;  %v2301_v35 = vld [vmem:[%s14010_s0 + $0x42] sm:$0xff] }
  0xaa   :  { %14251 = vst [vmem:[#allocation58_spill] sm:$0xff] %v11747_v11 }
  0xab   :  { %14250 = vst [vmem:[#allocation57_spill] sm:$0xff] %v11745_v47  ;;  %14253 = vst [vmem:[#allocation60_spill] sm:$0xff] %v11786_v53 }
  0xae   :  { %8905 = vmatmul.mubr.msk.bf16.gmra.mrb[40].mxu1 %vm159_vm0, %v80_v34  ;;  %v11774_v34 = vpack.c.bf16 %v7544_v59, %v7543_v58  ;;  %v7547_v58 = vld [vmem:[%s14010_s0 + $0x300] sm:$0xff]  ;;  %v7548_v59 = vld [vmem:[%s14010_s0 + $0x308] sm:$0xff] }
  0xaf   :  { %8910 = vmatprep.mubr.msk.bf16.mxu1 %vm159_vm0, %v11743_v38 }
  0xb0   :  { %9089 = vmatmul.mubr.msk.bf16.gmra.mrb[40].mxu0 %vm159_vm0, %v11745_v47  ;;  %v11782_v47 = vpack.c.bf16 %v7546_v17, %v7545_v15  ;;  %v7549_v15 = vld [vmem:[%s14010_s0 + $0x310] sm:$0xff] }
  0xb1   :  { %9094 = vmatprep.mubr.msk.bf16.mxu0 %vm159_vm0, %v11747_v11  ;;  %v11784_v11 = vpack.c.bf16 %v2296_v7, %v2295_v30  ;;  %v2299_v17 = vld [vmem:[%s14010_s0 + $0x32] sm:$0xff]  ;;  %v2300_v30 = vld [vmem:[%s14010_s0 + $0x3a] sm:$0xff]  ;;  %v11817_v7 = vpack.c.bf16 %v7548_v59, %v7547_v58 }
  0xb2   :  { %v7551_v58 = vld [vmem:[%s14010_s0 + $0x320] sm:$0xff]  ;;  %v7553_v59 = vld [vmem:[%s14010_s0 + $0x330] sm:$0xff] }
  0xb3   :  { %14252 = vst [vmem:[#allocation59_spill] sm:$0xff] %v11784_v11 }
  0xb6   :  { %8911 = vmatmul.mubr.msk.bf16.vlgmr.msra.gmra.mrb[0].mxu1 %vm159_vm0, %v11774_v34 }
  0xb7   :  { %8955 = vmatpush3.bf16.msra.mxu1 %v11394_v2  ;;  %8914 = vmatprep.mubr.msk.bf16.mxu1 %vm159_vm0, %v11782_v47  ;;  %v7550_v2 = vld [vmem:[%s14010_s0 + $0x318] sm:$0xff] }
  0xb8   :  { %9095 = vmatmul.mubr.msk.bf16.vlgmr.msra.gmra.mrb[0].mxu0 %vm159_vm0, %v11784_v11  ;;  %9184 = vmatprep.subr.bf16.mxu1 %v10883_v0  ;;  %v11826_v36 = vpack.c.bf16 %v7550_v2, %v7549_v15  ;;  %v7554_v15 = vld [vmem:[%s14010_s0 + $0x338] sm:$0xff] }
  0xb9   :  { %9139 = vmatpush3.bf16.msra.mxu0 %v11402_v13  ;;  %9098 = vmatprep.mubr.msk.bf16.mxu0 %vm159_vm0, %v11786_v53  ;;  %v2302_v13 = vld [vmem:[%s14010_s0 + $0x4a] sm:$0xff]  ;;  %v11828_v53 = vpack.c.bf16 %v2300_v30, %v2299_v17  ;;  %v2303_v2 = vld [vmem:[%s14010_s0 + $0x52] sm:$0xff]  ;;  %v2304_v17 = vld [vmem:[%s14010_s0 + $0x5a] sm:$0xff] }
  0xba   :  { %9552 = vmatprep.subr.bf16.mxu0 %v10883_v0  ;;  %v11830_v11 = vpack.c.bf16 %v2302_v13, %v2301_v35  ;;  %v7552_v0 = vld [vmem:[%s14010_s0 + $0x328] sm:$0xff] }
  0xbb   :  { %14254 = vst [vmem:[#allocation61_spill] sm:$0xff] %v11828_v53  ;;  %v11858_v30 = vpack.c.bf16 %v7552_v0, %v7551_v58  ;;  %v2305_v35 = vld [vmem:[%s14010_s0 + $0x62] sm:$0xff]  ;;  %v2306_v13 = vld [vmem:[%s14010_s0 + $0x6a] sm:$0xff] }
  0xbc   :  { %14255 = vst [vmem:[#allocation62_spill] sm:$0xff] %v11830_v11  ;;  %v11870_v48 = vpack.c.bf16 %v2306_v13, %v2305_v35  ;;  %v7555_v58 = vld [vmem:[%s14010_s0 + $0x340] sm:$0xff]  ;;  %v7556_v0 = vld [vmem:[%s14010_s0 + $0x348] sm:$0xff] }
  0xbd   :  { %v11898_v35 = vpack.c.bf16 %v7556_v0, %v7555_v58  ;;  %v2309_v13 = vld [vmem:[%s14010_s0 + $0x82] sm:$0xff] }
  0xbe   :  { %8915 = vmatmul.mubr.msk.bf16.gmra.mrb[4].mxu1 %vm159_vm0, %v11817_v7  ;;  %14257 = vst [vmem:[#allocation64_spill] sm:$0xff] %v11870_v48  ;;  %v7559_v58 = vld [vmem:[%s14010_s0 + $0x360] sm:$0xff]  ;;  %v7560_v0 = vld [vmem:[%s14010_s0 + $0x368] sm:$0xff] }
  0xbf   :  { %8918 = vmatprep.mubr.msk.bf16.mxu1 %vm159_vm0, %v11826_v36 }
  0xc0   :  { %9099 = vmatmul.mubr.msk.bf16.gmra.mrb[4].mxu0 %vm159_vm0, %v11828_v53  ;;  %v11866_v53 = vpack.c.bf16 %v7554_v15, %v7553_v59  ;;  %v7557_v59 = vld [vmem:[%s14010_s0 + $0x350] sm:$0xff]  ;;  %v7558_v15 = vld [vmem:[%s14010_s0 + $0x358] sm:$0xff] }
  0xc1   :  { %9102 = vmatprep.mubr.msk.bf16.mxu0 %vm159_vm0, %v11830_v11  ;;  %v11868_v11 = vpack.c.bf16 %v2304_v17, %v2303_v2  ;;  %v2307_v2 = vld [vmem:[%s14010_s0 + $0x72] sm:$0xff]  ;;  %v2308_v17 = vld [vmem:[%s14010_s0 + $0x7a] sm:$0xff]  ;;  %v11906_v3 = vpack.c.bf16 %v7558_v15, %v7557_v59 }
  0xc2   :  { %v7562_v59 = vld [vmem:[%s14010_s0 + $0x378] sm:$0xff] }
  0xc3   :  { %14256 = vst [vmem:[#allocation63_spill] sm:$0xff] %v11868_v11  ;;  %v2311_v15 = vld [vmem:[%s14010_s0 + $0x92] sm:$0xff] }
  0xc6   :  { %8919 = vmatmul.mubr.msk.bf16.gmra.mrb[8].mxu1 %vm159_vm0, %v11858_v30 }
  0xc7   :  { %8922 = vmatprep.mubr.msk.bf16.mxu1 %vm159_vm0, %v11866_v53 }
  0xc8   :  { %9103 = vmatmul.mubr.msk.bf16.gmra.mrb[8].mxu0 %vm159_vm0, %v11868_v11  ;;  %v2310_v11 = vld [vmem:[%s14010_s0 + $0x8a] sm:$0xff] }
  0xc9   :  { %9106 = vmatprep.mubr.msk.bf16.mxu0 %vm159_vm0, %v11870_v48  ;;  %v11908_v48 = vpack.c.bf16 %v2308_v17, %v2307_v2  ;;  %v11910_v63 = vpack.c.bf16 %v2310_v11, %v2309_v13  ;;  %v7561_v11 = vld [vmem:[%s14010_s0 + $0x370] sm:$0xff]  ;;  %v2312_v2 = vld [vmem:[%s14010_s0 + $0x9a] sm:$0xff]  ;;  %v11938_v17 = vpack.c.bf16 %v7560_v0, %v7559_v58  ;;  %v2313_v13 = vld [vmem:[%s14010_s0 + $0xa2] sm:$0xff] }
  0xca   :  { %v11946_v29 = vpack.c.bf16 %v7562_v59, %v7561_v11  ;;  %v7563_v58 = vld [vmem:[%s14010_s0 + $0x380] sm:$0xff]  ;;  %v7564_v0 = vld [vmem:[%s14010_s0 + $0x388] sm:$0xff]  ;;  %v7566_v11 = vld [vmem:[%s14010_s0 + $0x398] sm:$0xff] }
  0xcb   :  { %14258 = vst [vmem:[#allocation65_spill] sm:$0xff] %v11908_v48  ;;  %14259 = vst [vmem:[#allocation66_spill] sm:$0xff] %v11910_v63  ;;  %v2315_v59 = vld [vmem:[%s14010_s0 + $0xb2] sm:$0xff] }
  0xce   :  { %8923 = vmatmul.mubr.msk.bf16.gmra.mrb[12].mxu1 %vm159_vm0, %v11898_v35 }
  0xcf   :  { %8926 = vmatprep.mubr.msk.bf16.mxu1 %vm159_vm0, %v11906_v3 }
  0xd0   :  { %9107 = vmatmul.mubr.msk.bf16.gmra.mrb[12].mxu0 %vm159_vm0, %v11908_v48  ;;  %v2314_v48 = vld [vmem:[%s14010_s0 + $0xaa] sm:$0xff] }
  0xd1   :  { %9110 = vmatprep.mubr.msk.bf16.mxu0 %vm159_vm0, %v11910_v63  ;;  %v11948_v63 = vpack.c.bf16 %v2312_v2, %v2311_v15  ;;  %v11950_v18 = vpack.c.bf16 %v2314_v48, %v2313_v13  ;;  %v7565_v48 = vld [vmem:[%s14010_s0 + $0x390] sm:$0xff]  ;;  %v2316_v15 = vld [vmem:[%s14010_s0 + $0xba] sm:$0xff]  ;;  %v11978_v2 = vpack.c.bf16 %v7564_v0, %v7563_v58  ;;  %v2317_v13 = vld [vmem:[%s14010_s0 + $0xc2] sm:$0xff] }
  0xd2   :  { %v11986_v51 = vpack.c.bf16 %v7566_v11, %v7565_v48  ;;  %v7567_v58 = vld [vmem:[%s14010_s0 + $0x3a0] sm:$0xff]  ;;  %v7568_v0 = vld [vmem:[%s14010_s0 + $0x3a8] sm:$0xff]  ;;  %v7570_v48 = vld [vmem:[%s14010_s0 + $0x3b8] sm:$0xff] }
  0xd3   :  { %14260 = vst [vmem:[#allocation67_spill] sm:$0xff] %v11948_v63  ;;  %14261 = vst [vmem:[#allocation68_spill] sm:$0xff] %v11950_v18  ;;  %v2319_v11 = vld [vmem:[%s14010_s0 + $0xd2] sm:$0xff] }
  0xd6   :  { %8927 = vmatmul.mubr.msk.bf16.gmra.mrb[16].mxu1 %vm159_vm0, %v11938_v17 }
  0xd7   :  { %8930 = vmatprep.mubr.msk.bf16.mxu1 %vm159_vm0, %v11946_v29 }
  0xd8   :  { %9111 = vmatmul.mubr.msk.bf16.gmra.mrb[16].mxu0 %vm159_vm0, %v11948_v63  ;;  %v2318_v63 = vld [vmem:[%s14010_s0 + $0xca] sm:$0xff] }
  0xd9   :  { %9114 = vmatprep.mubr.msk.bf16.mxu0 %vm159_vm0, %v11950_v18  ;;  %v11988_v18 = vpack.c.bf16 %v2316_v15, %v2315_v59  ;;  %v11990_v50 = vpack.c.bf16 %v2318_v63, %v2317_v13  ;;  %v7569_v63 = vld [vmem:[%s14010_s0 + $0x3b0] sm:$0xff]  ;;  %v2320_v59 = vld [vmem:[%s14010_s0 + $0xda] sm:$0xff]  ;;  %v12018_v15 = vpack.c.bf16 %v7568_v0, %v7567_v58  ;;  %v2321_v13 = vld [vmem:[%s14010_s0 + $0xe2] sm:$0xff] }
  0xda   :  { %v12026_v27 = vpack.c.bf16 %v7570_v48, %v7569_v63  ;;  %v7571_v58 = vld [vmem:[%s14010_s0 + $0x3c0] sm:$0xff]  ;;  %v7572_v0 = vld [vmem:[%s14010_s0 + $0x3c8] sm:$0xff]  ;;  %v7574_v63 = vld [vmem:[%s14010_s0 + $0x3d8] sm:$0xff] }
  0xdb   :  { %14262 = vst [vmem:[#allocation69_spill] sm:$0xff] %v11988_v18  ;;  %14263 = vst [vmem:[#allocation70_spill] sm:$0xff] %v11990_v50  ;;  %v2323_v48 = vld [vmem:[%s14010_s0 + $0xf2] sm:$0xff] }
  0xde   :  { %8931 = vmatmul.mubr.msk.bf16.gmra.mrb[20].mxu1 %vm159_vm0, %v11978_v2 }
  0xdf   :  { %8934 = vmatprep.mubr.msk.bf16.mxu1 %vm159_vm0, %v11986_v51 }
  0xe0   :  { %9115 = vmatmul.mubr.msk.bf16.gmra.mrb[20].mxu0 %vm159_vm0, %v11988_v18  ;;  %v2322_v18 = vld [vmem:[%s14010_s0 + $0xea] sm:$0xff] }
  0xe1   :  { %9118 = vmatprep.mubr.msk.bf16.mxu0 %vm159_vm0, %v11990_v50  ;;  %v12028_v50 = vpack.c.bf16 %v2320_v59, %v2319_v11  ;;  %v12030_v23 = vpack.c.bf16 %v2322_v18, %v2321_v13  ;;  %v7573_v18 = vld [vmem:[%s14010_s0 + $0x3d0] sm:$0xff]  ;;  %v2324_v11 = vld [vmem:[%s14010_s0 + $0xfa] sm:$0xff]  ;;  %v12058_v59 = vpack.c.bf16 %v7572_v0, %v7571_v58  ;;  %v2325_v13 = vld [vmem:[%s14010_s0 + $0x102] sm:$0xff] }
  0xe2   :  { %v12066_v62 = vpack.c.bf16 %v7574_v63, %v7573_v18  ;;  %v7575_v58 = vld [vmem:[%s14010_s0 + $0x3e0] sm:$0xff]  ;;  %v7576_v0 = vld [vmem:[%s14010_s0 + $0x3e8] sm:$0xff]  ;;  %v7578_v18 = vld [vmem:[%s14010_s0 + $0x3f8] sm:$0xff] }
  0xe3   :  { %14264 = vst [vmem:[#allocation71_spill] sm:$0xff] %v12028_v50  ;;  %14265 = vst [vmem:[#allocation72_spill] sm:$0xff] %v12030_v23  ;;  %v2327_v63 = vld [vmem:[%s14010_s0 + $0x112] sm:$0xff] }
  0xe6   :  { %8935 = vmatmul.mubr.msk.bf16.gmra.mrb[24].mxu1 %vm159_vm0, %v12018_v15 }
  0xe7   :  { %8938 = vmatprep.mubr.msk.bf16.mxu1 %vm159_vm0, %v12026_v27 }
  0xe8   :  { %9119 = vmatmul.mubr.msk.bf16.gmra.mrb[24].mxu0 %vm159_vm0, %v12028_v50  ;;  %v2326_v50 = vld [vmem:[%s14010_s0 + $0x10a] sm:$0xff] }
  0xe9   :  { %9122 = vmatprep.mubr.msk.bf16.mxu0 %vm159_vm0, %v12030_v23  ;;  %v12068_v23 = vpack.c.bf16 %v2324_v11, %v2323_v48  ;;  %v12070_v61 = vpack.c.bf16 %v2326_v50, %v2325_v13  ;;  %v7577_v50 = vld [vmem:[%s14010_s0 + $0x3f0] sm:$0xff]  ;;  %v2328_v48 = vld [vmem:[%s14010_s0 + $0x11a] sm:$0xff]  ;;  %v12098_v11 = vpack.c.bf16 %v7576_v0, %v7575_v58  ;;  %v2329_v13 = vld [vmem:[%s14010_s0 + $0x122] sm:$0xff] }
  0xea   :  { %v12106_v46 = vpack.c.bf16 %v7578_v18, %v7577_v50  ;;  %v7579_v58 = vld [vmem:[%s14010_s0 + $0x400] sm:$0xff]  ;;  %v7580_v0 = vld [vmem:[%s14010_s0 + $0x408] sm:$0xff]  ;;  %v7582_v50 = vld [vmem:[%s14010_s0 + $0x418] sm:$0xff] }
  0xeb   :  { %14266 = vst [vmem:[#allocation73_spill] sm:$0xff] %v12068_v23  ;;  %14267 = vst [vmem:[#allocation74_spill] sm:$0xff] %v12070_v61  ;;  %v2331_v18 = vld [vmem:[%s14010_s0 + $0x132] sm:$0xff] }
  0xee   :  { %8939 = vmatmul.mubr.msk.bf16.gmra.mrb[28].mxu1 %vm159_vm0, %v12058_v59 }
  0xef   :  { %8942 = vmatprep.mubr.msk.bf16.mxu1 %vm159_vm0, %v12066_v62 }
  0xf0   :  { %9123 = vmatmul.mubr.msk.bf16.gmra.mrb[28].mxu0 %vm159_vm0, %v12068_v23  ;;  %v2330_v23 = vld [vmem:[%s14010_s0 + $0x12a] sm:$0xff] }
  0xf1   :  { %9126 = vmatprep.mubr.msk.bf16.mxu0 %vm159_vm0, %v12070_v61  ;;  %v12108_v61 = vpack.c.bf16 %v2328_v48, %v2327_v63  ;;  %v12110_v42 = vpack.c.bf16 %v2330_v23, %v2329_v13  ;;  %v7581_v23 = vld [vmem:[%s14010_s0 + $0x410] sm:$0xff]  ;;  %v2332_v63 = vld [vmem:[%s14010_s0 + $0x13a] sm:$0xff]  ;;  %v12138_v48 = vpack.c.bf16 %v7580_v0, %v7579_v58  ;;  %v2333_v13 = vld [vmem:[%s14010_s0 + $0x142] sm:$0xff] }
  0xf2   :  { %v12146_v26 = vpack.c.bf16 %v7582_v50, %v7581_v23  ;;  %v7583_v58 = vld [vmem:[%s14010_s0 + $0x420] sm:$0xff]  ;;  %v7584_v0 = vld [vmem:[%s14010_s0 + $0x428] sm:$0xff]  ;;  %v2335_v50 = vld [vmem:[%s14010_s0 + $0x152] sm:$0xff] }
  0xf3   :  { %14268 = vst [vmem:[#allocation75_spill] sm:$0xff] %v12108_v61  ;;  %14269 = vst [vmem:[#allocation76_spill] sm:$0xff] %v12110_v42  ;;  %v1112_v23 = vld [vmem:[%s14010_s0 + $0x9] sm:$0xff] }
  0xf6   :  { %8943 = vmatmul.mubr.msk.bf16.gmra.mrb[32].mxu1 %vm159_vm0, %v12098_v11 }
  0xf7   :  { %8946 = vmatprep.mubr.msk.bf16.mxu1 %vm159_vm0, %v12106_v46 }
  0xf8   :  { %9127 = vmatmul.mubr.msk.bf16.gmra.mrb[32].mxu0 %vm159_vm0, %v12108_v61  ;;  %v2334_v61 = vld [vmem:[%s14010_s0 + $0x14a] sm:$0xff] }
  0xf9   :  { %9130 = vmatprep.mubr.msk.bf16.mxu0 %vm159_vm0, %v12110_v42  ;;  %v12148_v42 = vpack.c.bf16 %v2332_v63, %v2331_v18  ;;  %v12150_v25 = vpack.c.bf16 %v2334_v61, %v2333_v13  ;;  %v1111_v61 = vld [vmem:[%s14010_s0 + $0x1] sm:$0xff]  ;;  %v12178_v63 = vpack.c.bf16 %v7584_v0, %v7583_v58  ;;  %v7798_v13 = vld [vmem:[%s14010_s0 + $0x16a] sm:$0xff]  ;;  %v1114_v0 = vld [vmem:[%s14010_s0 + $0x19] sm:$0xff] }
  0xfa   :  { %v2336_v18 = vld [vmem:[%s14010_s0 + $0x15a] sm:$0xff]  ;;  %v12186_v8 = vpack.c.bf16 %v1112_v23, %v1111_v61  ;;  %v1113_v58 = vld [vmem:[%s14010_s0 + $0x11] sm:$0xff]  ;;  %v1116_v61 = vld [vmem:[%s14010_s0 + $0x29] sm:$0xff] }
  0xfb   :  { %14270 = vst [vmem:[#allocation77_spill] sm:$0xff] %v12148_v42  ;;  %14271 = vst [vmem:[#allocation78_spill] sm:$0xff] %v12150_v25  ;;  %v7800_v23 = vld [vmem:[%s14010_s0 + $0x17a] sm:$0xff] }
  0xfe   :  { %8947 = vmatmul.mubr.msk.bf16.gmra.mrb[36].mxu1 %vm159_vm0, %v12138_v48 }
  0xff   :  { %8950 = vmatprep.mubr.msk.bf16.mxu1 %vm159_vm0, %v12146_v26 }
 0x100   :  { %9131 = vmatmul.mubr.msk.bf16.gmra.mrb[36].mxu0 %vm159_vm0, %v12148_v42  ;;  %v7799_v42 = vld [vmem:[%s14010_s0 + $0x172] sm:$0xff] }
 0x101   :  { %9134 = vmatprep.mubr.msk.bf16.mxu0 %vm159_vm0, %v12150_v25  ;;  %v12188_v25 = vpack.c.bf16 %v2336_v18, %v2335_v50  ;;  %v12190_v6 = vpack.c.bf16 %v7799_v42, %v7798_v13  ;;  %v1115_v42 = vld [vmem:[%s14010_s0 + $0x21] sm:$0xff]  ;;  %v12218_v18 = vpack.c.bf16 %v1114_v0, %v1113_v58  ;;  %v7802_v13 = vld [vmem:[%s14010_s0 + $0x18a] sm:$0xff] }
 0x102   :  { %v7801_v50 = vld [vmem:[%s14010_s0 + $0x182] sm:$0xff]  ;;  %v12226_v57 = vpack.c.bf16 %v1116_v61, %v1115_v42  ;;  %v1117_v0 = vld [vmem:[%s14010_s0 + $0x31] sm:$0xff] }
 0x103   :  { %14272 = vst [vmem:[#allocation79_spill] sm:$0xff] %v12188_v25  ;;  %14273 = vst [vmem:[#allocation80_spill] sm:$0xff] %v12190_v6  ;;  %v10852_v58 = vld [vmem:[%s14009_s1 + $0x8] sm:$0xff]  }
 0x104   :  { %v1119_v42 = vld [vmem:[%s14010_s0 + $0x41] sm:$0xff]  ;;  %v1120_v61 = vld [vmem:[%s14010_s0 + $0x49] sm:$0xff] }
 0x106   :  { %8951 = vmatmul.mubr.msk.bf16.gmra.mrb[40].mxu1 %vm159_vm0, %v12178_v63 }
 0x107   :  { %8956 = vmatprep.mubr.msk.bf16.mxu1 %vm159_vm0, %v12186_v8 }
 0x108   :  { %9135 = vmatmul.mubr.msk.bf16.gmra.mrb[40].mxu0 %vm159_vm0, %v12188_v25  ;;  %v7803_v25 = vld [vmem:[%s14010_s0 + $0x192] sm:$0xff] }
 0x109   :  { %9140 = vmatprep.mubr.msk.bf16.mxu0 %vm159_vm0, %v12190_v6  ;;  %v12228_v6 = vpack.c.bf16 %v7801_v50, %v7800_v23  ;;  %v12230_v56 = vpack.c.bf16 %v7803_v25, %v7802_v13  ;;  %v1118_v25 = vld [vmem:[%s14010_s0 + $0x39] sm:$0xff]  ;;  %v7805_v13 = vld [vmem:[%s14010_s0 + $0x1a2] sm:$0xff] }
 0x10a   :  { %v12256_v23 = vld [vmem:[%s14009_s1] sm:$0xff]  }
 0x10b   :  { %14274 = vst [vmem:[#allocation81_spill] sm:$0xff] %v12228_v6  ;;  %14275 = vst [vmem:[#allocation82_spill] sm:$0xff] %v12230_v56  ;;  %v7804_v50 = vld [vmem:[%s14010_s0 + $0x19a] sm:$0xff] }
 0x10c   :  { %v12278_v44 = vpack.c.bf16 %v7805_v13, %v7804_v50  ;;  %v7809_v50 = vld [vmem:[%s14010_s0 + $0x1c2] sm:$0xff] }
 0x10e   :  { %8957 = vmatmul.mubr.msk.bf16.vlgmr.msra.gmra.mrb[0].mxu1 %vm159_vm0, %v12218_v18  ;;  %14276 = vst [vmem:[#allocation83_spill] sm:$0xff] %v12278_v44 }
 0x10f   :  { %9185 = vmatpush3.bf16.msra.mxu1 %v10852_v58  ;;  %8960 = vmatprep.mubr.msk.bf16.mxu1 %vm159_vm0, %v12226_v57 }
 0x110   :  { %9141 = vmatmul.mubr.msk.bf16.vlgmr.msra.gmra.mrb[0].mxu0 %vm159_vm0, %v12228_v6  ;;  %9230 = vmatprep.subr.bf16.mxu1 %v12256_v23  ;;  %v12267_v6 = vpack.c.bf16 %v1118_v25, %v1117_v0  ;;  %v1121_v0 = vld [vmem:[%s14010_s0 + $0x51] sm:$0xff]  ;;  %v1122_v25 = vld [vmem:[%s14010_s0 + $0x59] sm:$0xff] }
 0x111   :  { %9553 = vmatpush3.bf16.msra.mxu0 %v10852_v58  ;;  %9144 = vmatprep.mubr.msk.bf16.mxu0 %vm159_vm0, %v12230_v56  ;;  %v7807_v58 = vld [vmem:[%s14010_s0 + $0x1b2] sm:$0xff]  ;;  %v12276_v56 = vpack.c.bf16 %v1120_v61, %v1119_v42  ;;  %v1124_v42 = vld [vmem:[%s14010_s0 + $0x69] sm:$0xff]  ;;  %v7808_v61 = vld [vmem:[%s14010_s0 + $0x1ba] sm:$0xff]  ;;  %v12308_v13 = vpack.c.bf16 %v1122_v25, %v1121_v0 }
 0x112   :  { %9598 = vmatprep.subr.bf16.mxu0 %v12256_v23  ;;  %v12280_v33 = vpack.c.bf16 %v7807_v58, %v7806_v45  ;;  %v1123_v45 = vld [vmem:[%s14010_s0 + $0x61] sm:$0xff]  ;;  %v7810_v58 = vld [vmem:[%s14010_s0 + $0x1ca] sm:$0xff]  ;;  %v1126_v25 = vld [vmem:[%s14010_s0 + $0x79] sm:$0xff] }
 0x113   :  { %v12316_v32 = vpack.c.bf16 %v1124_v42, %v1123_v45  ;;  %v1125_v0 = vld [vmem:[%s14010_s0 + $0x71] sm:$0xff]  ;;  %v1128_v45 = vld [vmem:[%s14010_s0 + $0x89] sm:$0xff]  ;;  %v7812_v42 = vld [vmem:[%s14010_s0 + $0x1da] sm:$0xff] }
 0x114   :  { %14277 = vst [vmem:[#allocation84_spill] sm:$0xff] %v12280_v33 }
 0x116   :  { %8961 = vmatmul.mubr.msk.bf16.gmra.mrb[4].mxu1 %vm159_vm0, %v12267_v6 }
 0x117   :  { %8964 = vmatprep.mubr.msk.bf16.mxu1 %vm159_vm0, %v12276_v56 }
 0x118   :  { %9145 = vmatmul.mubr.msk.bf16.gmra.mrb[4].mxu0 %vm159_vm0, %v12278_v44  ;;  %v7811_v44 = vld [vmem:[%s14010_s0 + $0x1d2] sm:$0xff] }
 0x119   :  { %9148 = vmatprep.mubr.msk.bf16.mxu0 %vm159_vm0, %v12280_v33  ;;  %v12318_v33 = vpack.c.bf16 %v7809_v50, %v7808_v61  ;;  %v12320_v21 = vpack.c.bf16 %v7811_v44, %v7810_v58  ;;  %v1127_v44 = vld [vmem:[%s14010_s0 + $0x81] sm:$0xff]  ;;  %v12348_v50 = vpack.c.bf16 %v1126_v25, %v1125_v0  ;;  %v7814_v58 = vld [vmem:[%s14010_s0 + $0x1ea] sm:$0xff]  ;;  %v1130_v25 = vld [vmem:[%s14010_s0 + $0x99] sm:$0xff] }
 0x11a   :  { %v7813_v61 = vld [vmem:[%s14010_s0 + $0x1e2] sm:$0xff]  ;;  %v12356_v14 = vpack.c.bf16 %v1128_v45, %v1127_v44  ;;  %v1129_v0 = vld [vmem:[%s14010_s0 + $0x91] sm:$0xff]  ;;  %v7816_v45 = vld [vmem:[%s14010_s0 + $0x1fa] sm:$0xff] }
 0x11b   :  { %14278 = vst [vmem:[#allocation85_spill] sm:$0xff] %v12318_v33  ;;  %14279 = vst [vmem:[#allocation86_spill] sm:$0xff] %v12320_v21  ;;  %v1132_v44 = vld [vmem:[%s14010_s0 + $0xa9] sm:$0xff] }
 0x11e   :  { %8965 = vmatmul.mubr.msk.bf16.gmra.mrb[8].mxu1 %vm159_vm0, %v12308_v13 }
 0x11f   :  { %8968 = vmatprep.mubr.msk.bf16.mxu1 %vm159_vm0, %v12316_v32 }
 0x120   :  { %9149 = vmatmul.mubr.msk.bf16.gmra.mrb[8].mxu0 %vm159_vm0, %v12318_v33  ;;  %v7815_v33 = vld [vmem:[%s14010_s0 + $0x1f2] sm:$0xff] }
 0x121   :  { %9152 = vmatprep.mubr.msk.bf16.mxu0 %vm159_vm0, %v12320_v21  ;;  %v12358_v21 = vpack.c.bf16 %v7813_v61, %v7812_v42  ;;  %v12360_v9 = vpack.c.bf16 %v7815_v33, %v7814_v58  ;;  %v1131_v33 = vld [vmem:[%s14010_s0 + $0xa1] sm:$0xff]  ;;  %v12388_v61 = vpack.c.bf16 %v1130_v25, %v1129_v0  ;;  %v7818_v58 = vld [vmem:[%s14010_s0 + $0x20a] sm:$0xff]  ;;  %v1134_v25 = vld [vmem:[%s14010_s0 + $0xb9] sm:$0xff] }
 0x122   :  { %v7817_v42 = vld [vmem:[%s14010_s0 + $0x202] sm:$0xff]  ;;  %v12396_v12 = vpack.c.bf16 %v1132_v44, %v1131_v33  ;;  %v1133_v0 = vld [vmem:[%s14010_s0 + $0xb1] sm:$0xff]  ;;  %v7820_v44 = vld [vmem:[%s14010_s0 + $0x21a] sm:$0xff] }
 0x123   :  { %14280 = vst [vmem:[#allocation87_spill] sm:$0xff] %v12358_v21  ;;  %14281 = vst [vmem:[#allocation88_spill] sm:$0xff] %v12360_v9  ;;  %v1136_v33 = vld [vmem:[%s14010_s0 + $0xc9] sm:$0xff] }
 0x126   :  { %8969 = vmatmul.mubr.msk.bf16.gmra.mrb[12].mxu1 %vm159_vm0, %v12348_v50 }
 0x127   :  { %8972 = vmatprep.mubr.msk.bf16.mxu1 %vm159_vm0, %v12356_v14 }
 0x128   :  { %9153 = vmatmul.mubr.msk.bf16.gmra.mrb[12].mxu0 %vm159_vm0, %v12358_v21  ;;  %v7819_v21 = vld [vmem:[%s14010_s0 + $0x212] sm:$0xff] }
 0x129   :  { %9156 = vmatprep.mubr.msk.bf16.mxu0 %vm159_vm0, %v12360_v9  ;;  %v12398_v9 = vpack.c.bf16 %v7817_v42, %v7816_v45  ;;  %v12400_v49 = vpack.c.bf16 %v7819_v21, %v7818_v58  ;;  %v1135_v21 = vld [vmem:[%s14010_s0 + $0xc1] sm:$0xff]  ;;  %v12428_v42 = vpack.c.bf16 %v1134_v25, %v1133_v0  ;;  %v7822_v58 = vld [vmem:[%s14010_s0 + $0x22a] sm:$0xff]  ;;  %v1138_v25 = vld [vmem:[%s14010_s0 + $0xd9] sm:$0xff] }
 0x12a   :  { %v7821_v45 = vld [vmem:[%s14010_s0 + $0x222] sm:$0xff]  ;;  %v12436_v39 = vpack.c.bf16 %v1136_v33, %v1135_v21  ;;  %v1137_v0 = vld [vmem:[%s14010_s0 + $0xd1] sm:$0xff]  ;;  %v7824_v33 = vld [vmem:[%s14010_s0 + $0x23a] sm:$0xff] }
 0x12b   :  { %14282 = vst [vmem:[#allocation89_spill] sm:$0xff] %v12398_v9  ;;  %14283 = vst [vmem:[#allocation90_spill] sm:$0xff] %v12400_v49  ;;  %v1140_v21 = vld [vmem:[%s14010_s0 + $0xe9] sm:$0xff] }
 0x12e   :  { %8973 = vmatmul.mubr.msk.bf16.gmra.mrb[16].mxu1 %vm159_vm0, %v12388_v61 }
 0x12f   :  { %8976 = vmatprep.mubr.msk.bf16.mxu1 %vm159_vm0, %v12396_v12 }
 0x130   :  { %9157 = vmatmul.mubr.msk.bf16.gmra.mrb[16].mxu0 %vm159_vm0, %v12398_v9  ;;  %v7823_v9 = vld [vmem:[%s14010_s0 + $0x232] sm:$0xff] }
 0x131   :  { %9160 = vmatprep.mubr.msk.bf16.mxu0 %vm159_vm0, %v12400_v49  ;;  %v12438_v49 = vpack.c.bf16 %v7821_v45, %v7820_v44  ;;  %v12440_v22 = vpack.c.bf16 %v7823_v9, %v7822_v58  ;;  %v1139_v9 = vld [vmem:[%s14010_s0 + $0xe1] sm:$0xff]  ;;  %v12468_v45 = vpack.c.bf16 %v1138_v25, %v1137_v0  ;;  %v7826_v58 = vld [vmem:[%s14010_s0 + $0x24a] sm:$0xff]  ;;  %v1142_v25 = vld [vmem:[%s14010_s0 + $0xf9] sm:$0xff] }
 0x132   :  { %v7825_v44 = vld [vmem:[%s14010_s0 + $0x242] sm:$0xff]  ;;  %v12476_v16 = vpack.c.bf16 %v1140_v21, %v1139_v9  ;;  %v1141_v0 = vld [vmem:[%s14010_s0 + $0xf1] sm:$0xff]  ;;  %v7828_v21 = vld [vmem:[%s14010_s0 + $0x25a] sm:$0xff] }
 0x133   :  { %14284 = vst [vmem:[#allocation91_spill] sm:$0xff] %v12438_v49  ;;  %14285 = vst [vmem:[#allocation92_spill] sm:$0xff] %v12440_v22  ;;  %v1144_v9 = vld [vmem:[%s14010_s0 + $0x109] sm:$0xff] }
 0x136   :  { %8977 = vmatmul.mubr.msk.bf16.gmra.mrb[20].mxu1 %vm159_vm0, %v12428_v42 }
 0x137   :  { %8980 = vmatprep.mubr.msk.bf16.mxu1 %vm159_vm0, %v12436_v39 }
 0x138   :  { %9161 = vmatmul.mubr.msk.bf16.gmra.mrb[20].mxu0 %vm159_vm0, %v12438_v49  ;;  %v7827_v49 = vld [vmem:[%s14010_s0 + $0x252] sm:$0xff] }
 0x139   :  { %9164 = vmatprep.mubr.msk.bf16.mxu0 %vm159_vm0, %v12440_v22  ;;  %v12478_v22 = vpack.c.bf16 %v7825_v44, %v7824_v33  ;;  %v12480_v60 = vpack.c.bf16 %v7827_v49, %v7826_v58  ;;  %v1143_v49 = vld [vmem:[%s14010_s0 + $0x101] sm:$0xff]  ;;  %v12508_v44 = vpack.c.bf16 %v1142_v25, %v1141_v0  ;;  %v7830_v58 = vld [vmem:[%s14010_s0 + $0x26a] sm:$0xff]  ;;  %v1146_v25 = vld [vmem:[%s14010_s0 + $0x119] sm:$0xff] }
 0x13a   :  { %v7829_v33 = vld [vmem:[%s14010_s0 + $0x262] sm:$0xff]  ;;  %v12516_v54 = vpack.c.bf16 %v1144_v9, %v1143_v49  ;;  %v1145_v0 = vld [vmem:[%s14010_s0 + $0x111] sm:$0xff]  ;;  %v7832_v9 = vld [vmem:[%s14010_s0 + $0x27a] sm:$0xff] }
 0x13b   :  { %14286 = vst [vmem:[#allocation93_spill] sm:$0xff] %v12478_v22  ;;  %14287 = vst [vmem:[#allocation94_spill] sm:$0xff] %v12480_v60  ;;  %v1148_v49 = vld [vmem:[%s14010_s0 + $0x129] sm:$0xff] }
 0x13e   :  { %8981 = vmatmul.mubr.msk.bf16.gmra.mrb[24].mxu1 %vm159_vm0, %v12468_v45 }
 0x13f   :  { %8984 = vmatprep.mubr.msk.bf16.mxu1 %vm159_vm0, %v12476_v16 }
 0x140   :  { %9165 = vmatmul.mubr.msk.bf16.gmra.mrb[24].mxu0 %vm159_vm0, %v12478_v22  ;;  %v7831_v22 = vld [vmem:[%s14010_s0 + $0x272] sm:$0xff] }
 0x141   :  { %9168 = vmatprep.mubr.msk.bf16.mxu0 %vm159_vm0, %v12480_v60  ;;  %v12518_v60 = vpack.c.bf16 %v7829_v33, %v7828_v21  ;;  %v12520_v41 = vpack.c.bf16 %v7831_v22, %v7830_v58  ;;  %v1147_v22 = vld [vmem:[%s14010_s0 + $0x121] sm:$0xff]  ;;  %v12548_v33 = vpack.c.bf16 %v1146_v25, %v1145_v0  ;;  %v7834_v58 = vld [vmem:[%s14010_s0 + $0x28a] sm:$0xff]  ;;  %v1150_v25 = vld [vmem:[%s14010_s0 + $0x139] sm:$0xff] }
 0x142   :  { %v7833_v21 = vld [vmem:[%s14010_s0 + $0x282] sm:$0xff]  ;;  %v12556_v37 = vpack.c.bf16 %v1148_v49, %v1147_v22  ;;  %v1149_v0 = vld [vmem:[%s14010_s0 + $0x131] sm:$0xff]  ;;  %v7836_v49 = vld [vmem:[%s14010_s0 + $0x29a] sm:$0xff] }
 0x143   :  { %14288 = vst [vmem:[#allocation95_spill] sm:$0xff] %v12518_v60  ;;  %14289 = vst [vmem:[#allocation96_spill] sm:$0xff] %v12520_v41  ;;  %v1152_v22 = vld [vmem:[%s14010_s0 + $0x149] sm:$0xff] }
 0x146   :  { %8985 = vmatmul.mubr.msk.bf16.gmra.mrb[28].mxu1 %vm159_vm0, %v12508_v44 }
 0x147   :  { %8988 = vmatprep.mubr.msk.bf16.mxu1 %vm159_vm0, %v12516_v54 }
 0x148   :  { %9169 = vmatmul.mubr.msk.bf16.gmra.mrb[28].mxu0 %vm159_vm0, %v12518_v60  ;;  %v7835_v60 = vld [vmem:[%s14010_s0 + $0x292] sm:$0xff] }
 0x149   :  { %9172 = vmatprep.mubr.msk.bf16.mxu0 %vm159_vm0, %v12520_v41  ;;  %v12558_v41 = vpack.c.bf16 %v7833_v21, %v7832_v9  ;;  %v12560_v24 = vpack.c.bf16 %v7835_v60, %v7834_v58  ;;  %v1151_v60 = vld [vmem:[%s14010_s0 + $0x141] sm:$0xff]  ;;  %v12588_v21 = vpack.c.bf16 %v1150_v25, %v1149_v0  ;;  %v7838_v58 = vld [vmem:[%s14010_s0 + $0x2aa] sm:$0xff]  ;;  %v1154_v25 = vld [vmem:[%s14010_s0 + $0x159] sm:$0xff] }
 0x14a   :  { %v7837_v9 = vld [vmem:[%s14010_s0 + $0x2a2] sm:$0xff]  ;;  %v12596_v19 = vpack.c.bf16 %v1152_v22, %v1151_v60  ;;  %v1153_v0 = vld [vmem:[%s14010_s0 + $0x151] sm:$0xff] }
 0x14b   :  { %14290 = vst [vmem:[#allocation97_spill] sm:$0xff] %v12558_v41  ;;  %14291 = vst [vmem:[#allocation98_spill] sm:$0xff] %v12560_v24  ;;  %v7841_v60 = vld [vmem:[%s14010_s0 + $0x2c2] sm:$0xff]  ;;  %v12622_v22 = vpack.c.bf16 %v1154_v25, %v1153_v0 }
 0x14e   :  { %8989 = vmatmul.mubr.msk.bf16.gmra.mrb[32].mxu1 %vm159_vm0, %v12548_v33 }
 0x14f   :  { %8992 = vmatprep.mubr.msk.bf16.mxu1 %vm159_vm0, %v12556_v37 }
 0x150   :  { %9173 = vmatmul.mubr.msk.bf16.gmra.mrb[32].mxu0 %vm159_vm0, %v12558_v41  ;;  %v7839_v41 = vld [vmem:[%s14010_s0 + $0x2b2] sm:$0xff] }
 0x151   :  { %9176 = vmatprep.mubr.msk.bf16.mxu0 %vm159_vm0, %v12560_v24  ;;  %v12598_v24 = vpack.c.bf16 %v7837_v9, %v7836_v49  ;;  %v12600_v4 = vpack.c.bf16 %v7839_v41, %v7838_v58  ;;  %v7840_v41 = vld [vmem:[%s14010_s0 + $0x2ba] sm:$0xff]  ;;  %v10854_v9 = vld [vmem:[%s14009_s1 + $0x10] sm:$0xff]  }
 0x152   :  { %v12624_v49 = vpack.c.bf16 %v7841_v60, %v7840_v41 }
 0x156   :  { %8993 = vmatmul.mubr.msk.bf16.gmra.mrb[36].mxu1 %vm159_vm0, %v12588_v21 }
 0x157   :  { %8996 = vmatprep.mubr.msk.bf16.mxu1 %vm159_vm0, %v12596_v19 }
 0x158   :  { %9177 = vmatmul.mubr.msk.bf16.gmra.mrb[36].mxu0 %vm159_vm0, %v12598_v24 }
 0x159   :  { %9180 = vmatprep.mubr.msk.bf16.mxu0 %vm159_vm0, %v12600_v4 }
 0x15e   :  { %8997 = vmatmul.mubr.msk.bf16.gmra.mrb[40].mxu1 %vm159_vm0, %v12622_v22 }
 0x15f   :  { %9186 = vmatprep.mubr.msk.bf16.mxu1 %vm159_vm0, %v11743_v38 }
 0x160   :  { %9181 = vmatmul.mubr.msk.bf16.gmra.mrb[40].mxu0 %vm159_vm0, %v12624_v49 }
 0x161   :  { %9554 = vmatprep.mubr.msk.bf16.mxu0 %vm159_vm0, %v12186_v8 }
 0x166   :  { %9187 = vmatmul.mubr.msk.bf16.vlgmr.msra.gmra.mrb[44].mxu1 %vm159_vm0, %v11774_v34 }
 0x167   :  { %9231 = vmatpush3.bf16.msra.mxu1 %v12256_v23  ;;  %9190 = vmatprep.mubr.msk.bf16.mxu1 %vm159_vm0, %v11782_v47 }
 0x168   :  { %9555 = vmatmul.mubr.msk.bf16.vlgmr.msra.gmra.mrb[44].mxu0 %vm159_vm0, %v12218_v18  ;;  %9276 = vmatprep.subr.bf16.mxu1 %v10854_v9 }
 0x169   :  { %9599 = vmatpush3.bf16.msra.mxu0 %v12256_v23  ;;  %9558 = vmatprep.mubr.msk.bf16.mxu0 %vm159_vm0, %v12226_v57 }
 0x16a   :  { %9644 = vmatprep.subr.bf16.mxu0 %v10854_v9 }
 0x16e   :  { %9191 = vmatmul.mubr.msk.bf16.gmra.mrb[48].mxu1 %vm159_vm0, %v11817_v7 }
 0x16f   :  { %9194 = vmatprep.mubr.msk.bf16.mxu1 %vm159_vm0, %v11826_v36 }
 0x170   :  { %9559 = vmatmul.mubr.msk.bf16.gmra.mrb[48].mxu0 %vm159_vm0, %v12267_v6 }
 0x171   :  { %9562 = vmatprep.mubr.msk.bf16.mxu0 %vm159_vm0, %v12276_v56 }
 0x176   :  { %9195 = vmatmul.mubr.msk.bf16.gmra.mrb[52].mxu1 %vm159_vm0, %v11858_v30 }
 0x177   :  { %9198 = vmatprep.mubr.msk.bf16.mxu1 %vm159_vm0, %v11866_v53 }
 0x178   :  { %9563 = vmatmul.mubr.msk.bf16.gmra.mrb[52].mxu0 %vm159_vm0, %v12308_v13 }
 0x179   :  { %9566 = vmatprep.mubr.msk.bf16.mxu0 %vm159_vm0, %v12316_v32 }
 0x17e   :  { %9199 = vmatmul.mubr.msk.bf16.gmra.mrb[56].mxu1 %vm159_vm0, %v11898_v35 }
 0x17f   :  { %9202 = vmatprep.mubr.msk.bf16.mxu1 %vm159_vm0, %v11906_v3 }
 0x180   :  { %9567 = vmatmul.mubr.msk.bf16.gmra.mrb[56].mxu0 %vm159_vm0, %v12348_v50 }
 0x181   :  { %9570 = vmatprep.mubr.msk.bf16.mxu0 %vm159_vm0, %v12356_v14 }
 0x186   :  { %9203 = vmatmul.mubr.msk.bf16.gmra.mrb[60].mxu1 %vm159_vm0, %v11938_v17 }
 0x187   :  { %9206 = vmatprep.mubr.msk.bf16.mxu1 %vm159_vm0, %v11946_v29 }
 0x188   :  { %9571 = vmatmul.mubr.msk.bf16.gmra.mrb[60].mxu0 %vm159_vm0, %v12388_v61 }
 0x189   :  { %9574 = vmatprep.mubr.msk.bf16.mxu0 %vm159_vm0, %v12396_v12 }
 0x18e   :  { %9207 = vmatmul.mubr.msk.bf16.gmra.mrb[64].mxu1 %vm159_vm0, %v11978_v2 }
 0x18f   :  { %9210 = vmatprep.mubr.msk.bf16.mxu1 %vm159_vm0, %v11986_v51 }
 0x190   :  { %9575 = vmatmul.mubr.msk.bf16.gmra.mrb[64].mxu0 %vm159_vm0, %v12428_v42 }
 0x191   :  { %9578 = vmatprep.mubr.msk.bf16.mxu0 %vm159_vm0, %v12436_v39 }
 0x196   :  { %9211 = vmatmul.mubr.msk.bf16.gmra.mrb[68].mxu1 %vm159_vm0, %v12018_v15 }
 0x197   :  { %9214 = vmatprep.mubr.msk.bf16.mxu1 %vm159_vm0, %v12026_v27 }
 0x198   :  { %9579 = vmatmul.mubr.msk.bf16.gmra.mrb[68].mxu0 %vm159_vm0, %v12468_v45 }
 0x199   :  { %9582 = vmatprep.mubr.msk.bf16.mxu0 %vm159_vm0, %v12476_v16 }
 0x19e   :  { %9215 = vmatmul.mubr.msk.bf16.gmra.mrb[72].mxu1 %vm159_vm0, %v12058_v59 }
 0x19f   :  { %9218 = vmatprep.mubr.msk.bf16.mxu1 %vm159_vm0, %v12066_v62 }
 0x1a0   :  { %9583 = vmatmul.mubr.msk.bf16.gmra.mrb[72].mxu0 %vm159_vm0, %v12508_v44 }
 0x1a1   :  { %9586 = vmatprep.mubr.msk.bf16.mxu0 %vm159_vm0, %v12516_v54 }
 0x1a6   :  { %9219 = vmatmul.mubr.msk.bf16.gmra.mrb[76].mxu1 %vm159_vm0, %v12098_v11 }
 0x1a7   :  { %9222 = vmatprep.mubr.msk.bf16.mxu1 %vm159_vm0, %v12106_v46 }
 0x1a8   :  { %9587 = vmatmul.mubr.msk.bf16.gmra.mrb[76].mxu0 %vm159_vm0, %v12548_v33 }
 0x1a9   :  { %9590 = vmatprep.mubr.msk.bf16.mxu0 %vm159_vm0, %v12556_v37 }
 0x1ae   :  { %9223 = vmatmul.mubr.msk.bf16.gmra.mrb[80].mxu1 %vm159_vm0, %v12138_v48 }
 0x1af   :  { %9226 = vmatprep.mubr.msk.bf16.mxu1 %vm159_vm0, %v12146_v26 }
 0x1b0   :  { %9591 = vmatmul.mubr.msk.bf16.gmra.mrb[80].mxu0 %vm159_vm0, %v12588_v21 }
 0x1b1   :  { %9594 = vmatprep.mubr.msk.bf16.mxu0 %vm159_vm0, %v12596_v19 }
 0x1b6   :  { %9227 = vmatmul.mubr.msk.bf16.gmra.mrb[84].mxu1 %vm159_vm0, %v12178_v63 }
 0x1b7   :  { %9232 = vmatprep.mubr.msk.bf16.mxu1 %vm159_vm0, %v10899_v5  ;;  %v12736_v5 = vld [vmem:[%s14009_s1 + $0x18] sm:$0xff]  }
 0x1b8   :  { %9595 = vmatmul.mubr.msk.bf16.gmra.mrb[84].mxu0 %vm159_vm0, %v12622_v22 }
 0x1b9   :  { %9600 = vmatprep.mubr.msk.bf16.mxu0 %vm159_vm0, %v11743_v38  ;;  %v14293_v38 = vld [vmem:[#allocation14_spill] sm:$0xff] }
 0x1be   :  { %9233 = vmatmul.mubr.msk.bf16.vlgmr.msra.gmra.mrb[44].mxu1 %vm159_vm0, %v10912_v10  ;;  %v14292_v10 = vld [vmem:[#allocation11_spill] sm:$0xff] }
 0x1bf   :  { %9277 = vmatpush3.bf16.msra.mxu1 %v10854_v9  ;;  %9236 = vmatprep.mubr.msk.bf16.mxu1 %vm159_vm0, %v10948_v20 }
 0x1c0   :  { %9601 = vmatmul.mubr.msk.bf16.vlgmr.msra.gmra.mrb[44].mxu0 %vm159_vm0, %v11774_v34  ;;  %9322 = vmatprep.subr.bf16.mxu1 %v12736_v5 }
 0x1c1   :  { %9645 = vmatpush3.bf16.msra.mxu0 %v10854_v9  ;;  %9604 = vmatprep.mubr.msk.bf16.mxu0 %vm159_vm0, %v11782_v47  ;;  %v14295_v9 = vld [vmem:[#allocation18_spill] sm:$0xff] }
 0x1c2   :  { %9690 = vmatprep.subr.bf16.mxu0 %v12736_v5 }
 0x1c6   :  { %9237 = vmatmul.mubr.msk.bf16.gmra.mrb[48].mxu1 %vm159_vm0, %v10972_v28 }
 0x1c7   :  { %9240 = vmatprep.mubr.msk.bf16.mxu1 %vm159_vm0, %v10982_v31 }
 0x1c8   :  { %9605 = vmatmul.mubr.msk.bf16.gmra.mrb[48].mxu0 %vm159_vm0, %v11817_v7  ;;  %v14294_v7 = vld [vmem:[#allocation15_spill] sm:$0xff] }
 0x1c9   :  { %9608 = vmatprep.mubr.msk.bf16.mxu0 %vm159_vm0, %v11826_v36 }
 0x1ce   :  { %9241 = vmatmul.mubr.msk.bf16.gmra.mrb[52].mxu1 %vm159_vm0, %v11014_v40 }
 0x1cf   :  { %9244 = vmatprep.mubr.msk.bf16.mxu1 %vm159_vm0, %v11022_v43 }
 0x1d0   :  { %9609 = vmatmul.mubr.msk.bf16.gmra.mrb[52].mxu0 %vm159_vm0, %v11858_v30 }
 0x1d1   :  { %9612 = vmatprep.mubr.msk.bf16.mxu0 %vm159_vm0, %v11866_v53 }
 0x1d6   :  { %9245 = vmatmul.mubr.msk.bf16.gmra.mrb[56].mxu1 %vm159_vm0, %v11054_v52 }
 0x1d7   :  { %9248 = vmatprep.mubr.msk.bf16.mxu1 %vm159_vm0, %v11062_v55 }
 0x1d8   :  { %9613 = vmatmul.mubr.msk.bf16.gmra.mrb[56].mxu0 %vm159_vm0, %v11898_v35 }
 0x1d9   :  { %9616 = vmatprep.mubr.msk.bf16.mxu0 %vm159_vm0, %v11906_v3 }
 0x1de   :  { %9249 = vmatmul.mubr.msk.bf16.gmra.mrb[60].mxu1 %vm159_vm0, %v11094_v1 }
 0x1df   :  { %9252 = vmatprep.mubr.msk.bf16.mxu1 %vm159_vm0, %v14292_v10  ;;  %v14296_v10 = vld [vmem:[#allocation19_spill] sm:$0xff] }
 0x1e0   :  { %9617 = vmatmul.mubr.msk.bf16.gmra.mrb[60].mxu0 %vm159_vm0, %v11938_v17 }
 0x1e1   :  { %v8958_v20 = vpop.f32.mrb[0].mxu1  ;;  %9620 = vmatprep.mubr.msk.bf16.mxu0 %vm159_vm0, %v11946_v29 }
 0x1e2   :  { %v1286_v28 = vpop.f32.mrb[1].mxu1 }
 0x1e3   :  { %v9142_v31 = vpop.f32.mrb[0].mxu0  ;;  %v8959_v40 = vpop.f32.mrb[2].mxu1 }
 0x1e4   :  { %v12774_v43 = vadd.f32 %v9142_v31, %v8958_v20  ;;  %v2862_v52 = vpop.f32.mrb[1].mxu0  ;;  %v1289_v55 = vpop.f32.mrb[3].mxu1 }
 0x1e5   :  { %v12776_v3 = vadd.f32 %v2862_v52, %v1286_v28  ;;  %v9143_v1 = vpop.f32.mrb[2].mxu0 }
 0x1e6   :  { %v12778_v53 = vadd.f32 %v9143_v1, %v8959_v40  ;;  %v2865_v47 = vpop.f32.mrb[3].mxu0  ;;  %9253 = vmatmul.mubr.msk.bf16.gmra.mrb[64].mxu1 %vm159_vm0, %v14293_v38 }
 0x1e7   :  { %v12782_v34 = vadd.f32 %v2865_v47, %v1289_v55  ;;  %9256 = vmatprep.mubr.msk.bf16.mxu1 %vm159_vm0, %v14294_v7 }
 0x1e8   :  { %9621 = vmatmul.mubr.msk.bf16.gmra.mrb[64].mxu0 %vm159_vm0, %v11978_v2 }
 0x1e9   :  { %v8962_v29 = vpop.f32.mrb[4].mxu1  ;;  %9624 = vmatprep.mubr.msk.bf16.mxu0 %vm159_vm0, %v11986_v51 }
 0x1ea   :  { %v1302_v36 = vpop.f32.mrb[5].mxu1 }
 0x1eb   :  { %v9146_v30 = vpop.f32.mrb[4].mxu0  ;;  %v8963_v35 = vpop.f32.mrb[6].mxu1 }
 0x1ec   :  { %v12790_v17 = vadd.f32 %v9146_v30, %v8962_v29  ;;  %v2878_v23 = vpop.f32.mrb[5].mxu0  ;;  %v1305_v58 = vpop.f32.mrb[7].mxu1  ;;  %v14297_v29 = vld [vmem:[#allocation22_spill] sm:$0xff] }
 0x1ed   :  { %v12792_v0 = vadd.f32 %v2878_v23, %v1302_v36  ;;  %v9147_v25 = vpop.f32.mrb[6].mxu0  ;;  %v14298_v36 = vld [vmem:[#allocation23_spill] sm:$0xff] }
 0x1ee   :  { %v12794_v41 = vadd.f32 %v9147_v25, %v8963_v35  ;;  %v2881_v60 = vpop.f32.mrb[7].mxu0  ;;  %9257 = vmatmul.mubr.msk.bf16.gmra.mrb[68].mxu1 %vm159_vm0, %v14295_v9 }
 0x1ef   :  { %v12798_v2 = vadd.f32 %v2881_v60, %v1305_v58  ;;  %9260 = vmatprep.mubr.msk.bf16.mxu1 %vm159_vm0, %v14296_v10 }
 0x1f0   :  { %9625 = vmatmul.mubr.msk.bf16.gmra.mrb[68].mxu0 %vm159_vm0, %v12018_v15 }
 0x1f1   :  { %v8966_v51 = vpop.f32.mrb[8].mxu1  ;;  %9628 = vmatprep.mubr.msk.bf16.mxu0 %vm159_vm0, %v12026_v27 }
 0x1f2   :  { %v1318_v20 = vpop.f32.mrb[9].mxu1 }
 0x1f3   :  { %v9150_v28 = vpop.f32.mrb[8].mxu0  ;;  %v8967_v31 = vpop.f32.mrb[10].mxu1 }
 0x1f4   :  { %v12806_v40 = vadd.f32 %v9150_v28, %v8966_v51  ;;  %v2894_v52 = vpop.f32.mrb[9].mxu0  ;;  %v1321_v55 = vpop.f32.mrb[11].mxu1  ;;  %v14299_v28 = vld [vmem:[#allocation26_spill] sm:$0xff] }
 0x1f5   :  { %v12808_v1 = vadd.f32 %v2894_v52, %v1318_v20  ;;  %v9151_v47 = vpop.f32.mrb[10].mxu0 }
 0x1f6   :  { %v12810_v38 = vadd.f32 %v9151_v47, %v8967_v31  ;;  %v2897_v7 = vpop.f32.mrb[11].mxu0  ;;  %9261 = vmatmul.mubr.msk.bf16.gmra.mrb[72].mxu1 %vm159_vm0, %v14297_v29  ;;  %v14300_v31 = vld [vmem:[#allocation27_spill] sm:$0xff] }
 0x1f7   :  { %v12814_v15 = vadd.f32 %v2897_v7, %v1321_v55  ;;  %9264 = vmatprep.mubr.msk.bf16.mxu1 %vm159_vm0, %v14298_v36 }
 0x1f8   :  { %9629 = vmatmul.mubr.msk.bf16.gmra.mrb[72].mxu0 %vm159_vm0, %v12058_v59 }
 0x1f9   :  { %v8970_v27 = vpop.f32.mrb[12].mxu1  ;;  %9632 = vmatprep.mubr.msk.bf16.mxu0 %vm159_vm0, %v12066_v62 }
 0x1fa   :  { %v1334_v30 = vpop.f32.mrb[13].mxu1 }
 0x1fb   :  { %v9154_v35 = vpop.f32.mrb[12].mxu0  ;;  %v8971_v23 = vpop.f32.mrb[14].mxu1 }
 0x1fc   :  { %v12822_v58 = vadd.f32 %v9154_v35, %v8970_v27  ;;  %v2910_v25 = vpop.f32.mrb[13].mxu0  ;;  %v1337_v60 = vpop.f32.mrb[15].mxu1 }
 0x1fd   :  { %v12824_v9 = vadd.f32 %v2910_v25, %v1334_v30  ;;  %v9155_v10 = vpop.f32.mrb[14].mxu0  ;;  %v14301_v25 = vld [vmem:[#allocation30_spill] sm:$0xff] }
 0x1fe   :  { %v12826_v51 = vadd.f32 %v9155_v10, %v8971_v23  ;;  %v2913_v20 = vpop.f32.mrb[15].mxu0  ;;  %9265 = vmatmul.mubr.msk.bf16.gmra.mrb[76].mxu1 %vm159_vm0, %v14299_v28 }
 0x1ff   :  { %v12830_v59 = vadd.f32 %v2913_v20, %v1337_v60  ;;  %9268 = vmatprep.mubr.msk.bf16.mxu1 %vm159_vm0, %v14300_v31  ;;  %v14302_v60 = vld [vmem:[#allocation31_spill] sm:$0xff] }
 0x200   :  { %9633 = vmatmul.mubr.msk.bf16.gmra.mrb[76].mxu0 %vm159_vm0, %v12098_v11 }
 0x201   :  { %v8974_v62 = vpop.f32.mrb[16].mxu1  ;;  %9636 = vmatprep.mubr.msk.bf16.mxu0 %vm159_vm0, %v12106_v46 }
 0x202   :  { %v1350_v52 = vpop.f32.mrb[17].mxu1 }
 0x203   :  { %v9158_v55 = vpop.f32.mrb[16].mxu0  ;;  %v8975_v47 = vpop.f32.mrb[18].mxu1 }
 0x204   :  { %v12838_v7 = vadd.f32 %v9158_v55, %v8974_v62  ;;  %v2926_v29 = vpop.f32.mrb[17].mxu0  ;;  %v1353_v36 = vpop.f32.mrb[19].mxu1 }
 0x205   :  { %v12840_v27 = vadd.f32 %v2926_v29, %v1350_v52  ;;  %v9159_v30 = vpop.f32.mrb[18].mxu0 }
 0x206   :  { %v12842_v35 = vadd.f32 %v9159_v30, %v8975_v47  ;;  %v2929_v23 = vpop.f32.mrb[19].mxu0  ;;  %9269 = vmatmul.mubr.msk.bf16.gmra.mrb[80].mxu1 %vm159_vm0, %v14301_v25  ;;  %v14303_v30 = vld [vmem:[#allocation34_spill] sm:$0xff] }
 0x207   :  { %v12846_v11 = vadd.f32 %v2929_v23, %v1353_v36  ;;  %9272 = vmatprep.mubr.msk.bf16.mxu1 %vm159_vm0, %v14302_v60  ;;  %v14304_v23 = vld [vmem:[#allocation2_spill] sm:$0xff] }
 0x208   :  { %9637 = vmatmul.mubr.msk.bf16.gmra.mrb[80].mxu0 %vm159_vm0, %v12138_v48 }
 0x209   :  { %v8978_v46 = vpop.f32.mrb[20].mxu1  ;;  %9640 = vmatprep.mubr.msk.bf16.mxu0 %vm159_vm0, %v12146_v26 }
 0x20a   :  { %v1366_v10 = vpop.f32.mrb[21].mxu1 }
 0x20b   :  { %v9162_v20 = vpop.f32.mrb[20].mxu0  ;;  %v8979_v28 = vpop.f32.mrb[22].mxu1 }
 0x20c   :  { %v12854_v31 = vadd.f32 %v9162_v20, %v8978_v46  ;;  %v2942_v62 = vpop.f32.mrb[21].mxu0  ;;  %v1369_v52 = vpop.f32.mrb[23].mxu1 }
 0x20d   :  { %v12856_v55 = vadd.f32 %v2942_v62, %v1366_v10  ;;  %v9163_v47 = vpop.f32.mrb[22].mxu0 }
 0x20e   :  { %v12858_v29 = vadd.f32 %v9163_v47, %v8979_v28  ;;  %v2945_v36 = vpop.f32.mrb[23].mxu0  ;;  %9273 = vmatmul.mubr.msk.bf16.gmra.mrb[84].mxu1 %vm159_vm0, %v14303_v30  ;;  %v12888_v30 = vld [vmem:[%s14009_s1 + $0x20] sm:$0xff]  }
 0x20f   :  { %v12862_v48 = vadd.f32 %v2945_v36, %v1369_v52  ;;  %9278 = vmatprep.mubr.msk.bf16.mxu1 %vm159_vm0, %v12186_v8  ;;  %v14308_v36 = vld [vmem:[#allocation3_spill] sm:$0xff] }
 0x210   :  { %9641 = vmatmul.mubr.msk.bf16.gmra.mrb[84].mxu0 %vm159_vm0, %v12178_v63 }
 0x211   :  { %v8982_v26 = vpop.f32.mrb[24].mxu1  ;;  %9646 = vmatprep.mubr.msk.bf16.mxu0 %vm159_vm0, %v14304_v23 }
 0x212   :  { %v1382_v25 = vpop.f32.mrb[25].mxu1 }
 0x213   :  { %v9166_v60 = vpop.f32.mrb[24].mxu0  ;;  %v8983_v46 = vpop.f32.mrb[26].mxu1 }
 0x214   :  { %v12870_v10 = vadd.f32 %v9166_v60, %v8982_v26  ;;  %v2958_v20 = vpop.f32.mrb[25].mxu0  ;;  %v1385_v28 = vpop.f32.mrb[27].mxu1 }
 0x215   :  { %v12872_v62 = vadd.f32 %v2958_v20, %v1382_v25  ;;  %v9167_v52 = vpop.f32.mrb[26].mxu0 }
 0x216   :  { %v12874_v47 = vadd.f32 %v9167_v52, %v8983_v46  ;;  %v2961_v8 = vpop.f32.mrb[27].mxu0  ;;  %9279 = vmatmul.mubr.msk.bf16.vlgmr.msra.gmra.mrb[44].mxu1 %vm159_vm0, %v12218_v18  ;;  %v14309_v18 = vld [vmem:[#allocation4_spill] sm:$0xff] }
 0x217   :  { %14305 = vst [vmem:[#allocation11_spill] sm:$0xff] %v12872_v62  ;;  %v12878_v63 = vadd.f32 %v2961_v8, %v1385_v28  ;;  %9323 = vmatpush3.bf16.msra.mxu1 %v12736_v5  ;;  %9282 = vmatprep.mubr.msk.bf16.mxu1 %vm159_vm0, %v12226_v57  ;;  %v14314_v62 = vld [vmem:[#allocation5_spill] sm:$0xff] }
 0x218   :  { %14306 = vst [vmem:[#allocation14_spill] sm:$0xff] %v12874_v47  ;;  %9647 = vmatmul.mubr.msk.bf16.vlgmr.msra.gmra.mrb[44].mxu0 %vm159_vm0, %v14308_v36  ;;  %9368 = vmatprep.subr.bf16.mxu1 %v12888_v30 }
 0x219   :  { %14307 = vst [vmem:[#allocation15_spill] sm:$0xff] %v12878_v63  ;;  %v8986_v26 = vpop.f32.mrb[28].mxu1  ;;  %9691 = vmatpush3.bf16.msra.mxu0 %v12736_v5  ;;  %9650 = vmatprep.mubr.msk.bf16.mxu0 %vm159_vm0, %v14309_v18 }
 0x21a   :  { %v1398_v25 = vpop.f32.mrb[29].mxu1  ;;  %9736 = vmatprep.subr.bf16.mxu0 %v12888_v30 }
 0x21b   :  { %v9170_v57 = vpop.f32.mrb[28].mxu0  ;;  %v8987_v60 = vpop.f32.mrb[30].mxu1 }
 0x21c   :  { %v12895_v46 = vadd.f32 %v9170_v57, %v8986_v26  ;;  %v2974_v20 = vpop.f32.mrb[29].mxu0  ;;  %v1401_v28 = vpop.f32.mrb[31].mxu1  ;;  %v14315_v57 = vld [vmem:[#allocation6_spill] sm:$0xff] }
 0x21d   :  { %v12897_v52 = vadd.f32 %v2974_v20, %v1398_v25  ;;  %v9171_v8 = vpop.f32.mrb[30].mxu0 }
 0x21e   :  { %14310 = vst [vmem:[#allocation18_spill] sm:$0xff] %v12895_v46  ;;  %v12899_v63 = vadd.f32 %v9171_v8, %v8987_v60  ;;  %v2977_v47 = vpop.f32.mrb[31].mxu0  ;;  %9283 = vmatmul.mubr.msk.bf16.gmra.mrb[48].mxu1 %vm159_vm0, %v12267_v6  ;;  %v14320_v46 = vld [vmem:[#allocation7_spill] sm:$0xff] }
 0x21f   :  { %14311 = vst [vmem:[#allocation19_spill] sm:$0xff] %v12897_v52  ;;  %v12903_v5 = vadd.f32 %v2977_v47, %v1401_v28  ;;  %9286 = vmatprep.mubr.msk.bf16.mxu1 %vm159_vm0, %v12276_v56 }
 0x220   :  { %14312 = vst [vmem:[#allocation22_spill] sm:$0xff] %v12899_v63  ;;  %9651 = vmatmul.mubr.msk.bf16.gmra.mrb[48].mxu0 %vm159_vm0, %v14314_v62 }
 0x221   :  { %14313 = vst [vmem:[#allocation23_spill] sm:$0xff] %v12903_v5  ;;  %v8990_v26 = vpop.f32.mrb[32].mxu1  ;;  %9654 = vmatprep.mubr.msk.bf16.mxu0 %vm159_vm0, %v14315_v57 }
 0x222   :  { %v1414_v25 = vpop.f32.mrb[33].mxu1 }
 0x223   :  { %v9174_v20 = vpop.f32.mrb[32].mxu0  ;;  %v8991_v60 = vpop.f32.mrb[34].mxu1 }
 0x224   :  { %v12911_v8 = vadd.f32 %v9174_v20, %v8990_v26  ;;  %v2990_v63 = vpop.f32.mrb[33].mxu0  ;;  %v1417_v52 = vpop.f32.mrb[35].mxu1  ;;  %v14321_v20 = vld [vmem:[#allocation8_spill] sm:$0xff] }
 0x225   :  { %v12913_v6 = vadd.f32 %v2990_v63, %v1414_v25  ;;  %v9175_v47 = vpop.f32.mrb[34].mxu0 }
 0x226   :  { %14316 = vst [vmem:[#allocation26_spill] sm:$0xff] %v12911_v8  ;;  %v12915_v28 = vadd.f32 %v9175_v47, %v8991_v60  ;;  %v2993_v56 = vpop.f32.mrb[35].mxu0  ;;  %9287 = vmatmul.mubr.msk.bf16.gmra.mrb[52].mxu1 %vm159_vm0, %v12308_v13  ;;  %v14326_v8 = vld [vmem:[#allocation9_spill] sm:$0xff] }
 0x227   :  { %14317 = vst [vmem:[#allocation27_spill] sm:$0xff] %v12913_v6  ;;  %v12919_v5 = vadd.f32 %v2993_v56, %v1417_v52  ;;  %9290 = vmatprep.mubr.msk.bf16.mxu1 %vm159_vm0, %v12316_v32 }
 0x228   :  { %14318 = vst [vmem:[#allocation30_spill] sm:$0xff] %v12915_v28  ;;  %9655 = vmatmul.mubr.msk.bf16.gmra.mrb[52].mxu0 %vm159_vm0, %v14320_v46 }
 0x229   :  { %14319 = vst [vmem:[#allocation31_spill] sm:$0xff] %v12919_v5  ;;  %v8994_v26 = vpop.f32.mrb[36].mxu1  ;;  %9658 = vmatprep.mubr.msk.bf16.mxu0 %vm159_vm0, %v14321_v20 }
 0x22a   :  { %v1430_v63 = vpop.f32.mrb[37].mxu1 }
 0x22b   :  { %v9178_v25 = vpop.f32.mrb[36].mxu0  ;;  %v8995_v60 = vpop.f32.mrb[38].mxu1 }
 0x22c   :  { %v12927_v47 = vadd.f32 %v9178_v25, %v8994_v26  ;;  %v3006_v28 = vpop.f32.mrb[37].mxu0  ;;  %v1433_v6 = vpop.f32.mrb[39].mxu1  ;;  %v14327_v25 = vld [vmem:[#allocation10_spill] sm:$0xff] }
 0x22d   :  { %v12929_v13 = vadd.f32 %v3006_v28, %v1430_v63  ;;  %v9179_v52 = vpop.f32.mrb[38].mxu0 }
 0x22e   :  { %14322 = vst [vmem:[#allocation34_spill] sm:$0xff] %v12927_v47  ;;  %v12931_v56 = vadd.f32 %v9179_v52, %v8995_v60  ;;  %v3009_v32 = vpop.f32.mrb[39].mxu0  ;;  %9291 = vmatmul.mubr.msk.bf16.gmra.mrb[56].mxu1 %vm159_vm0, %v12348_v50  ;;  %v14328_v47 = vld [vmem:[#allocation12_spill] sm:$0xff] }
 0x22f   :  { %14323 = vst [vmem:[#allocation2_spill] sm:$0xff] %v12929_v13  ;;  %v12935_v5 = vadd.f32 %v3009_v32, %v1433_v6  ;;  %9294 = vmatprep.mubr.msk.bf16.mxu1 %vm159_vm0, %v12356_v14 }
 0x230   :  { %14324 = vst [vmem:[#allocation3_spill] sm:$0xff] %v12931_v56  ;;  %9659 = vmatmul.mubr.msk.bf16.gmra.mrb[56].mxu0 %vm159_vm0, %v14326_v8 }
 0x231   :  { %14325 = vst [vmem:[#allocation4_spill] sm:$0xff] %v12935_v5  ;;  %v8998_v26 = vpop.f32.mrb[40].mxu1  ;;  %9662 = vmatprep.mubr.msk.bf16.mxu0 %vm159_vm0, %v14327_v25 }
 0x232   :  { %v1446_v28 = vpop.f32.mrb[41].mxu1 }
 0x233   :  { %v9182_v63 = vpop.f32.mrb[40].mxu0  ;;  %v8999_v60 = vpop.f32.mrb[42].mxu1 }
 0x234   :  { %v12943_v52 = vadd.f32 %v9182_v63, %v8998_v26  ;;  %v3022_v56 = vpop.f32.mrb[41].mxu0  ;;  %v1449_v13 = vpop.f32.mrb[43].mxu1  ;;  %v14329_v26 = vld [vmem:[#allocation13_spill] sm:$0xff]  ;;  %v14356_v63 = vld [vmem:[#allocation51_spill] sm:$0xff] }
 0x235   :  { %v12945_v50 = vadd.f32 %v3022_v56, %v1446_v28  ;;  %v9183_v6 = vpop.f32.mrb[42].mxu0  ;;  %v14330_v56 = vld [vmem:[#allocation16_spill] sm:$0xff]  ;;  %v14355_v28 = vld [vmem:[#allocation50_spill] sm:$0xff] }
 0x236   :  { %v12947_v32 = vadd.f32 %v9183_v6, %v8999_v60  ;;  %v3025_v14 = vpop.f32.mrb[43].mxu0  ;;  %9295 = vmatmul.mubr.msk.bf16.gmra.mrb[60].mxu1 %vm159_vm0, %v12388_v61  ;;  %v14331_v61 = vld [vmem:[#allocation17_spill] sm:$0xff]  ;;  %v14357_v60 = vld [vmem:[#allocation52_spill] sm:$0xff] }
 0x237   :  { %v12951_v5 = vadd.f32 %v3025_v14, %v1449_v13  ;;  %9298 = vmatprep.mubr.msk.bf16.mxu1 %vm159_vm0, %v12396_v12  ;;  %v14332_v12 = vld [vmem:[#allocation20_spill] sm:$0xff]  ;;  %v14333_v13 = vld [vmem:[#allocation21_spill] sm:$0xff]  ;;  %v14359_v14 = vld [vmem:[#allocation54_spill] sm:$0xff] }
 0x238   :  { %9663 = vmatmul.mubr.msk.bf16.gmra.mrb[60].mxu0 %vm159_vm0, %v14328_v47  ;;  %v14358_v6 = vld [vmem:[#allocation53_spill] sm:$0xff] }
 0x239   :  { %9666 = vmatprep.mubr.msk.bf16.mxu0 %vm159_vm0, %v14329_v26 }
 0x23e   :  { %9299 = vmatmul.mubr.msk.bf16.gmra.mrb[64].mxu1 %vm159_vm0, %v12428_v42  ;;  %v14335_v42 = vld [vmem:[#allocation25_spill] sm:$0xff] }
 0x23f   :  { %9302 = vmatprep.mubr.msk.bf16.mxu1 %vm159_vm0, %v12436_v39  ;;  %v14334_v39 = vld [vmem:[#allocation24_spill] sm:$0xff] }
 0x240   :  { %9667 = vmatmul.mubr.msk.bf16.gmra.mrb[64].mxu0 %vm159_vm0, %v14330_v56 }
 0x241   :  { %9670 = vmatprep.mubr.msk.bf16.mxu0 %vm159_vm0, %v14331_v61 }
 0x246   :  { %9303 = vmatmul.mubr.msk.bf16.gmra.mrb[68].mxu1 %vm159_vm0, %v12468_v45  ;;  %v14337_v45 = vld [vmem:[#allocation29_spill] sm:$0xff] }
 0x247   :  { %9306 = vmatprep.mubr.msk.bf16.mxu1 %vm159_vm0, %v12476_v16  ;;  %v14336_v16 = vld [vmem:[#allocation28_spill] sm:$0xff] }
 0x248   :  { %9671 = vmatmul.mubr.msk.bf16.gmra.mrb[68].mxu0 %vm159_vm0, %v14332_v12 }
 0x249   :  { %9674 = vmatprep.mubr.msk.bf16.mxu0 %vm159_vm0, %v14333_v13 }
 0x24e   :  { %9307 = vmatmul.mubr.msk.bf16.gmra.mrb[72].mxu1 %vm159_vm0, %v12508_v44  ;;  %v14339_v44 = vld [vmem:[#allocation33_spill] sm:$0xff] }
 0x24f   :  { %9310 = vmatprep.mubr.msk.bf16.mxu1 %vm159_vm0, %v12516_v54  ;;  %v14338_v54 = vld [vmem:[#allocation32_spill] sm:$0xff] }
 0x250   :  { %9675 = vmatmul.mubr.msk.bf16.gmra.mrb[72].mxu0 %vm159_vm0, %v14334_v39 }
 0x251   :  { %9678 = vmatprep.mubr.msk.bf16.mxu0 %vm159_vm0, %v14335_v42 }
 0x256   :  { %9311 = vmatmul.mubr.msk.bf16.gmra.mrb[76].mxu1 %vm159_vm0, %v12548_v33  ;;  %v14341_v33 = vld [vmem:[#allocation36_spill] sm:$0xff] }
 0x257   :  { %9314 = vmatprep.mubr.msk.bf16.mxu1 %vm159_vm0, %v12556_v37  ;;  %v14340_v37 = vld [vmem:[#allocation35_spill] sm:$0xff] }
 0x258   :  { %9679 = vmatmul.mubr.msk.bf16.gmra.mrb[76].mxu0 %vm159_vm0, %v14336_v16 }
 0x259   :  { %9682 = vmatprep.mubr.msk.bf16.mxu0 %vm159_vm0, %v14337_v45 }
 0x25e   :  { %9315 = vmatmul.mubr.msk.bf16.gmra.mrb[80].mxu1 %vm159_vm0, %v12588_v21  ;;  %v10857_v21 = vld [vmem:[%s14009_s1 + $0x28] sm:$0xff]  }
 0x25f   :  { %9318 = vmatprep.mubr.msk.bf16.mxu1 %vm159_vm0, %v12596_v19  ;;  %v14342_v19 = vld [vmem:[#allocation37_spill] sm:$0xff] }
 0x260   :  { %9683 = vmatmul.mubr.msk.bf16.gmra.mrb[80].mxu0 %vm159_vm0, %v14338_v54 }
 0x261   :  { %9686 = vmatprep.mubr.msk.bf16.mxu0 %vm159_vm0, %v14339_v44 }
 0x266   :  { %9319 = vmatmul.mubr.msk.bf16.gmra.mrb[84].mxu1 %vm159_vm0, %v12622_v22  ;;  %v14343_v22 = vld [vmem:[#allocation38_spill] sm:$0xff] }
 0x267   :  { %9324 = vmatprep.mubr.msk.bf16.mxu1 %vm159_vm0, %v14304_v23  ;;  %v14344_v23 = vld [vmem:[#allocation39_spill] sm:$0xff] }
 0x268   :  { %9687 = vmatmul.mubr.msk.bf16.gmra.mrb[84].mxu0 %vm159_vm0, %v14340_v37 }
 0x269   :  { %9692 = vmatprep.mubr.msk.bf16.mxu0 %vm159_vm0, %v14341_v33 }
 0x26e   :  { %9325 = vmatmul.mubr.msk.bf16.vlgmr.msra.gmra.mrb[44].mxu1 %vm159_vm0, %v14308_v36  ;;  %v14345_v36 = vld [vmem:[#allocation40_spill] sm:$0xff] }
 0x26f   :  { %9369 = vmatpush3.bf16.msra.mxu1 %v12888_v30  ;;  %9328 = vmatprep.mubr.msk.bf16.mxu1 %vm159_vm0, %v14309_v18  ;;  %v14347_v18 = vld [vmem:[#allocation42_spill] sm:$0xff] }
 0x270   :  { %9693 = vmatmul.mubr.msk.bf16.vlgmr.msra.gmra.mrb[44].mxu0 %vm159_vm0, %v14342_v19  ;;  %9414 = vmatprep.subr.bf16.mxu1 %v10857_v21 }
 0x271   :  { %9737 = vmatpush3.bf16.msra.mxu0 %v12888_v30  ;;  %9696 = vmatprep.mubr.msk.bf16.mxu0 %vm159_vm0, %v14343_v22  ;;  %v14346_v30 = vld [vmem:[#allocation41_spill] sm:$0xff] }
 0x272   :  { %9782 = vmatprep.subr.bf16.mxu0 %v10857_v21 }
 0x276   :  { %9329 = vmatmul.mubr.msk.bf16.gmra.mrb[48].mxu1 %vm159_vm0, %v14314_v62  ;;  %v14348_v62 = vld [vmem:[#allocation43_spill] sm:$0xff] }
 0x277   :  { %9332 = vmatprep.mubr.msk.bf16.mxu1 %vm159_vm0, %v14315_v57  ;;  %v14349_v57 = vld [vmem:[#allocation44_spill] sm:$0xff] }
 0x278   :  { %9697 = vmatmul.mubr.msk.bf16.gmra.mrb[48].mxu0 %vm159_vm0, %v14344_v23 }
 0x279   :  { %9700 = vmatprep.mubr.msk.bf16.mxu0 %vm159_vm0, %v14345_v36 }
 0x27e   :  { %9333 = vmatmul.mubr.msk.bf16.gmra.mrb[52].mxu1 %vm159_vm0, %v14320_v46  ;;  %v14350_v46 = vld [vmem:[#allocation45_spill] sm:$0xff] }
 0x27f   :  { %9336 = vmatprep.mubr.msk.bf16.mxu1 %vm159_vm0, %v14321_v20  ;;  %v14351_v20 = vld [vmem:[#allocation46_spill] sm:$0xff] }
 0x280   :  { %9701 = vmatmul.mubr.msk.bf16.gmra.mrb[52].mxu0 %vm159_vm0, %v14346_v30 }
 0x281   :  { %9704 = vmatprep.mubr.msk.bf16.mxu0 %vm159_vm0, %v14347_v18 }
 0x286   :  { %9337 = vmatmul.mubr.msk.bf16.gmra.mrb[56].mxu1 %vm159_vm0, %v14326_v8  ;;  %v14352_v8 = vld [vmem:[#allocation47_spill] sm:$0xff] }
 0x287   :  { %9340 = vmatprep.mubr.msk.bf16.mxu1 %vm159_vm0, %v14327_v25  ;;  %v14353_v25 = vld [vmem:[#allocation48_spill] sm:$0xff] }
 0x288   :  { %9705 = vmatmul.mubr.msk.bf16.gmra.mrb[56].mxu0 %vm159_vm0, %v14348_v62 }
 0x289   :  { %9708 = vmatprep.mubr.msk.bf16.mxu0 %vm159_vm0, %v14349_v57 }
 0x28e   :  { %9341 = vmatmul.mubr.msk.bf16.gmra.mrb[60].mxu1 %vm159_vm0, %v14328_v47  ;;  %v14354_v47 = vld [vmem:[#allocation49_spill] sm:$0xff] }
 0x28f   :  { %9344 = vmatprep.mubr.msk.bf16.mxu1 %vm159_vm0, %v14329_v26  ;;  %v14360_v26 = vld [vmem:[#allocation55_spill] sm:$0xff] }
 0x290   :  { %9709 = vmatmul.mubr.msk.bf16.gmra.mrb[60].mxu0 %vm159_vm0, %v14350_v46 }
 0x291   :  { %9712 = vmatprep.mubr.msk.bf16.mxu0 %vm159_vm0, %v14351_v20 }
 0x296   :  { %9345 = vmatmul.mubr.msk.bf16.gmra.mrb[64].mxu1 %vm159_vm0, %v14330_v56  ;;  %v14361_v56 = vld [vmem:[#allocation56_spill] sm:$0xff] }
 0x297   :  { %9348 = vmatprep.mubr.msk.bf16.mxu1 %vm159_vm0, %v14331_v61  ;;  %v14362_v61 = vld [vmem:[#allocation57_spill] sm:$0xff] }
 0x298   :  { %9713 = vmatmul.mubr.msk.bf16.gmra.mrb[64].mxu0 %vm159_vm0, %v14352_v8 }
 0x299   :  { %9716 = vmatprep.mubr.msk.bf16.mxu0 %vm159_vm0, %v14353_v25 }
 0x29e   :  { %9349 = vmatmul.mubr.msk.bf16.gmra.mrb[68].mxu1 %vm159_vm0, %v14332_v12  ;;  %v14363_v12 = vld [vmem:[#allocation58_spill] sm:$0xff] }
 0x29f   :  { %9352 = vmatprep.mubr.msk.bf16.mxu1 %vm159_vm0, %v14333_v13  ;;  %v14364_v13 = vld [vmem:[#allocation59_spill] sm:$0xff] }
 0x2a0   :  { %9717 = vmatmul.mubr.msk.bf16.gmra.mrb[68].mxu0 %vm159_vm0, %v14354_v47 }
 0x2a1   :  { %9720 = vmatprep.mubr.msk.bf16.mxu0 %vm159_vm0, %v14355_v28 }
 0x2a6   :  { %9353 = vmatmul.mubr.msk.bf16.gmra.mrb[72].mxu1 %vm159_vm0, %v14334_v39  ;;  %v10858_v39 = vld [vmem:[%s14009_s1 + $0x30] sm:$0xff]  }
 0x2a7   :  { %9356 = vmatprep.mubr.msk.bf16.mxu1 %vm159_vm0, %v14335_v42  ;;  %v14365_v42 = vld [vmem:[#allocation60_spill] sm:$0xff] }
 0x2a8   :  { %9721 = vmatmul.mubr.msk.bf16.gmra.mrb[72].mxu0 %vm159_vm0, %v14356_v63 }
 0x2a9   :  { %9724 = vmatprep.mubr.msk.bf16.mxu0 %vm159_vm0, %v14357_v60 }
 0x2ae   :  { %9357 = vmatmul.mubr.msk.bf16.gmra.mrb[76].mxu1 %vm159_vm0, %v14336_v16  ;;  %v14366_v16 = vld [vmem:[#allocation61_spill] sm:$0xff] }
 0x2af   :  { %9360 = vmatprep.mubr.msk.bf16.mxu1 %vm159_vm0, %v14337_v45  ;;  %v14367_v45 = vld [vmem:[#allocation62_spill] sm:$0xff] }
 0x2b0   :  { %9725 = vmatmul.mubr.msk.bf16.gmra.mrb[76].mxu0 %vm159_vm0, %v14358_v6 }
 0x2b1   :  { %9728 = vmatprep.mubr.msk.bf16.mxu0 %vm159_vm0, %v14359_v14 }
 0x2b6   :  { %9361 = vmatmul.mubr.msk.bf16.gmra.mrb[80].mxu1 %vm159_vm0, %v14338_v54  ;;  %v14368_v54 = vld [vmem:[#allocation63_spill] sm:$0xff] }
 0x2b7   :  { %9364 = vmatprep.mubr.msk.bf16.mxu1 %vm159_vm0, %v14339_v44  ;;  %v14369_v44 = vld [vmem:[#allocation64_spill] sm:$0xff] }
 0x2b8   :  { %9729 = vmatmul.mubr.msk.bf16.gmra.mrb[80].mxu0 %vm159_vm0, %v14360_v26 }
 0x2b9   :  { %9732 = vmatprep.mubr.msk.bf16.mxu0 %vm159_vm0, %v14361_v56 }
 0x2be   :  { %9365 = vmatmul.mubr.msk.bf16.gmra.mrb[84].mxu1 %vm159_vm0, %v14340_v37  ;;  %v14370_v37 = vld [vmem:[#allocation65_spill] sm:$0xff] }
 0x2bf   :  { %9370 = vmatprep.mubr.msk.bf16.mxu1 %vm159_vm0, %v14341_v33  ;;  %v14371_v33 = vld [vmem:[#allocation66_spill] sm:$0xff] }
 0x2c0   :  { %9733 = vmatmul.mubr.msk.bf16.gmra.mrb[84].mxu0 %vm159_vm0, %v14362_v61 }
 0x2c1   :  { %9738 = vmatprep.mubr.msk.bf16.mxu0 %vm159_vm0, %v14363_v12 }
 0x2c6   :  { %9371 = vmatmul.mubr.msk.bf16.vlgmr.msra.gmra.mrb[44].mxu1 %vm159_vm0, %v14342_v19  ;;  %v14372_v19 = vld [vmem:[#allocation67_spill] sm:$0xff] }
 0x2c7   :  { %9415 = vmatpush3.bf16.msra.mxu1 %v10857_v21  ;;  %9374 = vmatprep.mubr.msk.bf16.mxu1 %vm159_vm0, %v14343_v22  ;;  %v14374_v22 = vld [vmem:[#allocation69_spill] sm:$0xff] }
 0x2c8   :  { %9739 = vmatmul.mubr.msk.bf16.vlgmr.msra.gmra.mrb[44].mxu0 %vm159_vm0, %v14364_v13  ;;  %9460 = vmatprep.subr.bf16.mxu1 %v10858_v39 }
 0x2c9   :  { %9783 = vmatpush3.bf16.msra.mxu0 %v10857_v21  ;;  %9742 = vmatprep.mubr.msk.bf16.mxu0 %vm159_vm0, %v14365_v42  ;;  %v14373_v21 = vld [vmem:[#allocation68_spill] sm:$0xff] }
 0x2ca   :  { %9828 = vmatprep.subr.bf16.mxu0 %v10858_v39 }
 0x2ce   :  { %9375 = vmatmul.mubr.msk.bf16.gmra.mrb[48].mxu1 %vm159_vm0, %v14344_v23  ;;  %v14375_v23 = vld [vmem:[#allocation70_spill] sm:$0xff] }
 0x2cf   :  { %9378 = vmatprep.mubr.msk.bf16.mxu1 %vm159_vm0, %v14345_v36  ;;  %v14376_v36 = vld [vmem:[#allocation71_spill] sm:$0xff] }
 0x2d0   :  { %9743 = vmatmul.mubr.msk.bf16.gmra.mrb[48].mxu0 %vm159_vm0, %v14366_v16 }
 0x2d1   :  { %9746 = vmatprep.mubr.msk.bf16.mxu0 %vm159_vm0, %v14367_v45 }
 0x2d6   :  { %9379 = vmatmul.mubr.msk.bf16.gmra.mrb[52].mxu1 %vm159_vm0, %v14346_v30  ;;  %v14377_v30 = vld [vmem:[#allocation72_spill] sm:$0xff] }
 0x2d7   :  { %9382 = vmatprep.mubr.msk.bf16.mxu1 %vm159_vm0, %v14347_v18  ;;  %v14378_v18 = vld [vmem:[#allocation73_spill] sm:$0xff] }
 0x2d8   :  { %9747 = vmatmul.mubr.msk.bf16.gmra.mrb[52].mxu0 %vm159_vm0, %v14368_v54 }
 0x2d9   :  { %9750 = vmatprep.mubr.msk.bf16.mxu0 %vm159_vm0, %v14369_v44 }
 0x2de   :  { %9383 = vmatmul.mubr.msk.bf16.gmra.mrb[56].mxu1 %vm159_vm0, %v14348_v62  ;;  %v14379_v62 = vld [vmem:[#allocation74_spill] sm:$0xff] }
 0x2df   :  { %9386 = vmatprep.mubr.msk.bf16.mxu1 %vm159_vm0, %v14349_v57  ;;  %v14380_v57 = vld [vmem:[#allocation75_spill] sm:$0xff] }
 0x2e0   :  { %9751 = vmatmul.mubr.msk.bf16.gmra.mrb[56].mxu0 %vm159_vm0, %v14370_v37 }
 0x2e1   :  { %9754 = vmatprep.mubr.msk.bf16.mxu0 %vm159_vm0, %v14371_v33 }
 0x2e6   :  { %9387 = vmatmul.mubr.msk.bf16.gmra.mrb[60].mxu1 %vm159_vm0, %v14350_v46  ;;  %v14381_v46 = vld [vmem:[#allocation76_spill] sm:$0xff] }
 0x2e7   :  { %9390 = vmatprep.mubr.msk.bf16.mxu1 %vm159_vm0, %v14351_v20  ;;  %v14382_v20 = vld [vmem:[#allocation77_spill] sm:$0xff] }
 0x2e8   :  { %9755 = vmatmul.mubr.msk.bf16.gmra.mrb[60].mxu0 %vm159_vm0, %v14372_v19 }
 0x2e9   :  { %9758 = vmatprep.mubr.msk.bf16.mxu0 %vm159_vm0, %v14373_v21 }
 0x2ee   :  { %9391 = vmatmul.mubr.msk.bf16.gmra.mrb[64].mxu1 %vm159_vm0, %v14352_v8  ;;  %v14383_v8 = vld [vmem:[#allocation78_spill] sm:$0xff] }
 0x2ef   :  { %9394 = vmatprep.mubr.msk.bf16.mxu1 %vm159_vm0, %v14353_v25  ;;  %v14384_v25 = vld [vmem:[#allocation79_spill] sm:$0xff] }
 0x2f0   :  { %9759 = vmatmul.mubr.msk.bf16.gmra.mrb[64].mxu0 %vm159_vm0, %v14374_v22 }
 0x2f1   :  { %9762 = vmatprep.mubr.msk.bf16.mxu0 %vm159_vm0, %v14375_v23 }
 0x2f6   :  { %9395 = vmatmul.mubr.msk.bf16.gmra.mrb[68].mxu1 %vm159_vm0, %v14354_v47  ;;  %v14385_v47 = vld [vmem:[#allocation80_spill] sm:$0xff] }
 0x2f7   :  { %9398 = vmatprep.mubr.msk.bf16.mxu1 %vm159_vm0, %v14355_v28  ;;  %v14386_v28 = vld [vmem:[#allocation81_spill] sm:$0xff] }
 0x2f8   :  { %9763 = vmatmul.mubr.msk.bf16.gmra.mrb[68].mxu0 %vm159_vm0, %v14376_v36 }
 0x2f9   :  { %9766 = vmatprep.mubr.msk.bf16.mxu0 %vm159_vm0, %v14377_v30 }
 0x2fe   :  { %9399 = vmatmul.mubr.msk.bf16.gmra.mrb[72].mxu1 %vm159_vm0, %v14356_v63  ;;  %v10859_v63 = vld [vmem:[%s14009_s1 + $0x38] sm:$0xff]  }
 0x2ff   :  { %9402 = vmatprep.mubr.msk.bf16.mxu1 %vm159_vm0, %v14357_v60  ;;  %v14387_v60 = vld [vmem:[#allocation82_spill] sm:$0xff] }
 0x300   :  { %9767 = vmatmul.mubr.msk.bf16.gmra.mrb[72].mxu0 %vm159_vm0, %v14378_v18 }
 0x301   :  { %9770 = vmatprep.mubr.msk.bf16.mxu0 %vm159_vm0, %v14379_v62 }
 0x306   :  { %9403 = vmatmul.mubr.msk.bf16.gmra.mrb[76].mxu1 %vm159_vm0, %v14358_v6  ;;  %v14388_v6 = vld [vmem:[#allocation83_spill] sm:$0xff] }
 0x307   :  { %9406 = vmatprep.mubr.msk.bf16.mxu1 %vm159_vm0, %v14359_v14  ;;  %v14389_v14 = vld [vmem:[#allocation84_spill] sm:$0xff] }
 0x308   :  { %9771 = vmatmul.mubr.msk.bf16.gmra.mrb[76].mxu0 %vm159_vm0, %v14380_v57 }
 0x309   :  { %9774 = vmatprep.mubr.msk.bf16.mxu0 %vm159_vm0, %v14381_v46 }
 0x30e   :  { %9407 = vmatmul.mubr.msk.bf16.gmra.mrb[80].mxu1 %vm159_vm0, %v14360_v26  ;;  %v14390_v26 = vld [vmem:[#allocation85_spill] sm:$0xff] }
 0x30f   :  { %9410 = vmatprep.mubr.msk.bf16.mxu1 %vm159_vm0, %v14361_v56  ;;  %v14391_v56 = vld [vmem:[#allocation86_spill] sm:$0xff] }
 0x310   :  { %9775 = vmatmul.mubr.msk.bf16.gmra.mrb[80].mxu0 %vm159_vm0, %v14382_v20 }
 0x311   :  { %9778 = vmatprep.mubr.msk.bf16.mxu0 %vm159_vm0, %v14383_v8 }
 0x316   :  { %9411 = vmatmul.mubr.msk.bf16.gmra.mrb[84].mxu1 %vm159_vm0, %v14362_v61  ;;  %v14392_v61 = vld [vmem:[#allocation87_spill] sm:$0xff] }
 0x317   :  { %9416 = vmatprep.mubr.msk.bf16.mxu1 %vm159_vm0, %v14363_v12  ;;  %v14393_v12 = vld [vmem:[#allocation88_spill] sm:$0xff] }
 0x318   :  { %9779 = vmatmul.mubr.msk.bf16.gmra.mrb[84].mxu0 %vm159_vm0, %v14384_v25 }
 0x319   :  { %9784 = vmatprep.mubr.msk.bf16.mxu0 %vm159_vm0, %v14385_v47 }
 0x31e   :  { %9417 = vmatmul.mubr.msk.bf16.vlgmr.msra.gmra.mrb[44].mxu1 %vm159_vm0, %v14364_v13  ;;  %v14394_v13 = vld [vmem:[#allocation89_spill] sm:$0xff] }
 0x31f   :  { %9461 = vmatpush3.bf16.msra.mxu1 %v10858_v39  ;;  %9420 = vmatprep.mubr.msk.bf16.mxu1 %vm159_vm0, %v14365_v42  ;;  %v14396_v42 = vld [vmem:[#allocation91_spill] sm:$0xff] }
 0x320   :  { %9785 = vmatmul.mubr.msk.bf16.vlgmr.msra.gmra.mrb[44].mxu0 %vm159_vm0, %v14386_v28  ;;  %9506 = vmatprep.subr.bf16.mxu1 %v10859_v63 }
 0x321   :  { %9829 = vmatpush3.bf16.msra.mxu0 %v10858_v39  ;;  %9788 = vmatprep.mubr.msk.bf16.mxu0 %vm159_vm0, %v14387_v60  ;;  %v14395_v39 = vld [vmem:[#allocation90_spill] sm:$0xff] }
 0x322   :  { %9874 = vmatprep.subr.bf16.mxu0 %v10859_v63 }
 0x326   :  { %9421 = vmatmul.mubr.msk.bf16.gmra.mrb[48].mxu1 %vm159_vm0, %v14366_v16  ;;  %v14397_v16 = vld [vmem:[#allocation92_spill] sm:$0xff] }
 0x327   :  { %9424 = vmatprep.mubr.msk.bf16.mxu1 %vm159_vm0, %v14367_v45  ;;  %v14398_v45 = vld [vmem:[#allocation93_spill] sm:$0xff] }
 0x328   :  { %9789 = vmatmul.mubr.msk.bf16.gmra.mrb[48].mxu0 %vm159_vm0, %v14388_v6 }
 0x329   :  { %9792 = vmatprep.mubr.msk.bf16.mxu0 %vm159_vm0, %v14389_v14 }
 0x32e   :  { %9425 = vmatmul.mubr.msk.bf16.gmra.mrb[52].mxu1 %vm159_vm0, %v14368_v54  ;;  %v14399_v54 = vld [vmem:[#allocation94_spill] sm:$0xff] }
 0x32f   :  { %9428 = vmatprep.mubr.msk.bf16.mxu1 %vm159_vm0, %v14369_v44  ;;  %v14400_v44 = vld [vmem:[#allocation95_spill] sm:$0xff] }
 0x330   :  { %9793 = vmatmul.mubr.msk.bf16.gmra.mrb[52].mxu0 %vm159_vm0, %v14390_v26 }
 0x331   :  { %9796 = vmatprep.mubr.msk.bf16.mxu0 %vm159_vm0, %v14391_v56 }
 0x336   :  { %9429 = vmatmul.mubr.msk.bf16.gmra.mrb[56].mxu1 %vm159_vm0, %v14370_v37  ;;  %v14401_v37 = vld [vmem:[#allocation96_spill] sm:$0xff] }
 0x337   :  { %9432 = vmatprep.mubr.msk.bf16.mxu1 %vm159_vm0, %v14371_v33  ;;  %v14402_v33 = vld [vmem:[#allocation97_spill] sm:$0xff] }
 0x338   :  { %9797 = vmatmul.mubr.msk.bf16.gmra.mrb[56].mxu0 %vm159_vm0, %v14392_v61 }
 0x339   :  { %9800 = vmatprep.mubr.msk.bf16.mxu0 %vm159_vm0, %v14393_v12 }
 0x33e   :  { %9433 = vmatmul.mubr.msk.bf16.gmra.mrb[60].mxu1 %vm159_vm0, %v14372_v19  ;;  %v14403_v19 = vld [vmem:[#allocation98_spill] sm:$0xff] }
 0x33f   :  { %9436 = vmatprep.mubr.msk.bf16.mxu1 %vm159_vm0, %v14373_v21  ;;  %v8021_v21 = vld [vmem:[%s14010_s0 + $0x2d2] sm:$0xff] }
 0x340   :  { %9801 = vmatmul.mubr.msk.bf16.gmra.mrb[60].mxu0 %vm159_vm0, %v14394_v13 }
 0x341   :  { %9804 = vmatprep.mubr.msk.bf16.mxu0 %vm159_vm0, %v14395_v39 }
 0x346   :  { %9437 = vmatmul.mubr.msk.bf16.gmra.mrb[64].mxu1 %vm159_vm0, %v14374_v22  ;;  %v8022_v22 = vld [vmem:[%s14010_s0 + $0x2da] sm:$0xff] }
 0x347   :  { %9440 = vmatprep.mubr.msk.bf16.mxu1 %vm159_vm0, %v14375_v23  ;;  %v13280_v23 = vpack.c.bf16 %v8022_v22, %v8021_v21  ;;  %v8032_v21 = vld [vmem:[%s14010_s0 + $0x32a] sm:$0xff] }
 0x348   :  { %9805 = vmatmul.mubr.msk.bf16.gmra.mrb[64].mxu0 %vm159_vm0, %v14396_v42 }
 0x349   :  { %9808 = vmatprep.mubr.msk.bf16.mxu0 %vm159_vm0, %v14397_v16 }
 0x34e   :  { %9441 = vmatmul.mubr.msk.bf16.gmra.mrb[68].mxu1 %vm159_vm0, %v14376_v36  ;;  %v8023_v36 = vld [vmem:[%s14010_s0 + $0x2e2] sm:$0xff] }
 0x34f   :  { %9444 = vmatprep.mubr.msk.bf16.mxu1 %vm159_vm0, %v14377_v30  ;;  %v8024_v30 = vld [vmem:[%s14010_s0 + $0x2ea] sm:$0xff] }
 0x350   :  { %9809 = vmatmul.mubr.msk.bf16.gmra.mrb[68].mxu0 %vm159_vm0, %v14398_v45 }
 0x351   :  { %9812 = vmatprep.mubr.msk.bf16.mxu0 %vm159_vm0, %v14399_v54 }
 0x356   :  { %9445 = vmatmul.mubr.msk.bf16.gmra.mrb[72].mxu1 %vm159_vm0, %v14378_v18  ;;  %v8025_v18 = vld [vmem:[%s14010_s0 + $0x2f2] sm:$0xff] }
 0x357   :  { %9448 = vmatprep.mubr.msk.bf16.mxu1 %vm159_vm0, %v14379_v62  ;;  %v8026_v62 = vld [vmem:[%s14010_s0 + $0x2fa] sm:$0xff] }
 0x358   :  { %9813 = vmatmul.mubr.msk.bf16.gmra.mrb[72].mxu0 %vm159_vm0, %v14400_v44 }
 0x359   :  { %9816 = vmatprep.mubr.msk.bf16.mxu0 %vm159_vm0, %v14401_v37 }
 0x35e   :  { %9449 = vmatmul.mubr.msk.bf16.gmra.mrb[76].mxu1 %vm159_vm0, %v14380_v57  ;;  %v13302_v57 = vpack.c.bf16 %v8024_v30, %v8023_v36  ;;  %v8035_v30 = vld [vmem:[%s14010_s0 + $0x342] sm:$0xff] }
 0x35f   :  { %9452 = vmatprep.mubr.msk.bf16.mxu1 %vm159_vm0, %v14381_v46  ;;  %v13304_v46 = vpack.c.bf16 %v8026_v62, %v8025_v18  ;;  %v8036_v18 = vld [vmem:[%s14010_s0 + $0x34a] sm:$0xff] }
 0x360   :  { %9817 = vmatmul.mubr.msk.bf16.gmra.mrb[76].mxu0 %vm159_vm0, %v14402_v33  ;;  %v13374_v62 = vpack.c.bf16 %v8036_v18, %v8035_v30  ;;  %v8047_v18 = vld [vmem:[%s14010_s0 + $0x3a2] sm:$0xff] }
 0x361   :  { %9820 = vmatprep.mubr.msk.bf16.mxu0 %vm159_vm0, %v14403_v19 }
 0x366   :  { %9453 = vmatmul.mubr.msk.bf16.gmra.mrb[80].mxu1 %vm159_vm0, %v14382_v20  ;;  %v8027_v20 = vld [vmem:[%s14010_s0 + $0x302] sm:$0xff] }
 0x367   :  { %9456 = vmatprep.mubr.msk.bf16.mxu1 %vm159_vm0, %v14383_v8  ;;  %v8028_v8 = vld [vmem:[%s14010_s0 + $0x30a] sm:$0xff] }
 0x368   :  { %9821 = vmatmul.mubr.msk.bf16.gmra.mrb[80].mxu0 %vm159_vm0, %v12598_v24 }
 0x369   :  { %9824 = vmatprep.mubr.msk.bf16.mxu0 %vm159_vm0, %v12600_v4 }
 0x36e   :  { %9457 = vmatmul.mubr.msk.bf16.gmra.mrb[84].mxu1 %vm159_vm0, %v14384_v25  ;;  %v8029_v25 = vld [vmem:[%s14010_s0 + $0x312] sm:$0xff] }
 0x36f   :  { %9462 = vmatprep.mubr.msk.bf16.mxu1 %vm159_vm0, %v14385_v47  ;;  %v8030_v47 = vld [vmem:[%s14010_s0 + $0x31a] sm:$0xff] }
 0x370   :  { %9825 = vmatmul.mubr.msk.bf16.gmra.mrb[84].mxu0 %vm159_vm0, %v12624_v49 }
 0x371   :  { %9830 = vmatprep.mubr.msk.bf16.mxu0 %vm159_vm0, %v13280_v23 }
 0x376   :  { %9463 = vmatmul.mubr.msk.bf16.vlgmr.msra.gmra.mrb[44].mxu1 %vm159_vm0, %v14386_v28  ;;  %v13326_v28 = vpack.c.bf16 %v8028_v8, %v8027_v20  ;;  %v8039_v8 = vld [vmem:[%s14010_s0 + $0x362] sm:$0xff] }
 0x377   :  { %9507 = vmatpush3.bf16.msra.mxu1 %v10859_v63  ;;  %9466 = vmatprep.mubr.msk.bf16.mxu1 %vm159_vm0, %v14387_v60  ;;  %v8031_v60 = vld [vmem:[%s14010_s0 + $0x322] sm:$0xff] }
 0x378   :  { %9831 = vmatmul.mubr.msk.bf16.vlgmr.msra.gmra.mrb[44].mxu0 %vm159_vm0, %v13302_v57  ;;  %v13350_v22 = vpack.c.bf16 %v8032_v21, %v8031_v60  ;;  %v8043_v21 = vld [vmem:[%s14010_s0 + $0x382] sm:$0xff] }
 0x379   :  { %9875 = vmatpush3.bf16.msra.mxu0 %v10859_v63  ;;  %9834 = vmatprep.mubr.msk.bf16.mxu0 %vm159_vm0, %v13304_v46  ;;  %v13328_v63 = vpack.c.bf16 %v8030_v47, %v8029_v25  ;;  %v8040_v25 = vld [vmem:[%s14010_s0 + $0x36a] sm:$0xff] }
 0x37a   :  { %v13398_v47 = vpack.c.bf16 %v8040_v25, %v8039_v8  ;;  %v8051_v25 = vld [vmem:[%s14010_s0 + $0x3c2] sm:$0xff] }
 0x37e   :  { %9467 = vmatmul.mubr.msk.bf16.gmra.mrb[48].mxu1 %vm159_vm0, %v14388_v6  ;;  %v8033_v6 = vld [vmem:[%s14010_s0 + $0x332] sm:$0xff] }
 0x37f   :  { %9470 = vmatprep.mubr.msk.bf16.mxu1 %vm159_vm0, %v14389_v14  ;;  %v8034_v14 = vld [vmem:[%s14010_s0 + $0x33a] sm:$0xff] }
 0x380   :  { %9835 = vmatmul.mubr.msk.bf16.gmra.mrb[48].mxu0 %vm159_vm0, %v13326_v28  ;;  %v13352_v36 = vpack.c.bf16 %v8034_v14, %v8033_v6  ;;  %v8044_v6 = vld [vmem:[%s14010_s0 + $0x38a] sm:$0xff] }
 0x381   :  { %9838 = vmatprep.mubr.msk.bf16.mxu0 %vm159_vm0, %v13328_v63  ;;  %v13422_v14 = vpack.c.bf16 %v8044_v6, %v8043_v21  ;;  %v8055_v6 = vld [vmem:[%s14010_s0 + $0x3e2] sm:$0xff] }
 0x386   :  { %9471 = vmatmul.mubr.msk.bf16.gmra.mrb[52].mxu1 %vm159_vm0, %v14390_v26  ;;  %v8037_v26 = vld [vmem:[%s14010_s0 + $0x352] sm:$0xff] }
 0x387   :  { %9474 = vmatprep.mubr.msk.bf16.mxu1 %vm159_vm0, %v14391_v56  ;;  %v8038_v56 = vld [vmem:[%s14010_s0 + $0x35a] sm:$0xff] }
 0x388   :  { %9839 = vmatmul.mubr.msk.bf16.gmra.mrb[52].mxu0 %vm159_vm0, %v13350_v22  ;;  %v13376_v20 = vpack.c.bf16 %v8038_v56, %v8037_v26  ;;  %v8048_v26 = vld [vmem:[%s14010_s0 + $0x3aa] sm:$0xff] }
 0x389   :  { %9842 = vmatprep.mubr.msk.bf16.mxu0 %vm159_vm0, %v13352_v36  ;;  %v13446_v56 = vpack.c.bf16 %v8048_v26, %v8047_v18  ;;  %v8059_v26 = vld [vmem:[%s14010_s0 + $0x402] sm:$0xff] }
 0x38e   :  { %9475 = vmatmul.mubr.msk.bf16.gmra.mrb[56].mxu1 %vm159_vm0, %v14392_v61  ;;  %v8041_v61 = vld [vmem:[%s14010_s0 + $0x372] sm:$0xff] }
 0x38f   :  { %9478 = vmatprep.mubr.msk.bf16.mxu1 %vm159_vm0, %v14393_v12  ;;  %v8042_v12 = vld [vmem:[%s14010_s0 + $0x37a] sm:$0xff] }
 0x390   :  { %9843 = vmatmul.mubr.msk.bf16.gmra.mrb[56].mxu0 %vm159_vm0, %v13374_v62  ;;  %v13400_v60 = vpack.c.bf16 %v8042_v12, %v8041_v61  ;;  %v8052_v61 = vld [vmem:[%s14010_s0 + $0x3ca] sm:$0xff] }
 0x391   :  { %9846 = vmatprep.mubr.msk.bf16.mxu0 %vm159_vm0, %v13376_v20  ;;  %v13470_v12 = vpack.c.bf16 %v8052_v61, %v8051_v25  ;;  %v8063_v61 = vld [vmem:[%s14010_s0 + $0x422] sm:$0xff] }
 0x396   :  { %9479 = vmatmul.mubr.msk.bf16.gmra.mrb[60].mxu1 %vm159_vm0, %v14394_v13  ;;  %v8045_v13 = vld [vmem:[%s14010_s0 + $0x392] sm:$0xff] }
 0x397   :  { %9482 = vmatprep.mubr.msk.bf16.mxu1 %vm159_vm0, %v14395_v39  ;;  %v8046_v39 = vld [vmem:[%s14010_s0 + $0x39a] sm:$0xff] }
 0x398   :  { %9847 = vmatmul.mubr.msk.bf16.gmra.mrb[60].mxu0 %vm159_vm0, %v13398_v47  ;;  %v13424_v30 = vpack.c.bf16 %v8046_v39, %v8045_v13  ;;  %v8056_v13 = vld [vmem:[%s14010_s0 + $0x3ea] sm:$0xff] }
 0x399   :  { %9850 = vmatprep.mubr.msk.bf16.mxu0 %vm159_vm0, %v13400_v60  ;;  %v13494_v39 = vpack.c.bf16 %v8056_v13, %v8055_v6  ;;  %v6878_v13 = vld [vmem:[%s14010_s0 + $0x13] sm:$0xff] }
 0x39e   :  { %9483 = vmatmul.mubr.msk.bf16.gmra.mrb[64].mxu1 %vm159_vm0, %v14396_v42  ;;  %v8049_v42 = vld [vmem:[%s14010_s0 + $0x3b2] sm:$0xff] }
 0x39f   :  { %9486 = vmatprep.mubr.msk.bf16.mxu1 %vm159_vm0, %v14397_v16  ;;  %v8050_v16 = vld [vmem:[%s14010_s0 + $0x3ba] sm:$0xff] }
 0x3a0   :  { %9851 = vmatmul.mubr.msk.bf16.gmra.mrb[64].mxu0 %vm159_vm0, %v13422_v14  ;;  %v13448_v8 = vpack.c.bf16 %v8050_v16, %v8049_v42  ;;  %v8060_v42 = vld [vmem:[%s14010_s0 + $0x40a] sm:$0xff] }
 0x3a1   :  { %9854 = vmatprep.mubr.msk.bf16.mxu0 %vm159_vm0, %v13424_v30  ;;  %v13518_v16 = vpack.c.bf16 %v8060_v42, %v8059_v26  ;;  %v6882_v42 = vld [vmem:[%s14010_s0 + $0x33] sm:$0xff] }
 0x3a6   :  { %9487 = vmatmul.mubr.msk.bf16.gmra.mrb[68].mxu1 %vm159_vm0, %v14398_v45  ;;  %v8053_v45 = vld [vmem:[%s14010_s0 + $0x3d2] sm:$0xff] }
 0x3a7   :  { %9490 = vmatprep.mubr.msk.bf16.mxu1 %vm159_vm0, %v14399_v54  ;;  %v8054_v54 = vld [vmem:[%s14010_s0 + $0x3da] sm:$0xff] }
 0x3a8   :  { %9855 = vmatmul.mubr.msk.bf16.gmra.mrb[68].mxu0 %vm159_vm0, %v13446_v56  ;;  %v13472_v21 = vpack.c.bf16 %v8054_v54, %v8053_v45  ;;  %v8064_v45 = vld [vmem:[%s14010_s0 + $0x42a] sm:$0xff] }
 0x3a9   :  { %9858 = vmatprep.mubr.msk.bf16.mxu0 %vm159_vm0, %v13448_v8  ;;  %v13542_v54 = vpack.c.bf16 %v8064_v45, %v8063_v61  ;;  %v6886_v45 = vld [vmem:[%s14010_s0 + $0x53] sm:$0xff] }
 0x3ae   :  { %9491 = vmatmul.mubr.msk.bf16.gmra.mrb[72].mxu1 %vm159_vm0, %v14400_v44  ;;  %v8057_v44 = vld [vmem:[%s14010_s0 + $0x3f2] sm:$0xff] }
 0x3af   :  { %9494 = vmatprep.mubr.msk.bf16.mxu1 %vm159_vm0, %v14401_v37  ;;  %v8058_v37 = vld [vmem:[%s14010_s0 + $0x3fa] sm:$0xff] }
 0x3b0   :  { %9859 = vmatmul.mubr.msk.bf16.gmra.mrb[72].mxu0 %vm159_vm0, %v13470_v12  ;;  %v13496_v18 = vpack.c.bf16 %v8058_v37, %v8057_v44  ;;  %v6879_v44 = vld [vmem:[%s14010_s0 + $0x1b] sm:$0xff] }
 0x3b1   :  { %9862 = vmatprep.mubr.msk.bf16.mxu0 %vm159_vm0, %v13472_v21  ;;  %v6921_v37 = vpack.c.bf16 %v6879_v44, %v6878_v13  ;;  %v6890_v13 = vld [vmem:[%s14010_s0 + $0x73] sm:$0xff]  ;;  %v6891_v44 = vld [vmem:[%s14010_s0 + $0x7b] sm:$0xff] }
 0x3b6   :  { %9495 = vmatmul.mubr.msk.bf16.gmra.mrb[76].mxu1 %vm159_vm0, %v14402_v33  ;;  %v8061_v33 = vld [vmem:[%s14010_s0 + $0x412] sm:$0xff] }
 0x3b7   :  { %9498 = vmatprep.mubr.msk.bf16.mxu1 %vm159_vm0, %v14403_v19  ;;  %v8062_v19 = vld [vmem:[%s14010_s0 + $0x41a] sm:$0xff] }
 0x3b8   :  { %9863 = vmatmul.mubr.msk.bf16.gmra.mrb[76].mxu0 %vm159_vm0, %v13494_v39  ;;  %v13520_v25 = vpack.c.bf16 %v8062_v19, %v8061_v33  ;;  %v6883_v33 = vld [vmem:[%s14010_s0 + $0x3b] sm:$0xff]  ;;  %v6884_v19 = vld [vmem:[%s14010_s0 + $0x43] sm:$0xff] }
 0x3b9   :  { %9866 = vmatprep.mubr.msk.bf16.mxu0 %vm159_vm0, %v13496_v18 }
 0x3be   :  { %9499 = vmatmul.mubr.msk.bf16.gmra.mrb[80].mxu1 %vm159_vm0, %v12598_v24  ;;  %v6876_v24 = vld [vmem:[%s14010_s0 + $0x3] sm:$0xff] }
 0x3bf   :  { %9502 = vmatprep.mubr.msk.bf16.mxu1 %vm159_vm0, %v12600_v4  ;;  %v6877_v4 = vld [vmem:[%s14010_s0 + $0xb] sm:$0xff] }
 0x3c0   :  { %9867 = vmatmul.mubr.msk.bf16.gmra.mrb[80].mxu0 %vm159_vm0, %v13518_v16  ;;  %v6920_v6 = vpack.c.bf16 %v6877_v4, %v6876_v24  ;;  %v6887_v24 = vld [vmem:[%s14010_s0 + $0x5b] sm:$0xff]  ;;  %v6888_v4 = vld [vmem:[%s14010_s0 + $0x63] sm:$0xff] }
 0x3c1   :  { %9870 = vmatprep.mubr.msk.bf16.mxu0 %vm159_vm0, %v13520_v25 }
 0x3c6   :  { %9503 = vmatmul.mubr.msk.bf16.gmra.mrb[84].mxu1 %vm159_vm0, %v12624_v49  ;;  %v6880_v49 = vld [vmem:[%s14010_s0 + $0x23] sm:$0xff] }
 0x3c7   :  { %9508 = vmatprep.mubr.msk.bf16.mxu1 %vm159_vm0, %v13280_v23  ;;  %v6881_v23 = vld [vmem:[%s14010_s0 + $0x2b] sm:$0xff] }
 0x3c8   :  { %9871 = vmatmul.mubr.msk.bf16.gmra.mrb[84].mxu0 %vm159_vm0, %v13542_v54  ;;  %v6922_v26 = vpack.c.bf16 %v6881_v23, %v6880_v49  ;;  %v6892_v49 = vld [vmem:[%s14010_s0 + $0x83] sm:$0xff] }
 0x3c9   :  { %9876 = vmatprep.mubr.msk.bf16.mxu0 %vm159_vm0, %v6920_v6 }
 0x3ce   :  { %9509 = vmatmul.mubr.msk.bf16.vlgmr.msra.gmra.mrb[44].mxu1 %vm159_vm0, %v13302_v57  ;;  %v6885_v57 = vld [vmem:[%s14010_s0 + $0x4b] sm:$0xff] }
 0x3cf   :  { %9512 = vmatprep.mubr.msk.bf16.mxu1 %vm159_vm0, %v13304_v46  ;;  %v6923_v46 = vpack.c.bf16 %v6883_v33, %v6882_v42  ;;  %v6924_v61 = vpack.c.bf16 %v6885_v57, %v6884_v19  ;;  %v6896_v42 = vld [vmem:[%s14010_s0 + $0xa3] sm:$0xff]  ;;  %v6898_v19 = vld [vmem:[%s14010_s0 + $0xb3] sm:$0xff]  ;;  %v6899_v57 = vld [vmem:[%s14010_s0 + $0xbb] sm:$0xff] }
 0x3d0   :  { %9877 = vmatmul.mubr.msk.bf16.vlgmr.msra.gmra.mrb[44].mxu0 %vm159_vm0, %v6921_v37  ;;  %v6894_v37 = vld [vmem:[%s14010_s0 + $0x93] sm:$0xff] }
 0x3d1   :  { %9880 = vmatprep.mubr.msk.bf16.mxu0 %vm159_vm0, %v6922_v26  ;;  %v6895_v26 = vld [vmem:[%s14010_s0 + $0x9b] sm:$0xff] }
 0x3d6   :  { %9513 = vmatmul.mubr.msk.bf16.gmra.mrb[48].mxu1 %vm159_vm0, %v13326_v28  ;;  %v6889_v28 = vld [vmem:[%s14010_s0 + $0x6b] sm:$0xff] }
 0x3d7   :  { %9516 = vmatprep.mubr.msk.bf16.mxu1 %vm159_vm0, %v13328_v63  ;;  %v6925_v63 = vpack.c.bf16 %v6887_v24, %v6886_v45  ;;  %v6926_v6 = vpack.c.bf16 %v6889_v28, %v6888_v4  ;;  %v6902_v45 = vld [vmem:[%s14010_s0 + $0xd3] sm:$0xff]  ;;  %v6903_v24 = vld [vmem:[%s14010_s0 + $0xdb] sm:$0xff]  ;;  %v6904_v4 = vld [vmem:[%s14010_s0 + $0xe3] sm:$0xff] }
 0x3d8   :  { %9881 = vmatmul.mubr.msk.bf16.gmra.mrb[48].mxu0 %vm159_vm0, %v6923_v46  ;;  %v6900_v46 = vld [vmem:[%s14010_s0 + $0xc3] sm:$0xff] }
 0x3d9   :  { %9884 = vmatprep.mubr.msk.bf16.mxu0 %vm159_vm0, %v6924_v61 }
 0x3de   :  { %9517 = vmatmul.mubr.msk.bf16.gmra.mrb[52].mxu1 %vm159_vm0, %v13350_v22  ;;  %v6893_v22 = vld [vmem:[%s14010_s0 + $0x8b] sm:$0xff] }
 0x3df   :  { %9520 = vmatprep.mubr.msk.bf16.mxu1 %vm159_vm0, %v13352_v36  ;;  %v6927_v36 = vpack.c.bf16 %v6891_v44, %v6890_v13  ;;  %v6928_v23 = vpack.c.bf16 %v6893_v22, %v6892_v49  ;;  %v6908_v13 = vld [vmem:[%s14010_s0 + $0x103] sm:$0xff]  ;;  %v6910_v49 = vld [vmem:[%s14010_s0 + $0x113] sm:$0xff]  ;;  %v6911_v22 = vld [vmem:[%s14010_s0 + $0x11b] sm:$0xff] }
 0x3e0   :  { %9885 = vmatmul.mubr.msk.bf16.gmra.mrb[52].mxu0 %vm159_vm0, %v6925_v63  ;;  %v6906_v63 = vld [vmem:[%s14010_s0 + $0xf3] sm:$0xff] }
 0x3e1   :  { %9888 = vmatprep.mubr.msk.bf16.mxu0 %vm159_vm0, %v6926_v6  ;;  %v6907_v6 = vld [vmem:[%s14010_s0 + $0xfb] sm:$0xff] }
 0x3e6   :  { %9521 = vmatmul.mubr.msk.bf16.gmra.mrb[56].mxu1 %vm159_vm0, %v13374_v62  ;;  %v6897_v62 = vld [vmem:[%s14010_s0 + $0xab] sm:$0xff] }
 0x3e7   :  { %9524 = vmatprep.mubr.msk.bf16.mxu1 %vm159_vm0, %v13376_v20  ;;  %v6929_v20 = vpack.c.bf16 %v6895_v26, %v6894_v37  ;;  %v6930_v33 = vpack.c.bf16 %v6897_v62, %v6896_v42  ;;  %v6914_v37 = vld [vmem:[%s14010_s0 + $0x133] sm:$0xff]  ;;  %v6915_v26 = vld [vmem:[%s14010_s0 + $0x13b] sm:$0xff]  ;;  %v6916_v42 = vld [vmem:[%s14010_s0 + $0x143] sm:$0xff] }
 0x3e8   :  { %9889 = vmatmul.mubr.msk.bf16.gmra.mrb[56].mxu0 %vm159_vm0, %v6927_v36  ;;  %v6912_v36 = vld [vmem:[%s14010_s0 + $0x123] sm:$0xff] }
 0x3e9   :  { %9892 = vmatprep.mubr.msk.bf16.mxu0 %vm159_vm0, %v6928_v23 }
 0x3ee   :  { %9525 = vmatmul.mubr.msk.bf16.gmra.mrb[60].mxu1 %vm159_vm0, %v13398_v47  ;;  %v6901_v47 = vld [vmem:[%s14010_s0 + $0xcb] sm:$0xff] }
 0x3ef   :  { %9528 = vmatprep.mubr.msk.bf16.mxu1 %vm159_vm0, %v13400_v60  ;;  %v6931_v60 = vpack.c.bf16 %v6899_v57, %v6898_v19  ;;  %v6932_v61 = vpack.c.bf16 %v6901_v47, %v6900_v46  ;;  %v13744_v47 = vld [vmem:[%s14011_s2] ss:$0 sm:$0xff] }
 0x3f0   :  { %9893 = vmatmul.mubr.msk.bf16.gmra.mrb[60].mxu0 %vm159_vm0, %v6929_v20  ;;  %v6918_v20 = vld [vmem:[%s14010_s0 + $0x153] sm:$0xff] }
 0x3f1   :  { %9896 = vmatprep.mubr.msk.bf16.mxu0 %vm159_vm0, %v6930_v33  ;;  %v6919_v33 = vld [vmem:[%s14010_s0 + $0x15b] sm:$0xff] }
 0x3f2   :  { %v6941_v19 = vpack.c.bf16 %v6919_v33, %v6918_v20 }
 0x3f6   :  { %9529 = vmatmul.mubr.msk.bf16.gmra.mrb[64].mxu1 %vm159_vm0, %v13422_v14  ;;  %v6905_v14 = vld [vmem:[%s14010_s0 + $0xeb] sm:$0xff] }
 0x3f7   :  { %9532 = vmatprep.mubr.msk.bf16.mxu1 %vm159_vm0, %v13424_v30  ;;  %v6933_v30 = vpack.c.bf16 %v6903_v24, %v6902_v45  ;;  %v6934_v28 = vpack.c.bf16 %v6905_v14, %v6904_v4 }
 0x3f8   :  { %9897 = vmatmul.mubr.msk.bf16.gmra.mrb[64].mxu0 %vm159_vm0, %v6931_v60 }
 0x3f9   :  { %9900 = vmatprep.mubr.msk.bf16.mxu0 %vm159_vm0, %v6932_v61 }
 0x3fe   :  { %9533 = vmatmul.mubr.msk.bf16.gmra.mrb[68].mxu1 %vm159_vm0, %v13446_v56  ;;  %v6909_v56 = vld [vmem:[%s14010_s0 + $0x10b] sm:$0xff] }
 0x3ff   :  { %9536 = vmatprep.mubr.msk.bf16.mxu1 %vm159_vm0, %v13448_v8  ;;  %v6935_v8 = vpack.c.bf16 %v6907_v6, %v6906_v63  ;;  %v6936_v44 = vpack.c.bf16 %v6909_v56, %v6908_v13 }
 0x400   :  { %9901 = vmatmul.mubr.msk.bf16.gmra.mrb[68].mxu0 %vm159_vm0, %v6933_v30 }
 0x401   :  { %9904 = vmatprep.mubr.msk.bf16.mxu0 %vm159_vm0, %v6934_v28 }
 0x406   :  { %9537 = vmatmul.mubr.msk.bf16.gmra.mrb[72].mxu1 %vm159_vm0, %v13470_v12  ;;  %v6913_v12 = vld [vmem:[%s14010_s0 + $0x12b] sm:$0xff] }
 0x407   :  { %9540 = vmatprep.mubr.msk.bf16.mxu1 %vm159_vm0, %v13472_v21  ;;  %v6937_v21 = vpack.c.bf16 %v6911_v22, %v6910_v49  ;;  %v6938_v23 = vpack.c.bf16 %v6913_v12, %v6912_v36 }
 0x408   :  { %9905 = vmatmul.mubr.msk.bf16.gmra.mrb[72].mxu0 %vm159_vm0, %v6935_v8 }
 0x409   :  { %9908 = vmatprep.mubr.msk.bf16.mxu0 %vm159_vm0, %v6936_v44 }
 0x40e   :  { %9541 = vmatmul.mubr.msk.bf16.gmra.mrb[76].mxu1 %vm159_vm0, %v13494_v39  ;;  %v6917_v39 = vld [vmem:[%s14010_s0 + $0x14b] sm:$0xff] }
 0x40f   :  { %9544 = vmatprep.mubr.msk.bf16.mxu1 %vm159_vm0, %v13496_v18  ;;  %v6939_v18 = vpack.c.bf16 %v6915_v26, %v6914_v37  ;;  %v6940_v62 = vpack.c.bf16 %v6917_v39, %v6916_v42 }
 0x410   :  { %9909 = vmatmul.mubr.msk.bf16.gmra.mrb[76].mxu0 %vm159_vm0, %v6937_v21 }
 0x411   :  { %9912 = vmatprep.mubr.msk.bf16.mxu0 %vm159_vm0, %v6938_v23 }
 0x416   :  { %9545 = vmatmul.mubr.msk.bf16.gmra.mrb[80].mxu1 %vm159_vm0, %v13518_v16 }
 0x417   :  { %9548 = vmatprep.mubr.msk.bf16.mxu1 %vm159_vm0, %v13520_v25 }
 0x418   :  { %9913 = vmatmul.mubr.msk.bf16.gmra.mrb[80].mxu0 %vm159_vm0, %v6939_v18 }
 0x419   :  { %9916 = vmatprep.mubr.msk.bf16.mxu0 %vm159_vm0, %v6940_v62 }
 0x41e   :  { %9549 = vmatmul.mubr.msk.bf16.gmra.mrb[84].mxu1 %vm159_vm0, %v13542_v54 }
 0x420   :  { %9917 = vmatmul.mubr.msk.bf16.gmra.mrb[84].mxu0 %vm159_vm0, %v6941_v19 }
 0x4a1   :  { %v9510_v16 = vpop.f32.mrb[44].mxu1 }
 0x4a2   :  { %v5151_v25 = vmax.f32 %v12774_v43, %v9510_v16  ;;  %v4930_v57 = vpop.f32.mrb[45].mxu1 }
 0x4a3   :  { %v9878_v46 = vpop.f32.mrb[44].mxu0  ;;  %v5149_v60 = vmax.f32 %v12776_v3, %v4930_v57  ;;  %v9511_v61 = vpop.f32.mrb[46].mxu1 }
 0x4a4   :  { %v7263_v45 = vmax.f32 %v5151_v25, %v9878_v46  ;;  %v7042_v24 = vpop.f32.mrb[45].mxu0  ;;  %v5152_v4 = vmax.f32 %v12778_v53, %v9511_v61  ;;  %v4933_v54 = vpop.f32.mrb[47].mxu1 }
 0x4a5   :  { %v7261_v14 = vmax.f32 %v5149_v60, %v7042_v24  ;;  %v9879_v30 = vpop.f32.mrb[46].mxu0  ;;  %v5150_v28 = vmax.f32 %v12782_v34, %v4933_v54 }
 0x4a6   :  { %v7314_v43 = vadd.f32 %v13744_v47, %v7263_v45  ;;  %v7264_v63 = vmax.f32 %v5152_v4, %v9879_v30  ;;  %v7045_v6 = vpop.f32.mrb[47].mxu0 }
 0x4a7   :  { %v7312_v13 = vadd.f32 %v13744_v47, %v7261_v14  ;;  %v7262_v56 = vmax.f32 %v5150_v28, %v7045_v6 }
 0x4a8   :  { %v7358_v8 = vmax.f32 %v7314_v43, 0.0  ;;  %v7315_v3 = vadd.f32 %v13744_v47, %v7264_v63 }
 0x4a9   :  { %v7356_v44 = vmax.f32 %v7312_v13, 0.0  ;;  %v7313_v49 = vadd.f32 %v13744_v47, %v7262_v56  ;;  %v9514_v53 = vpop.f32.mrb[48].mxu1 }
 0x4aa   :  { %7403 = vst.msk [vmem:[%s14012_s3 + $0x10] sm:$0xff] %vm7400_vm1, %v7358_v8  ;;  %v7359_v34 = vmax.f32 %v7315_v3, 0.0  ;;  %v5155_v22 = vmax.f32 %v12790_v17, %v9514_v53  ;;  %v4946_v36 = vpop.f32.mrb[49].mxu1 }
 0x4ab   :  { %7401 = vst.msk [vmem:[%s14012_s3] sm:$0xff] %vm7400_vm1, %v7356_v44  ;;  %v7357_v12 = vmax.f32 %v7313_v49, 0.0  ;;  %v9882_v21 = vpop.f32.mrb[48].mxu0  ;;  %v5153_v23 = vmax.f32 %v12792_v0, %v4946_v36  ;;  %v9515_v37 = vpop.f32.mrb[50].mxu1 }
 0x4ac   :  { %7404 = vst.msk [vmem:[%s14012_s3 + $0x18] sm:$0xff] %vm7400_vm1, %v7359_v34  ;;  %v7267_v26 = vmax.f32 %v5155_v22, %v9882_v21  ;;  %v7058_v42 = vpop.f32.mrb[49].mxu0  ;;  %v5156_v17 = vmax.f32 %v12794_v41, %v9515_v37  ;;  %v4949_v39 = vpop.f32.mrb[51].mxu1 }
 0x4ad   :  { %7402 = vst.msk [vmem:[%s14012_s3 + $0x8] sm:$0xff] %vm7400_vm1, %v7357_v12  ;;  %v7265_v18 = vmax.f32 %v5153_v23, %v7058_v42  ;;  %v9883_v62 = vpop.f32.mrb[50].mxu0  ;;  %v5154_v0 = vmax.f32 %v12798_v2, %v4949_v39 }
 0x4ae   :  { %v7318_v20 = vadd.f32 %v13744_v47, %v7267_v26  ;;  %v7268_v33 = vmax.f32 %v5156_v17, %v9883_v62  ;;  %v7061_v19 = vpop.f32.mrb[51].mxu0 }
 0x4af   :  { %v7316_v16 = vadd.f32 %v13744_v47, %v7265_v18  ;;  %v7266_v25 = vmax.f32 %v5154_v0, %v7061_v19 }
 0x4b0   :  { %v7362_v57 = vmax.f32 %v7318_v20, 0.0  ;;  %v7319_v41 = vadd.f32 %v13744_v47, %v7268_v33 }
 0x4b1   :  { %v7360_v46 = vmax.f32 %v7316_v16, 0.0  ;;  %v7317_v60 = vadd.f32 %v13744_v47, %v7266_v25  ;;  %v9518_v61 = vpop.f32.mrb[52].mxu1 }
 0x4b2   :  { %7407 = vst.msk [vmem:[%s14012_s3 + $0x30] sm:$0xff] %vm7400_vm1, %v7362_v57  ;;  %v7363_v2 = vmax.f32 %v7319_v41, 0.0  ;;  %v5159_v45 = vmax.f32 %v12806_v40, %v9518_v61  ;;  %v4962_v24 = vpop.f32.mrb[53].mxu1 }
 0x4b3   :  { %7405 = vst.msk [vmem:[%s14012_s3 + $0x20] sm:$0xff] %vm7400_vm1, %v7360_v46  ;;  %v7361_v4 = vmax.f32 %v7317_v60, 0.0  ;;  %v9886_v54 = vpop.f32.mrb[52].mxu0  ;;  %v5157_v14 = vmax.f32 %v12808_v1, %v4962_v24  ;;  %v9519_v30 = vpop.f32.mrb[54].mxu1 }
 0x4b4   :  { %7408 = vst.msk [vmem:[%s14012_s3 + $0x38] sm:$0xff] %vm7400_vm1, %v7363_v2  ;;  %v7271_v28 = vmax.f32 %v5159_v45, %v9886_v54  ;;  %v7074_v43 = vpop.f32.mrb[53].mxu0  ;;  %v5160_v40 = vmax.f32 %v12810_v38, %v9519_v30  ;;  %v4965_v63 = vpop.f32.mrb[55].mxu1 }
 0x4b5   :  { %7406 = vst.msk [vmem:[%s14012_s3 + $0x28] sm:$0xff] %vm7400_vm1, %v7361_v4  ;;  %v7269_v6 = vmax.f32 %v5157_v14, %v7074_v43  ;;  %v9887_v13 = vpop.f32.mrb[54].mxu0  ;;  %v5158_v1 = vmax.f32 %v12814_v15, %v4965_v63 }
 0x4b6   :  { %v7322_v56 = vadd.f32 %v13744_v47, %v7271_v28  ;;  %v7272_v8 = vmax.f32 %v5160_v40, %v9887_v13  ;;  %v7077_v3 = vpop.f32.mrb[55].mxu0 }
 0x4b7   :  { %v7320_v44 = vadd.f32 %v13744_v47, %v7269_v6  ;;  %v7270_v49 = vmax.f32 %v5158_v1, %v7077_v3 }
 0x4b8   :  { %v7366_v53 = vmax.f32 %v7322_v56, 0.0  ;;  %v7323_v38 = vadd.f32 %v13744_v47, %v7272_v8 }
 0x4b9   :  { %v7364_v34 = vmax.f32 %v7320_v44, 0.0  ;;  %v7321_v22 = vadd.f32 %v13744_v47, %v7270_v49  ;;  %v9522_v36 = vpop.f32.mrb[56].mxu1 }
 0x4ba   :  { %7411 = vst.msk [vmem:[%s14012_s3 + $0x50] sm:$0xff] %vm7400_vm1, %v7366_v53  ;;  %v7367_v15 = vmax.f32 %v7323_v38, 0.0  ;;  %v5163_v12 = vmax.f32 %v12822_v58, %v9522_v36  ;;  %v4978_v21 = vpop.f32.mrb[57].mxu1 }
 0x4bb   :  { %7409 = vst.msk [vmem:[%s14012_s3 + $0x40] sm:$0xff] %vm7400_vm1, %v7364_v34  ;;  %v7365_v23 = vmax.f32 %v7321_v22, 0.0  ;;  %v9890_v37 = vpop.f32.mrb[56].mxu0  ;;  %v5161_v26 = vmax.f32 %v12824_v9, %v4978_v21  ;;  %v9523_v42 = vpop.f32.mrb[58].mxu1 }
 0x4bc   :  { %7412 = vst.msk [vmem:[%s14012_s3 + $0x58] sm:$0xff] %vm7400_vm1, %v7367_v15  ;;  %v7275_v17 = vmax.f32 %v5163_v12, %v9890_v37  ;;  %v7090_v39 = vpop.f32.mrb[57].mxu0  ;;  %v5164_v58 = vmax.f32 %v12826_v51, %v9523_v42  ;;  %v4981_v18 = vpop.f32.mrb[59].mxu1 }
 0x4bd   :  { %7410 = vst.msk [vmem:[%s14012_s3 + $0x48] sm:$0xff] %vm7400_vm1, %v7365_v23  ;;  %v7273_v62 = vmax.f32 %v5161_v26, %v7090_v39  ;;  %v9891_v0 = vpop.f32.mrb[58].mxu0  ;;  %v5162_v9 = vmax.f32 %v12830_v59, %v4981_v18 }
 0x4be   :  { %v7326_v20 = vadd.f32 %v13744_v47, %v7275_v17  ;;  %v7276_v33 = vmax.f32 %v5164_v58, %v9891_v0  ;;  %v7093_v19 = vpop.f32.mrb[59].mxu0 }
 0x4bf   :  { %v7324_v16 = vadd.f32 %v13744_v47, %v7273_v62  ;;  %v7274_v25 = vmax.f32 %v5162_v9, %v7093_v19 }
 0x4c0   :  { %v7370_v57 = vmax.f32 %v7326_v20, 0.0  ;;  %v7327_v51 = vadd.f32 %v13744_v47, %v7276_v33 }
 0x4c1   :  { %v7368_v41 = vmax.f32 %v7324_v16, 0.0  ;;  %v7325_v46 = vadd.f32 %v13744_v47, %v7274_v25  ;;  %v9526_v60 = vpop.f32.mrb[60].mxu1 }
 0x4c2   :  { %7415 = vst.msk [vmem:[%s14012_s3 + $0x70] sm:$0xff] %vm7400_vm1, %v7370_v57  ;;  %v7371_v59 = vmax.f32 %v7327_v51, 0.0  ;;  %v5167_v61 = vmax.f32 %v12838_v7, %v9526_v60  ;;  %v4994_v2 = vpop.f32.mrb[61].mxu1  ;;  %v14404_v57 = vld [vmem:[#allocation11_spill] sm:$0xff] }
 0x4c3   :  { %7413 = vst.msk [vmem:[%s14012_s3 + $0x60] sm:$0xff] %vm7400_vm1, %v7368_v41  ;;  %v7369_v45 = vmax.f32 %v7325_v46, 0.0  ;;  %v9894_v24 = vpop.f32.mrb[60].mxu0  ;;  %v5165_v4 = vmax.f32 %v12840_v27, %v4994_v2  ;;  %v9527_v54 = vpop.f32.mrb[62].mxu1 }
 0x4c4   :  { %7416 = vst.msk [vmem:[%s14012_s3 + $0x78] sm:$0xff] %vm7400_vm1, %v7371_v59  ;;  %v7279_v14 = vmax.f32 %v5167_v61, %v9894_v24  ;;  %v7106_v30 = vpop.f32.mrb[61].mxu0  ;;  %v5168_v7 = vmax.f32 %v12842_v35, %v9527_v54  ;;  %v4997_v28 = vpop.f32.mrb[63].mxu1  ;;  %v14405_v59 = vld [vmem:[#allocation14_spill] sm:$0xff]  ;;  %v14406_v24 = vld [vmem:[#allocation15_spill] sm:$0xff] }
 0x4c5   :  { %7414 = vst.msk [vmem:[%s14012_s3 + $0x68] sm:$0xff] %vm7400_vm1, %v7369_v45  ;;  %v7277_v43 = vmax.f32 %v5165_v4, %v7106_v30  ;;  %v9895_v40 = vpop.f32.mrb[62].mxu0  ;;  %v5166_v27 = vmax.f32 %v12846_v11, %v4997_v28 }
 0x4c6   :  { %v7330_v63 = vadd.f32 %v13744_v47, %v7279_v14  ;;  %v7280_v6 = vmax.f32 %v5168_v7, %v9895_v40  ;;  %v7109_v13 = vpop.f32.mrb[63].mxu0 }
 0x4c7   :  { %v7328_v1 = vadd.f32 %v13744_v47, %v7277_v43  ;;  %v7278_v56 = vmax.f32 %v5166_v27, %v7109_v13 }
 0x4c8   :  { %v7374_v8 = vmax.f32 %v7330_v63, 0.0  ;;  %v7331_v35 = vadd.f32 %v13744_v47, %v7280_v6 }
 0x4c9   :  { %v7372_v3 = vmax.f32 %v7328_v1, 0.0  ;;  %v7329_v44 = vadd.f32 %v13744_v47, %v7278_v56  ;;  %v9530_v49 = vpop.f32.mrb[64].mxu1  ;;  %v14407_v1 = vld [vmem:[#allocation18_spill] sm:$0xff] }
 0x4ca   :  { %7419 = vst.msk [vmem:[%s14012_s3 + $0x90] sm:$0xff] %vm7400_vm1, %v7374_v8  ;;  %v7375_v11 = vmax.f32 %v7331_v35, 0.0  ;;  %v5171_v53 = vmax.f32 %v12854_v31, %v9530_v49  ;;  %v5010_v38 = vpop.f32.mrb[65].mxu1 }
 0x4cb   :  { %7417 = vst.msk [vmem:[%s14012_s3 + $0x80] sm:$0xff] %vm7400_vm1, %v7372_v3  ;;  %v7373_v34 = vmax.f32 %v7329_v44, 0.0  ;;  %v9898_v22 = vpop.f32.mrb[64].mxu0  ;;  %v5169_v36 = vmax.f32 %v12856_v55, %v5010_v38  ;;  %v9531_v15 = vpop.f32.mrb[66].mxu1  ;;  %v14408_v44 = vld [vmem:[#allocation19_spill] sm:$0xff] }
 0x4cc   :  { %7420 = vst.msk [vmem:[%s14012_s3 + $0x98] sm:$0xff] %vm7400_vm1, %v7375_v11  ;;  %v7283_v12 = vmax.f32 %v5171_v53, %v9898_v22  ;;  %v7122_v21 = vpop.f32.mrb[65].mxu0  ;;  %v5172_v31 = vmax.f32 %v12858_v29, %v9531_v15  ;;  %v5013_v23 = vpop.f32.mrb[67].mxu1 }
 0x4cd   :  { %7418 = vst.msk [vmem:[%s14012_s3 + $0x88] sm:$0xff] %vm7400_vm1, %v7373_v34  ;;  %v7281_v37 = vmax.f32 %v5169_v36, %v7122_v21  ;;  %v9899_v26 = vpop.f32.mrb[66].mxu0  ;;  %v5170_v55 = vmax.f32 %v12862_v48, %v5013_v23  ;;  %v14409_v34 = vld [vmem:[#allocation22_spill] sm:$0xff]  ;;  %v14410_v21 = vld [vmem:[#allocation23_spill] sm:$0xff] }
 0x4ce   :  { %v7334_v42 = vadd.f32 %v13744_v47, %v7283_v12  ;;  %v7284_v17 = vmax.f32 %v5172_v31, %v9899_v26  ;;  %v7125_v39 = vpop.f32.mrb[67].mxu0 }
 0x4cf   :  { %v7332_v58 = vadd.f32 %v13744_v47, %v7281_v37  ;;  %v7282_v18 = vmax.f32 %v5170_v55, %v7125_v39 }
 0x4d0   :  { %v7378_v62 = vmax.f32 %v7334_v42, 0.0  ;;  %v7335_v29 = vadd.f32 %v13744_v47, %v7284_v17 }
 0x4d1   :  { %v7376_v0 = vmax.f32 %v7332_v58, 0.0  ;;  %v7333_v9 = vadd.f32 %v13744_v47, %v7282_v18  ;;  %v9534_v20 = vpop.f32.mrb[68].mxu1 }
 0x4d2   :  { %7423 = vst.msk [vmem:[%s14012_s3 + $0xb0] sm:$0xff] %vm7400_vm1, %v7378_v62  ;;  %v7379_v48 = vmax.f32 %v7335_v29, 0.0  ;;  %v5175_v33 = vmax.f32 %v12870_v10, %v9534_v20  ;;  %v5026_v19 = vpop.f32.mrb[69].mxu1 }
 0x4d3   :  { %7421 = vst.msk [vmem:[%s14012_s3 + $0xa0] sm:$0xff] %vm7400_vm1, %v7376_v0  ;;  %v7377_v16 = vmax.f32 %v7333_v9, 0.0  ;;  %v9902_v25 = vpop.f32.mrb[68].mxu0  ;;  %v5173_v51 = vmax.f32 %v14404_v57, %v5026_v19  ;;  %v9535_v41 = vpop.f32.mrb[70].mxu1  ;;  %v14411_v0 = vld [vmem:[#allocation26_spill] sm:$0xff]  ;;  %v14412_v19 = vld [vmem:[#allocation27_spill] sm:$0xff] }
 0x4d4   :  { %7424 = vst.msk [vmem:[%s14012_s3 + $0xb8] sm:$0xff] %vm7400_vm1, %v7379_v48  ;;  %v7287_v46 = vmax.f32 %v5175_v33, %v9902_v25  ;;  %v7138_v60 = vpop.f32.mrb[69].mxu0  ;;  %v5176_v10 = vmax.f32 %v14405_v59, %v9535_v41  ;;  %v5029_v61 = vpop.f32.mrb[71].mxu1  ;;  %v14413_v41 = vld [vmem:[#allocation30_spill] sm:$0xff] }
 0x4d5   :  { %7422 = vst.msk [vmem:[%s14012_s3 + $0xa8] sm:$0xff] %vm7400_vm1, %v7377_v16  ;;  %v7285_v2 = vmax.f32 %v5173_v51, %v7138_v60  ;;  %v9903_v45 = vpop.f32.mrb[70].mxu0  ;;  %v5174_v4 = vmax.f32 %v14406_v24, %v5029_v61  ;;  %v14414_v61 = vld [vmem:[#allocation31_spill] sm:$0xff] }
 0x4d6   :  { %v7338_v54 = vadd.f32 %v13744_v47, %v7287_v46  ;;  %v7288_v14 = vmax.f32 %v5176_v10, %v9903_v45  ;;  %v7141_v30 = vpop.f32.mrb[71].mxu0 }
 0x4d7   :  { %v7336_v7 = vadd.f32 %v13744_v47, %v7285_v2  ;;  %v7286_v28 = vmax.f32 %v5174_v4, %v7141_v30 }
 0x4d8   :  { %v7382_v43 = vmax.f32 %v7338_v54, 0.0  ;;  %v7339_v40 = vadd.f32 %v13744_v47, %v7288_v14 }
 0x4d9   :  { %v7380_v27 = vmax.f32 %v7336_v7, 0.0  ;;  %v7337_v63 = vadd.f32 %v13744_v47, %v7286_v28  ;;  %v9538_v6 = vpop.f32.mrb[72].mxu1 }
 0x4da   :  { %7427 = vst.msk [vmem:[%s14012_s3 + $0xd0] sm:$0xff] %vm7400_vm1, %v7382_v43  ;;  %v7383_v13 = vmax.f32 %v7339_v40, 0.0  ;;  %v5179_v56 = vmax.f32 %v14407_v1, %v9538_v6  ;;  %v5042_v8 = vpop.f32.mrb[73].mxu1 }
 0x4db   :  { %7425 = vst.msk [vmem:[%s14012_s3 + $0xc0] sm:$0xff] %vm7400_vm1, %v7380_v27  ;;  %v7381_v35 = vmax.f32 %v7337_v63, 0.0  ;;  %v9906_v3 = vpop.f32.mrb[72].mxu0  ;;  %v5177_v49 = vmax.f32 %v14408_v44, %v5042_v8  ;;  %v9539_v11 = vpop.f32.mrb[74].mxu1  ;;  %v14415_v63 = vld [vmem:[#allocation34_spill] sm:$0xff] }
 0x4dc   :  { %7428 = vst.msk [vmem:[%s14012_s3 + $0xd8] sm:$0xff] %vm7400_vm1, %v7383_v13  ;;  %v7291_v53 = vmax.f32 %v5179_v56, %v9906_v3  ;;  %v7154_v38 = vpop.f32.mrb[73].mxu0  ;;  %v5180_v22 = vmax.f32 %v14409_v34, %v9539_v11  ;;  %v5045_v36 = vpop.f32.mrb[75].mxu1  ;;  %v14416_v8 = vld [vmem:[#allocation2_spill] sm:$0xff]  ;;  %v14417_v11 = vld [vmem:[#allocation3_spill] sm:$0xff] }
 0x4dd   :  { %7426 = vst.msk [vmem:[%s14012_s3 + $0xc8] sm:$0xff] %vm7400_vm1, %v7381_v35  ;;  %v7289_v15 = vmax.f32 %v5177_v49, %v7154_v38  ;;  %v9907_v12 = vpop.f32.mrb[74].mxu0  ;;  %v5178_v31 = vmax.f32 %v14410_v21, %v5045_v36  ;;  %v14418_v36 = vld [vmem:[#allocation4_spill] sm:$0xff] }
 0x4de   :  { %v7342_v23 = vadd.f32 %v13744_v47, %v7291_v53  ;;  %v7292_v37 = vmax.f32 %v5180_v22, %v9907_v12  ;;  %v7157_v26 = vpop.f32.mrb[75].mxu0 }
 0x4df   :  { %v7340_v55 = vadd.f32 %v13744_v47, %v7289_v15  ;;  %v7290_v42 = vmax.f32 %v5178_v31, %v7157_v26 }
 0x4e0   :  { %v7386_v17 = vmax.f32 %v7342_v23, 0.0  ;;  %v7343_v39 = vadd.f32 %v13744_v47, %v7292_v37 }
 0x4e1   :  { %v7384_v58 = vmax.f32 %v7340_v55, 0.0  ;;  %v7341_v18 = vadd.f32 %v13744_v47, %v7290_v42  ;;  %v9542_v62 = vpop.f32.mrb[76].mxu1 }
 0x4e2   :  { %7431 = vst.msk [vmem:[%s14012_s3 + $0xf0] sm:$0xff] %vm7400_vm1, %v7386_v17  ;;  %v7387_v29 = vmax.f32 %v7343_v39, 0.0  ;;  %v5183_v9 = vmax.f32 %v14411_v0, %v9542_v62  ;;  %v5058_v20 = vpop.f32.mrb[77].mxu1 }
 0x4e3   :  { %7429 = vst.msk [vmem:[%s14012_s3 + $0xe0] sm:$0xff] %vm7400_vm1, %v7384_v58  ;;  %v7385_v48 = vmax.f32 %v7341_v18, 0.0  ;;  %v9910_v33 = vpop.f32.mrb[76].mxu0  ;;  %v5181_v16 = vmax.f32 %v14412_v19, %v5058_v20  ;;  %v9543_v25 = vpop.f32.mrb[78].mxu1 }
 0x4e4   :  { %7432 = vst.msk [vmem:[%s14012_s3 + $0xf8] sm:$0xff] %vm7400_vm1, %v7387_v29  ;;  %v7295_v57 = vmax.f32 %v5183_v9, %v9910_v33  ;;  %v7170_v51 = vpop.f32.mrb[77].mxu0  ;;  %v5184_v46 = vmax.f32 %v14413_v41, %v9543_v25  ;;  %v5061_v60 = vpop.f32.mrb[79].mxu1 }
 0x4e5   :  { %7430 = vst.msk [vmem:[%s14012_s3 + $0xe8] sm:$0xff] %vm7400_vm1, %v7385_v48  ;;  %v7293_v59 = vmax.f32 %v5181_v16, %v7170_v51  ;;  %v9911_v10 = vpop.f32.mrb[78].mxu0  ;;  %v5182_v2 = vmax.f32 %v14414_v61, %v5061_v60 }
 0x4e6   :  { %v7346_v45 = vadd.f32 %v13744_v47, %v7295_v57  ;;  %v7296_v24 = vmax.f32 %v5184_v46, %v9911_v10  ;;  %v7173_v4 = vpop.f32.mrb[79].mxu0 }
 0x4e7   :  { %v7344_v54 = vadd.f32 %v13744_v47, %v7293_v59  ;;  %v7294_v14 = vmax.f32 %v5182_v2, %v7173_v4 }
 0x4e8   :  { %v7390_v30 = vmax.f32 %v7346_v45, 0.0  ;;  %v7347_v7 = vadd.f32 %v13744_v47, %v7296_v24 }
 0x4e9   :  { %v7388_v28 = vmax.f32 %v7344_v54, 0.0  ;;  %v7345_v43 = vadd.f32 %v13744_v47, %v7294_v14  ;;  %v9546_v40 = vpop.f32.mrb[80].mxu1 }
 0x4ea   :  { %7435 = vst.msk [vmem:[%s14012_s3 + $0x110] sm:$0xff] %vm7400_vm1, %v7390_v30  ;;  %v7391_v27 = vmax.f32 %v7347_v7, 0.0  ;;  %v5187_v6 = vmax.f32 %v14415_v63, %v9546_v40  ;;  %v5074_v13 = vpop.f32.mrb[81].mxu1 }
 0x4eb   :  { %7433 = vst.msk [vmem:[%s14012_s3 + $0x100] sm:$0xff] %vm7400_vm1, %v7388_v28  ;;  %v7389_v1 = vmax.f32 %v7345_v43, 0.0  ;;  %v9914_v56 = vpop.f32.mrb[80].mxu0  ;;  %v5185_v35 = vmax.f32 %v14416_v8, %v5074_v13  ;;  %v9547_v3 = vpop.f32.mrb[82].mxu1 }
 0x4ec   :  { %7436 = vst.msk [vmem:[%s14012_s3 + $0x118] sm:$0xff] %vm7400_vm1, %v7391_v27  ;;  %v7299_v44 = vmax.f32 %v5187_v6, %v9914_v56  ;;  %v7186_v49 = vpop.f32.mrb[81].mxu0  ;;  %v5188_v53 = vmax.f32 %v14417_v11, %v9547_v3  ;;  %v5077_v38 = vpop.f32.mrb[83].mxu1 }
 0x4ed   :  { %7434 = vst.msk [vmem:[%s14012_s3 + $0x108] sm:$0xff] %vm7400_vm1, %v7389_v1  ;;  %v7297_v34 = vmax.f32 %v5185_v35, %v7186_v49  ;;  %v9915_v22 = vpop.f32.mrb[82].mxu0  ;;  %v5186_v15 = vmax.f32 %v14418_v36, %v5077_v38 }
 0x4ee   :  { %v7350_v12 = vadd.f32 %v13744_v47, %v7299_v44  ;;  %v7300_v21 = vmax.f32 %v5188_v53, %v9915_v22  ;;  %v7189_v31 = vpop.f32.mrb[83].mxu0 }
 0x4ef   :  { %v7348_v23 = vadd.f32 %v13744_v47, %v7297_v34  ;;  %v7298_v37 = vmax.f32 %v5186_v15, %v7189_v31 }
 0x4f0   :  { %v7394_v26 = vmax.f32 %v7350_v12, 0.0  ;;  %v7351_v55 = vadd.f32 %v13744_v47, %v7300_v21 }
 0x4f1   :  { %v7392_v42 = vmax.f32 %v7348_v23, 0.0  ;;  %v7349_v17 = vadd.f32 %v13744_v47, %v7298_v37  ;;  %v9550_v39 = vpop.f32.mrb[84].mxu1 }
 0x4f2   :  { %7439 = vst.msk [vmem:[%s14012_s3 + $0x130] sm:$0xff] %vm7400_vm1, %v7394_v26  ;;  %v7395_v58 = vmax.f32 %v7351_v55, 0.0  ;;  %v5191_v18 = vmax.f32 %v12943_v52, %v9550_v39  ;;  %v5090_v62 = vpop.f32.mrb[85].mxu1 }
 0x4f3   :  { %7437 = vst.msk [vmem:[%s14012_s3 + $0x120] sm:$0xff] %vm7400_vm1, %v7392_v42  ;;  %v7393_v29 = vmax.f32 %v7349_v17, 0.0  ;;  %v9918_v0 = vpop.f32.mrb[84].mxu0  ;;  %v5189_v9 = vmax.f32 %v12945_v50, %v5090_v62  ;;  %v9551_v20 = vpop.f32.mrb[86].mxu1 }
 0x4f4   :  { %7440 = vst.msk [vmem:[%s14012_s3 + $0x138] sm:$0xff] %vm7400_vm1, %v7395_v58  ;;  %v7303_v48 = vmax.f32 %v5191_v18, %v9918_v0  ;;  %v7202_v33 = vpop.f32.mrb[85].mxu0  ;;  %v5192_v52 = vmax.f32 %v12947_v32, %v9551_v20  ;;  %v5093_v19 = vpop.f32.mrb[87].mxu1 }
 0x4f5   :  { %7438 = vst.msk [vmem:[%s14012_s3 + $0x128] sm:$0xff] %vm7400_vm1, %v7393_v29  ;;  %v7301_v16 = vmax.f32 %v5189_v9, %v7202_v33  ;;  %v9919_v25 = vpop.f32.mrb[86].mxu0  ;;  %v5190_v50 = vmax.f32 %v12951_v5, %v5093_v19 }
 0x4f6   :  { %v7354_v57 = vadd.f32 %v13744_v47, %v7303_v48  ;;  %v7304_v51 = vmax.f32 %v5192_v52, %v9919_v25  ;;  %v7205_v41 = vpop.f32.mrb[87].mxu0 }
 0x4f7   :  { %v7352_v46 = vadd.f32 %v13744_v47, %v7301_v16  ;;  %v7302_v60 = vmax.f32 %v5190_v50, %v7205_v41 }
 0x4f8   :  { %v7398_v59 = vmax.f32 %v7354_v57, 0.0  ;;  %v7355_v32 = vadd.f32 %v13744_v47, %v7304_v51 }
 0x4f9   :  { %v7396_v10 = vmax.f32 %v7352_v46, 0.0  ;;  %v7353_v61 = vadd.f32 %v13744_v47, %v7302_v60 }
 0x4fa   :  { %7443 = vst.msk [vmem:[%s14012_s3 + $0x150] sm:$0xff] %vm7400_vm1, %v7398_v59  ;;  %v7399_v2 = vmax.f32 %v7355_v32, 0.0 }
 0x4fb   :  { %7441 = vst.msk [vmem:[%s14012_s3 + $0x140] sm:$0xff] %vm7400_vm1, %v7396_v10  ;;  %v7397_v5 = vmax.f32 %v7353_v61, 0.0 }
 0x4fc   :  { %7444 = vst.msk [vmem:[%s14012_s3 + $0x158] sm:$0xff] %vm7400_vm1, %v7399_v2 }
 0x4fd   :  { %7442 = vst.msk [vmem:[%s14012_s3 + $0x148] sm:$0xff] %vm7400_vm1, %v7397_v5 }

</bundles_post_ra>
